<compile_context>
chip_gen: v7x
topology: tpu7x:2x2x1
jax: 0.10.0
libtpu: 0.0.40
codegen_flags: <defaults>
</compile_context>

<pallas_src>
import functools

import jax
import jax.numpy as jnp
from jax.experimental import pallas as pl
from jax.experimental.pallas import tpu as pltpu

F32 = jnp.float32
BF16 = jnp.bfloat16


# --------------------------- in-kernel helpers -----------------------------

def _layernorm(x, g, b):
    mean = jnp.mean(x, axis=-1, keepdims=True)
    var = jnp.mean(jnp.square(x - mean), axis=-1, keepdims=True)
    return (x - mean) * jax.lax.rsqrt(var + 1e-5) * g + b


def _softmax_lastdim(s):
    # Exact f32 normalization (review flagged approx reciprocal noise).
    m = jnp.max(s, axis=-1, keepdims=True)
    p = jnp.exp(s - m)
    return p / jnp.sum(p, axis=-1, keepdims=True)


def _mha_self(qkv, bias, B, S, H, Dh, scale):
    """Multi-head self-attention.

    qkv:  (B*S, 3E) f32 with [q | k | v] columns, Dh per head contiguous.
    bias: (B, 1, S) additive key-padding bias (hoisted out of the head loop).
    Returns the head-concatenated (B*S, E) f32 context (kept in registers —
    no scratch writeback, no sub-lane partial stores).
    """
    E = H * Dh
    heads = []
    for h in range(H):
        c0 = h * Dh
        q = qkv[:, c0:c0 + Dh].reshape(B, S, Dh).astype(BF16)
        k = qkv[:, E + c0:E + c0 + Dh].reshape(B, S, Dh).astype(BF16)
        v = qkv[:, 2 * E + c0:2 * E + c0 + Dh].reshape(B, S, Dh).astype(BF16)
        s = jnp.einsum("bqd,bkd->bqk", q, k,
                       preferred_element_type=F32) * scale        # (B,S,S)
        # NOTE: fully-masked rows get ~uniform attention over padded keys
        # (finite -1e30 bias) instead of PyTorch's NaN — documented edge case.
        p = _softmax_lastdim(s + bias)
        o = jnp.einsum("bqk,bkd->bqd", p.astype(BF16), v,
                       preferred_element_type=F32)                 # (B,S,Dh)
        heads.append(o.reshape(B * S, Dh))
    return jnp.concatenate(heads, axis=-1)                         # (B*S, E)


# ----------------------------- fused kernels -------------------------------

def _encoder_layer_kernel(x_ref, mask_ref,
                          wqkv_ref, bqkv_ref, wo_ref, bo_ref,
                          w1_ref, b1_ref, w2_ref, b2_ref,
                          g1_ref, be1_ref, g2_ref, be2_ref,
                          o_ref, x_sc, *, B, S, H):
    l = pl.program_id(0)

    @pl.when(l == 0)
    def _():
        x_sc[...] = x_ref[...]

    E = x_ref.shape[-1]
    Dh = E // H
    scale = 1.0 / float(Dh) ** 0.5

    x = x_sc[...]                                                  # (B*S, E)
    bias = jnp.where(mask_ref[...] == 0.0, -1e30, 0.0)[:, None, :]  # (B,1,S)

    # fused QKV projection + MHA + out-projection + residual + LN
    qkv = jnp.dot(x.astype(BF16), wqkv_ref[...],
                  preferred_element_type=F32) + bqkv_ref[...]
    attn = _mha_self(qkv, bias, B, S, H, Dh, scale)
    sa = jnp.dot(attn.astype(BF16), wo_ref[...],
                 preferred_element_type=F32) + bo_ref[...]
    x = _layernorm(x + sa, g1_ref[...], be1_ref[...])

    # feed-forward (relu) + residual + LN
    hdn = jnp.maximum(
        jnp.dot(x.astype(BF16), w1_ref[...],
                preferred_element_type=F32) + b1_ref[...], 0.0)
    ff = jnp.dot(hdn.astype(BF16), w2_ref[...],
                 preferred_element_type=F32) + b2_ref[...]
    x = _layernorm(x + ff, g2_ref[...], be2_ref[...])

    x_sc[...] = x

    @pl.when(l == pl.num_programs(0) - 1)
    def _():
        o_ref[...] = x


def _decoder_layer_kernel(x_ref, mem_ref, mask_ref,
                          sa_wqkv_ref, sa_bqkv_ref, sa_wo_ref, sa_bo_ref,
                          ca_wv_ref, ca_bv_ref, ca_wo_ref, ca_bo_ref,
                          w1_ref, b1_ref, w2_ref, b2_ref,
                          g1_ref, be1_ref, g2_ref, be2_ref, g3_ref, be3_ref,
                          o_ref, x_sc, *, B, S, H):
    l = pl.program_id(0)

    @pl.when(l == 0)
    def _():
        x_sc[...] = x_ref[...]

    E = x_ref.shape[-1]
    Dh = E // H
    scale = 1.0 / float(Dh) ** 0.5

    x = x_sc[...]                                                  # (B*S, E)
    bias = jnp.where(mask_ref[...] == 0.0, -1e30, 0.0)[:, None, :]  # (B,1,S)

    # self-attention (tgt_key_padding_mask only — reference passes no causal
    # mask) + residual + LN
    qkv = jnp.dot(x.astype(BF16), sa_wqkv_ref[...],
                  preferred_element_type=F32) + sa_bqkv_ref[...]
    attn = _mha_self(qkv, bias, B, S, H, Dh, scale)
    sa = jnp.dot(attn.astype(BF16), sa_wo_ref[...],
                 preferred_element_type=F32) + sa_bo_ref[...]
    x = _layernorm(x + sa, g1_ref[...], be1_ref[...])

    # cross-attention against the single latent memory token: softmax over
    # one key is identically 1, so the context is just V broadcast over the
    # S query rows — Q/K projections, scores and exp are algebraically
    # eliminated (identical output).
    v = jnp.dot(mem_ref[...].astype(BF16), ca_wv_ref[...],
                preferred_element_type=F32) + ca_bv_ref[...]        # (B, E)
    ca = jnp.dot(v.astype(BF16), ca_wo_ref[...],
                 preferred_element_type=F32) + ca_bo_ref[...]       # (B, E)
    ca_rows = jnp.broadcast_to(ca[:, None, :], (B, S, E)).reshape(B * S, E)
    x = _layernorm(x + ca_rows, g2_ref[...], be2_ref[...])

    # feed-forward (relu) + residual + LN
    hdn = jnp.maximum(
        jnp.dot(x.astype(BF16), w1_ref[...],
                preferred_element_type=F32) + b1_ref[...], 0.0)
    ff = jnp.dot(hdn.astype(BF16), w2_ref[...],
                 preferred_element_type=F32) + b2_ref[...]
    x = _layernorm(x + ff, g3_ref[...], be3_ref[...])

    x_sc[...] = x

    @pl.when(l == pl.num_programs(0) - 1)
    def _():
        o_ref[...] = x


def _encode_head_kernel(h_ref, eps_ref, w_ml_ref, b_ml_ref, w_l2e_ref, b_l2e_ref,
                        mu_ref, logvar_ref, mem_ref, *, B, S, L):
    E = h_ref.shape[-1]
    # mean-pool over the sequence (torch .mean(dim=0)); padded positions are
    # included — same as the reference.
    pooled = jnp.mean(h_ref[...].reshape(B, S, E), axis=1)          # (B, E)

    # fused [mu | logvar] projection
    ml = jnp.dot(pooled.astype(BF16), w_ml_ref[...],
                 preferred_element_type=F32) + b_ml_ref[...]        # (B, 2L)
    mu = ml[:, :L]
    logvar = ml[:, L:]

    # reparameterize (eps drawn outside, like torch.randn_like)
    std = jnp.exp(0.5 * logvar)
    z = mu + eps_ref[...] * std

    # latent -> embedding (single decoder memory token)
    mem = jnp.dot(z.astype(BF16), w_l2e_ref[...],
                  preferred_element_type=F32) + b_l2e_ref[...]

    mu_ref[...] = mu
    logvar_ref[...] = logvar
    mem_ref[...] = mem


def _output_proj_kernel(x_ref, w_ref, b_ref, o_ref):
    o_ref[...] = (jnp.dot(x_ref[...].astype(BF16), w_ref[...],
                          preferred_element_type=F32)
                  + b_ref[...]).astype(o_ref.dtype)


# --------------------------- pallas_call wrappers ---------------------------

def _stacked_spec(arr):
    """Weight stacked along a leading layer axis; stream one layer per step."""
    tail = (0,) * (arr.ndim - 1)
    return pl.BlockSpec((None,) + arr.shape[1:],
                        lambda l, _t=tail: (l,) + _t)


def _resident_spec(shape):
    """Full-array block whose index never changes -> resident across layers."""
    nd = len(shape)
    return pl.BlockSpec(tuple(shape), lambda l, _nd=nd: (0,) * _nd)


_ENC_W_KEYS = ("wqkv", "bqkv", "wo", "bo", "w1", "b1", "w2", "b2",
               "ln1_g", "ln1_b", "ln2_g", "ln2_b")

_DEC_W_KEYS = ("sa_wqkv", "sa_bqkv", "sa_wo", "sa_bo",
               "ca_wv", "ca_bv", "ca_wo", "ca_bo",
               "w1", "b1", "w2", "b2",
               "ln1_g", "ln1_b", "ln2_g", "ln2_b", "ln3_g", "ln3_b")


def encoder_stack(x2d, mask_f, p, *, B, S, H):
    E = x2d.shape[-1]
    L = p["wqkv"].shape[0]
    weights = [p[k] for k in _ENC_W_KEYS]
    kernel = functools.partial(_encoder_layer_kernel, B=B, S=S, H=H)
    return pl.pallas_call(
        kernel,
        out_shape=jax.ShapeDtypeStruct((B * S, E), F32),
        grid=(L,),
        in_specs=[_resident_spec(x2d.shape), _resident_spec(mask_f.shape)]
                 + [_stacked_spec(w) for w in weights],
        out_specs=_resident_spec((B * S, E)),
        scratch_shapes=[pltpu.VMEM((B * S, E), F32)],
        compiler_params=pltpu.CompilerParams(
            dimension_semantics=("arbitrary",)),
    )(x2d, mask_f, *weights)


def decoder_stack(x2d, mem, mask_f, p, *, B, S, H):
    E = x2d.shape[-1]
    L = p["sa_wqkv"].shape[0]
    weights = [p[k] for k in _DEC_W_KEYS]
    kernel = functools.partial(_decoder_layer_kernel, B=B, S=S, H=H)
    return pl.pallas_call(
        kernel,
        out_shape=jax.ShapeDtypeStruct((B * S, E), F32),
        grid=(L,),
        in_specs=[_resident_spec(x2d.shape), _resident_spec(mem.shape),
                  _resident_spec(mask_f.shape)]
                 + [_stacked_spec(w) for w in weights],
        out_specs=_resident_spec((B * S, E)),
        scratch_shapes=[pltpu.VMEM((B * S, E), F32)],
        compiler_params=pltpu.CompilerParams(
            dimension_semantics=("arbitrary",)),
    )(x2d, mem, mask_f, *weights)


def encode_head(h2d, eps, params, *, B, S):
    E = h2d.shape[-1]
    L = eps.shape[-1]
    kernel = functools.partial(_encode_head_kernel, B=B, S=S, L=L)
    # No grid -> whole arrays resident in VMEM, no double-buffering.
    return pl.pallas_call(
        kernel,
        out_shape=(jax.ShapeDtypeStruct((B, L), F32),   # mu
                   jax.ShapeDtypeStruct((B, L), F32),   # logvar
                   jax.ShapeDtypeStruct((B, E), F32)),  # memory token
    )(h2d, eps, params["w_mulogvar"], params["b_mulogvar"],
      params["w_l2e"], params["b_l2e"])


def output_projection(x2d, w, b):
    M, E = x2d.shape
    V = w.shape[1]
    if V <= 512:
        # Toy / small vocab: single un-gridded call, everything in VMEM.
        return pl.pallas_call(
            _output_proj_kernel,
            out_shape=jax.ShapeDtypeStruct((M, V), F32),
        )(x2d, w, b)
    # Realistic vocab: lane-dense 512-wide tiles over a "parallel" vocab grid
    # so w_out never has to fit VMEM as one block.
    tn = 512
    return pl.pallas_call(
        _output_proj_kernel,
        out_shape=jax.ShapeDtypeStruct((M, V), F32),
        grid=(pl.cdiv(V, tn),),
        in_specs=[pl.BlockSpec((M, E), lambda j: (0, 0)),
                  pl.BlockSpec((E, tn), lambda j: (0, j)),
                  pl.BlockSpec((1, tn), lambda j: (0, j))],
        out_specs=pl.BlockSpec((M, tn), lambda j: (0, j)),
        compiler_params=pltpu.CompilerParams(
            dimension_semantics=("parallel",),
            vmem_limit_bytes=64 * 1024 * 1024),
    )(x2d, w, b)


# ------------------------------ full forward --------------------------------

def transformer_vae_forward(params, x_ids, attention_mask, eps_key, num_heads):
    """x_ids: (B, S) int32 tokens; attention_mask: (B, S), 1=valid / 0=pad."""
    B, S = x_ids.shape
    E = params["embedding"].shape[1]
    Z = params["w_l2e"].shape[0]
    V = params["w_out"].shape[1]

    # TODO(synk): token-embedding gather stays in XLA (jnp.take); a Pallas
    # gather at this size is a per-row DMA with no upside.
    emb = jnp.take(params["embedding"], x_ids.reshape(-1), axis=0)   # (B*S, E)
    mask_f = attention_mask.astype(F32)                              # (B, S)

    # ---- encode (one fused pallas_call over all encoder layers) ----
    h = encoder_stack(emb, mask_f, params["enc"], B=B, S=S, H=num_heads)

    # ---- pooling + mu/logvar + reparameterize + latent->embedding ----
    eps = jax.random.normal(eps_key, (B, Z), F32)    # torch.randn_like
    mu, logvar, mem = encode_head(h, eps, params, B=B, S=S)

    # ---- decode (one fused pallas_call over all decoder layers) ----
    tgt = decoder_stack(emb, mem, mask_f, params["dec"], B=B, S=S, H=num_heads)

    logits = output_projection(tgt, params["w_out"], params["b_out"])
    return logits.reshape(B, S, V), mu, logvar


# ------------------------------ parameter init -------------------------------
# Weights live directly in kernel-friendly (in_features, out_features) layout,
# stacked along a leading layer axis, with fused QKV / [mu|logvar] blocks.
# Matmul weights are bf16 (f32 accumulation in-kernel); biases / LN params f32.
# The cross-attention Q/K projections are never materialized: with a length-1
# memory the softmax is identically 1, so they cannot affect the output.

def init_params(key, vocab, emb_dim, hid, latent, layers):
    keys = iter(jax.random.split(key, 16))

    def nrm(shape, dtype=BF16):
        return (jax.random.normal(next(keys), shape, F32) * 0.02).astype(dtype)

    def zeros(shape):
        return jnp.zeros(shape, F32)

    def ones(shape):
        return jnp.ones(shape, F32)

    L, E, Hd, Z = layers, emb_dim, hid, latent

    enc = dict(
        wqkv=nrm((L, E, 3 * E)), bqkv=zeros((L, 1, 3 * E)),
        wo=nrm((L, E, E)), bo=zeros((L, 1, E)),
        w1=nrm((L, E, Hd)), b1=zeros((L, 1, Hd)),
        w2=nrm((L, Hd, E)), b2=zeros((L, 1, E)),
        ln1_g=ones((L, 1, E)), ln1_b=zeros((L, 1, E)),
        ln2_g=ones((L, 1, E)), ln2_b=zeros((L, 1, E)),
    )
    dec = dict(
        sa_wqkv=nrm((L, E, 3 * E)), sa_bqkv=zeros((L, 1, 3 * E)),
        sa_wo=nrm((L, E, E)), sa_bo=zeros((L, 1, E)),
        ca_wv=nrm((L, E, E)), ca_bv=zeros((L, 1, E)),
        ca_wo=nrm((L, E, E)), ca_bo=zeros((L, 1, E)),
        w1=nrm((L, E, Hd)), b1=zeros((L, 1, Hd)),
        w2=nrm((L, Hd, E)), b2=zeros((L, 1, E)),
        ln1_g=ones((L, 1, E)), ln1_b=zeros((L, 1, E)),
        ln2_g=ones((L, 1, E)), ln2_b=zeros((L, 1, E)),
        ln3_g=ones((L, 1, E)), ln3_b=zeros((L, 1, E)),
    )
    return dict(
        embedding=nrm((vocab, E), F32),
        enc=enc, dec=dec,
        w_mulogvar=nrm((E, 2 * Z)), b_mulogvar=zeros((1, 2 * Z)),
        w_l2e=nrm((Z, E)), b_l2e=zeros((1, E)),
        w_out=nrm((E, vocab)), b_out=zeros((1, vocab)),
    )


# ---------------------------------- main ------------------------------------

if __name__ == "__main__":
    B, S = 2, 8
    VOCAB, EMB, HID, LATENT, HEADS, LAYERS = 64, 32, 64, 16, 4, 2
    # dropout = 0.0 -> identity (eval-mode torch forward)

    key = jax.random.PRNGKey(0)
    pkey, xkey, ekey = jax.random.split(key, 3)

    params = init_params(pkey, VOCAB, EMB, HID, LATENT, LAYERS)
    x_ids = jax.random.randint(xkey, (B, S), 0, VOCAB, dtype=jnp.int32)
    attention_mask = jnp.ones((B, S), jnp.int32).at[1, 6:].set(0)   # some padding

    fwd = jax.jit(functools.partial(transformer_vae_forward, num_heads=HEADS))
    logits, mu, logvar = fwd(params, x_ids, attention_mask, ekey)
    jax.block_until_ready((logits, mu, logvar))

    assert logits.shape == (B, S, VOCAB)
    assert mu.shape == (B, LATENT) and logvar.shape == (B, LATENT)
    assert bool(jnp.all(jnp.isfinite(logits)))
    assert bool(jnp.all(jnp.isfinite(mu))) and bool(jnp.all(jnp.isfinite(logvar)))
    print("KERNEL_OK")
</pallas_src>

<mosaic_0001>
module attributes {stable_mosaic.version = 11 : i64} {
  func.func @_encoder_layer_kernel(%arg0: i32, %arg1: memref<16x32xf32, #tpu.memory_space<vmem>>, %arg2: memref<2x8xf32, #tpu.memory_space<vmem>>, %arg3: memref<1x32x96xbf16, #tpu.memory_space<vmem>>, %arg4: memref<1x1x96xf32, #tpu.memory_space<vmem>>, %arg5: memref<1x32x32xbf16, #tpu.memory_space<vmem>>, %arg6: memref<1x1x32xf32, #tpu.memory_space<vmem>>, %arg7: memref<1x32x64xbf16, #tpu.memory_space<vmem>>, %arg8: memref<1x1x64xf32, #tpu.memory_space<vmem>>, %arg9: memref<1x64x32xbf16, #tpu.memory_space<vmem>>, %arg10: memref<1x1x32xf32, #tpu.memory_space<vmem>>, %arg11: memref<1x1x32xf32, #tpu.memory_space<vmem>>, %arg12: memref<1x1x32xf32, #tpu.memory_space<vmem>>, %arg13: memref<1x1x32xf32, #tpu.memory_space<vmem>>, %arg14: memref<1x1x32xf32, #tpu.memory_space<vmem>>, %arg15: memref<16x32xf32, #tpu.memory_space<vmem>>, %arg16: memref<16x32xf32, #tpu.memory_space<vmem>>) attributes {dimension_semantics = [#tpu.dimension_semantics<arbitrary>], iteration_bounds = array<i64: 2>, scalar_prefetch = 0 : i64, scratch_operands = 1 : i64, tpu.core_type = #tpu.core_type<tc>, window_params = [{pipeline_mode = #tpu.pipeline_mode<synchronous>, transform_indices = @transform_0, window_bounds = array<i64: 16, 32>}, {pipeline_mode = #tpu.pipeline_mode<synchronous>, transform_indices = @transform_1, window_bounds = array<i64: 2, 8>}, {transform_indices = @transform_2, window_bounds = array<i64: 1, 32, 96>}, {transform_indices = @transform_3, window_bounds = array<i64: 1, 1, 96>}, {transform_indices = @transform_4, window_bounds = array<i64: 1, 32, 32>}, {transform_indices = @transform_5, window_bounds = array<i64: 1, 1, 32>}, {transform_indices = @transform_6, window_bounds = array<i64: 1, 32, 64>}, {transform_indices = @transform_7, window_bounds = array<i64: 1, 1, 64>}, {transform_indices = @transform_8, window_bounds = array<i64: 1, 64, 32>}, {transform_indices = @transform_9, window_bounds = array<i64: 1, 1, 32>}, {transform_indices = @transform_10, window_bounds = array<i64: 1, 1, 32>}, {transform_indices = @transform_11, window_bounds = array<i64: 1, 1, 32>}, {transform_indices = @transform_12, window_bounds = array<i64: 1, 1, 32>}, {transform_indices = @transform_13, window_bounds = array<i64: 1, 1, 32>}, {pipeline_mode = #tpu.pipeline_mode<synchronous>, transform_indices = @transform_14, window_bounds = array<i64: 16, 32>}]} {
    %c0_i32 = arith.constant 0 : i32
    %0 = arith.cmpi eq, %arg0, %c0_i32 : i32
    %1 = arith.extui %0 : i1 to i32
    %c0_i32_0 = arith.constant 0 : i32
    %2 = arith.cmpi ne, %1, %c0_i32_0 : i32
    scf.if %2 {
      %c0_80 = arith.constant 0 : index
      %c0_81 = arith.constant 0 : index
      %208 = vector.load %arg1[%c0_80, %c0_81] : memref<16x32xf32, #tpu.memory_space<vmem>>, vector<16x32xf32>
      %c0_82 = arith.constant 0 : index
      %c0_83 = arith.constant 0 : index
      %209 = vector.load %arg16[%c0_82, %c0_83] : memref<16x32xf32, #tpu.memory_space<vmem>>, vector<16x32xf32>
      tpu.vector_store %arg16[%c0_82, %c0_83], %208 {strides = array<i32>} : memref<16x32xf32, #tpu.memory_space<vmem>>, vector<16x32xf32>,
    } else {
    }
    %c0 = arith.constant 0 : index
    %c0_1 = arith.constant 0 : index
    %3 = vector.load %arg16[%c0, %c0_1] : memref<16x32xf32, #tpu.memory_space<vmem>>, vector<16x32xf32>
    %c0_2 = arith.constant 0 : index
    %c0_3 = arith.constant 0 : index
    %4 = vector.load %arg2[%c0_2, %c0_3] : memref<2x8xf32, #tpu.memory_space<vmem>>, vector<2x8xf32>
    %cst = arith.constant 0.000000e+00 : f32
    %5 = vector.broadcast %cst : f32 to vector<2x8xf32>
    %6 = arith.cmpf oeq, %4, %5 : vector<2x8xf32>
    %cst_4 = arith.constant -1.000000e+30 : f32
    %cst_5 = arith.constant 0.000000e+00 : f32
    %7 = vector.broadcast %cst_4 : f32 to vector<2x8xf32>
    %8 = vector.broadcast %cst_5 : f32 to vector<2x8xf32>
    %9 = arith.select %6, %7, %8 : vector<2x8xi1>, vector<2x8xf32>
    %10 = vector.shape_cast %9 : vector<2x8xf32> to vector<2x1x8xf32>
    %11 = arith.truncf %3 : vector<16x32xf32> to vector<16x32xbf16>
    %c0_6 = arith.constant 0 : index
    %c0_7 = arith.constant 0 : index
    %c0_8 = arith.constant 0 : index
    %12 = vector.load %arg3[%c0_6, %c0_7, %c0_8] : memref<1x32x96xbf16, #tpu.memory_space<vmem>>, vector<1x32x96xbf16>
    %13 = vector.shape_cast %12 : vector<1x32x96xbf16> to vector<32x96xbf16>
    %cst_9 = arith.constant dense<0.000000e+00> : vector<16x96xf32>
    %14 = tpu.matmul %11, %13, %cst_9 {dimension_numbers = #tpu.dot_dimension_numbers<[1], [0], [0], [1], [0, 0, 1, 1], [], []>} : vector<16x32xbf16>, vector<32x96xbf16>, vector<16x96xf32> -> vector<16x96xf32>
    %c0_10 = arith.constant 0 : index
    %c0_11 = arith.constant 0 : index
    %c0_12 = arith.constant 0 : index
    %15 = vector.load %arg4[%c0_10, %c0_11, %c0_12] : memref<1x1x96xf32, #tpu.memory_space<vmem>>, vector<1x1x96xf32>
    %16 = vector.shape_cast %15 : vector<1x1x96xf32> to vector<1x96xf32>
    %17 = vector.broadcast %16 : vector<1x96xf32> to vector<16x96xf32>
    %18 = arith.addf %14, %17 : vector<16x96xf32>
    %19 = vector.extract_strided_slice %18 {offsets = [0, 0], sizes = [16, 8], strides = [1, 1]} : vector<16x96xf32> to vector<16x8xf32>
    %20 = vector.shape_cast %19 : vector<16x8xf32> to vector<2x8x8xf32>
    %21 = arith.truncf %20 : vector<2x8x8xf32> to vector<2x8x8xbf16>
    %22 = vector.extract_strided_slice %18 {offsets = [0, 32], sizes = [16, 8], strides = [1, 1]} : vector<16x96xf32> to vector<16x8xf32>
    %23 = vector.shape_cast %22 : vector<16x8xf32> to vector<2x8x8xf32>
    %24 = arith.truncf %23 : vector<2x8x8xf32> to vector<2x8x8xbf16>
    %25 = vector.extract_strided_slice %18 {offsets = [0, 64], sizes = [16, 8], strides = [1, 1]} : vector<16x96xf32> to vector<16x8xf32>
    %26 = vector.shape_cast %25 : vector<16x8xf32> to vector<2x8x8xf32>
    %27 = arith.truncf %26 : vector<2x8x8xf32> to vector<2x8x8xbf16>
    "tpu.trace_start"() <{level = 10 : i32, message = "bqd,bkd->bqk"}> : () -> ()
    %cst_13 = arith.constant dense<0.000000e+00> : vector<2x8x8xf32>
    %28 = tpu.matmul %21, %24, %cst_13 {dimension_numbers = #tpu.dot_dimension_numbers<[2], [2], [1], [1], [0, 0, 0, 1, 1, 1], [0], [0]>} : vector<2x8x8xbf16>, vector<2x8x8xbf16>, vector<2x8x8xf32> -> vector<2x8x8xf32>
    "tpu.trace_stop"() : () -> ()
    %cst_14 = arith.constant 0.353553385 : f32
    %29 = vector.broadcast %cst_14 : f32 to vector<2x8x8xf32>
    %30 = arith.mulf %28, %29 : vector<2x8x8xf32>
    %31 = vector.broadcast %10 : vector<2x1x8xf32> to vector<2x8x8xf32>
    %32 = arith.addf %30, %31 : vector<2x8x8xf32>
    %cst_15 = arith.constant dense<0xFF800000> : vector<2x8xf32>
    %33 = vector.multi_reduction <maximumf>, %32, %cst_15 [2] : vector<2x8x8xf32> to vector<2x8xf32>
    %34 = vector.shape_cast %33 : vector<2x8xf32> to vector<2x8x1xf32>
    %35 = vector.broadcast %34 : vector<2x8x1xf32> to vector<2x8x8xf32>
    %36 = arith.subf %32, %35 : vector<2x8x8xf32>
    %37 = math.exp %36 : vector<2x8x8xf32>
    %cst_16 = arith.constant dense<0.000000e+00> : vector<2x8xf32>
    %38 = vector.multi_reduction <add>, %37, %cst_16 [2] : vector<2x8x8xf32> to vector<2x8xf32>
    %39 = vector.shape_cast %38 : vector<2x8xf32> to vector<2x8x1xf32>
    %40 = vector.broadcast %39 : vector<2x8x1xf32> to vector<2x8x8xf32>
    %41 = arith.divf %37, %40 : vector<2x8x8xf32>
    %42 = arith.truncf %41 : vector<2x8x8xf32> to vector<2x8x8xbf16>
    "tpu.trace_start"() <{level = 10 : i32, message = "bqk,bkd->bqd"}> : () -> ()
    %cst_17 = arith.constant dense<0.000000e+00> : vector<2x8x8xf32>
    %43 = tpu.matmul %42, %27, %cst_17 {dimension_numbers = #tpu.dot_dimension_numbers<[2], [1], [1], [2], [0, 0, 0, 1, 1, 2], [0], [0]>} : vector<2x8x8xbf16>, vector<2x8x8xbf16>, vector<2x8x8xf32> -> vector<2x8x8xf32>
    "tpu.trace_stop"() : () -> ()
    %44 = vector.shape_cast %43 : vector<2x8x8xf32> to vector<16x8xf32>
    %45 = vector.extract_strided_slice %18 {offsets = [0, 8], sizes = [16, 8], strides = [1, 1]} : vector<16x96xf32> to vector<16x8xf32>
    %46 = vector.shape_cast %45 : vector<16x8xf32> to vector<2x8x8xf32>
    %47 = arith.truncf %46 : vector<2x8x8xf32> to vector<2x8x8xbf16>
    %48 = vector.extract_strided_slice %18 {offsets = [0, 40], sizes = [16, 8], strides = [1, 1]} : vector<16x96xf32> to vector<16x8xf32>
    %49 = vector.shape_cast %48 : vector<16x8xf32> to vector<2x8x8xf32>
    %50 = arith.truncf %49 : vector<2x8x8xf32> to vector<2x8x8xbf16>
    %51 = vector.extract_strided_slice %18 {offsets = [0, 72], sizes = [16, 8], strides = [1, 1]} : vector<16x96xf32> to vector<16x8xf32>
    %52 = vector.shape_cast %51 : vector<16x8xf32> to vector<2x8x8xf32>
    %53 = arith.truncf %52 : vector<2x8x8xf32> to vector<2x8x8xbf16>
    "tpu.trace_start"() <{level = 10 : i32, message = "bqd,bkd->bqk"}> : () -> ()
    %cst_18 = arith.constant dense<0.000000e+00> : vector<2x8x8xf32>
    %54 = tpu.matmul %47, %50, %cst_18 {dimension_numbers = #tpu.dot_dimension_numbers<[2], [2], [1], [1], [0, 0, 0, 1, 1, 1], [0], [0]>} : vector<2x8x8xbf16>, vector<2x8x8xbf16>, vector<2x8x8xf32> -> vector<2x8x8xf32>
    "tpu.trace_stop"() : () -> ()
    %cst_19 = arith.constant 0.353553385 : f32
    %55 = vector.broadcast %cst_19 : f32 to vector<2x8x8xf32>
    %56 = arith.mulf %54, %55 : vector<2x8x8xf32>
    %57 = vector.broadcast %10 : vector<2x1x8xf32> to vector<2x8x8xf32>
    %58 = arith.addf %56, %57 : vector<2x8x8xf32>
    %cst_20 = arith.constant dense<0xFF800000> : vector<2x8xf32>
    %59 = vector.multi_reduction <maximumf>, %58, %cst_20 [2] : vector<2x8x8xf32> to vector<2x8xf32>
    %60 = vector.shape_cast %59 : vector<2x8xf32> to vector<2x8x1xf32>
    %61 = vector.broadcast %60 : vector<2x8x1xf32> to vector<2x8x8xf32>
    %62 = arith.subf %58, %61 : vector<2x8x8xf32>
    %63 = math.exp %62 : vector<2x8x8xf32>
    %cst_21 = arith.constant dense<0.000000e+00> : vector<2x8xf32>
    %64 = vector.multi_reduction <add>, %63, %cst_21 [2] : vector<2x8x8xf32> to vector<2x8xf32>
    %65 = vector.shape_cast %64 : vector<2x8xf32> to vector<2x8x1xf32>
    %66 = vector.broadcast %65 : vector<2x8x1xf32> to vector<2x8x8xf32>
    %67 = arith.divf %63, %66 : vector<2x8x8xf32>
    %68 = arith.truncf %67 : vector<2x8x8xf32> to vector<2x8x8xbf16>
    "tpu.trace_start"() <{level = 10 : i32, message = "bqk,bkd->bqd"}> : () -> ()
    %cst_22 = arith.constant dense<0.000000e+00> : vector<2x8x8xf32>
    %69 = tpu.matmul %68, %53, %cst_22 {dimension_numbers = #tpu.dot_dimension_numbers<[2], [1], [1], [2], [0, 0, 0, 1, 1, 2], [0], [0]>} : vector<2x8x8xbf16>, vector<2x8x8xbf16>, vector<2x8x8xf32> -> vector<2x8x8xf32>
    "tpu.trace_stop"() : () -> ()
    %70 = vector.shape_cast %69 : vector<2x8x8xf32> to vector<16x8xf32>
    %71 = vector.extract_strided_slice %18 {offsets = [0, 16], sizes = [16, 8], strides = [1, 1]} : vector<16x96xf32> to vector<16x8xf32>
    %72 = vector.shape_cast %71 : vector<16x8xf32> to vector<2x8x8xf32>
    %73 = arith.truncf %72 : vector<2x8x8xf32> to vector<2x8x8xbf16>
    %74 = vector.extract_strided_slice %18 {offsets = [0, 48], sizes = [16, 8], strides = [1, 1]} : vector<16x96xf32> to vector<16x8xf32>
    %75 = vector.shape_cast %74 : vector<16x8xf32> to vector<2x8x8xf32>
    %76 = arith.truncf %75 : vector<2x8x8xf32> to vector<2x8x8xbf16>
    %77 = vector.extract_strided_slice %18 {offsets = [0, 80], sizes = [16, 8], strides = [1, 1]} : vector<16x96xf32> to vector<16x8xf32>
    %78 = vector.shape_cast %77 : vector<16x8xf32> to vector<2x8x8xf32>
    %79 = arith.truncf %78 : vector<2x8x8xf32> to vector<2x8x8xbf16>
    "tpu.trace_start"() <{level = 10 : i32, message = "bqd,bkd->bqk"}> : () -> ()
    %cst_23 = arith.constant dense<0.000000e+00> : vector<2x8x8xf32>
    %80 = tpu.matmul %73, %76, %cst_23 {dimension_numbers = #tpu.dot_dimension_numbers<[2], [2], [1], [1], [0, 0, 0, 1, 1, 1], [0], [0]>} : vector<2x8x8xbf16>, vector<2x8x8xbf16>, vector<2x8x8xf32> -> vector<2x8x8xf32>
    "tpu.trace_stop"() : () -> ()
    %cst_24 = arith.constant 0.353553385 : f32
    %81 = vector.broadcast %cst_24 : f32 to vector<2x8x8xf32>
    %82 = arith.mulf %80, %81 : vector<2x8x8xf32>
    %83 = vector.broadcast %10 : vector<2x1x8xf32> to vector<2x8x8xf32>
    %84 = arith.addf %82, %83 : vector<2x8x8xf32>
    %cst_25 = arith.constant dense<0xFF800000> : vector<2x8xf32>
    %85 = vector.multi_reduction <maximumf>, %84, %cst_25 [2] : vector<2x8x8xf32> to vector<2x8xf32>
    %86 = vector.shape_cast %85 : vector<2x8xf32> to vector<2x8x1xf32>
    %87 = vector.broadcast %86 : vector<2x8x1xf32> to vector<2x8x8xf32>
    %88 = arith.subf %84, %87 : vector<2x8x8xf32>
    %89 = math.exp %88 : vector<2x8x8xf32>
    %cst_26 = arith.constant dense<0.000000e+00> : vector<2x8xf32>
    %90 = vector.multi_reduction <add>, %89, %cst_26 [2] : vector<2x8x8xf32> to vector<2x8xf32>
    %91 = vector.shape_cast %90 : vector<2x8xf32> to vector<2x8x1xf32>
    %92 = vector.broadcast %91 : vector<2x8x1xf32> to vector<2x8x8xf32>
    %93 = arith.divf %89, %92 : vector<2x8x8xf32>
    %94 = arith.truncf %93 : vector<2x8x8xf32> to vector<2x8x8xbf16>
    "tpu.trace_start"() <{level = 10 : i32, message = "bqk,bkd->bqd"}> : () -> ()
    %cst_27 = arith.constant dense<0.000000e+00> : vector<2x8x8xf32>
    %95 = tpu.matmul %94, %79, %cst_27 {dimension_numbers = #tpu.dot_dimension_numbers<[2], [1], [1], [2], [0, 0, 0, 1, 1, 2], [0], [0]>} : vector<2x8x8xbf16>, vector<2x8x8xbf16>, vector<2x8x8xf32> -> vector<2x8x8xf32>
    "tpu.trace_stop"() : () -> ()
    %96 = vector.shape_cast %95 : vector<2x8x8xf32> to vector<16x8xf32>
    %97 = vector.extract_strided_slice %18 {offsets = [0, 24], sizes = [16, 8], strides = [1, 1]} : vector<16x96xf32> to vector<16x8xf32>
    %98 = vector.shape_cast %97 : vector<16x8xf32> to vector<2x8x8xf32>
    %99 = arith.truncf %98 : vector<2x8x8xf32> to vector<2x8x8xbf16>
    %100 = vector.extract_strided_slice %18 {offsets = [0, 56], sizes = [16, 8], strides = [1, 1]} : vector<16x96xf32> to vector<16x8xf32>
    %101 = vector.shape_cast %100 : vector<16x8xf32> to vector<2x8x8xf32>
    %102 = arith.truncf %101 : vector<2x8x8xf32> to vector<2x8x8xbf16>
    %103 = vector.extract_strided_slice %18 {offsets = [0, 88], sizes = [16, 8], strides = [1, 1]} : vector<16x96xf32> to vector<16x8xf32>
    %104 = vector.shape_cast %103 : vector<16x8xf32> to vector<2x8x8xf32>
    %105 = arith.truncf %104 : vector<2x8x8xf32> to vector<2x8x8xbf16>
    "tpu.trace_start"() <{level = 10 : i32, message = "bqd,bkd->bqk"}> : () -> ()
    %cst_28 = arith.constant dense<0.000000e+00> : vector<2x8x8xf32>
    %106 = tpu.matmul %99, %102, %cst_28 {dimension_numbers = #tpu.dot_dimension_numbers<[2], [2], [1], [1], [0, 0, 0, 1, 1, 1], [0], [0]>} : vector<2x8x8xbf16>, vector<2x8x8xbf16>, vector<2x8x8xf32> -> vector<2x8x8xf32>
    "tpu.trace_stop"() : () -> ()
    %cst_29 = arith.constant 0.353553385 : f32
    %107 = vector.broadcast %cst_29 : f32 to vector<2x8x8xf32>
    %108 = arith.mulf %106, %107 : vector<2x8x8xf32>
    %109 = vector.broadcast %10 : vector<2x1x8xf32> to vector<2x8x8xf32>
    %110 = arith.addf %108, %109 : vector<2x8x8xf32>
    %cst_30 = arith.constant dense<0xFF800000> : vector<2x8xf32>
    %111 = vector.multi_reduction <maximumf>, %110, %cst_30 [2] : vector<2x8x8xf32> to vector<2x8xf32>
    %112 = vector.shape_cast %111 : vector<2x8xf32> to vector<2x8x1xf32>
    %113 = vector.broadcast %112 : vector<2x8x1xf32> to vector<2x8x8xf32>
    %114 = arith.subf %110, %113 : vector<2x8x8xf32>
    %115 = math.exp %114 : vector<2x8x8xf32>
    %cst_31 = arith.constant dense<0.000000e+00> : vector<2x8xf32>
    %116 = vector.multi_reduction <add>, %115, %cst_31 [2] : vector<2x8x8xf32> to vector<2x8xf32>
    %117 = vector.shape_cast %116 : vector<2x8xf32> to vector<2x8x1xf32>
    %118 = vector.broadcast %117 : vector<2x8x1xf32> to vector<2x8x8xf32>
    %119 = arith.divf %115, %118 : vector<2x8x8xf32>
    %120 = arith.truncf %119 : vector<2x8x8xf32> to vector<2x8x8xbf16>
    "tpu.trace_start"() <{level = 10 : i32, message = "bqk,bkd->bqd"}> : () -> ()
    %cst_32 = arith.constant dense<0.000000e+00> : vector<2x8x8xf32>
    %121 = tpu.matmul %120, %105, %cst_32 {dimension_numbers = #tpu.dot_dimension_numbers<[2], [1], [1], [2], [0, 0, 0, 1, 1, 2], [0], [0]>} : vector<2x8x8xbf16>, vector<2x8x8xbf16>, vector<2x8x8xf32> -> vector<2x8x8xf32>
    "tpu.trace_stop"() : () -> ()
    %122 = vector.shape_cast %121 : vector<2x8x8xf32> to vector<16x8xf32>
    %123 = tpu.concatenate %44, %70, %96, %122 in 1 : vector<16x8xf32>, vector<16x8xf32>, vector<16x8xf32>, vector<16x8xf32> -> vector<16x32xf32>
    %124 = arith.truncf %123 : vector<16x32xf32> to vector<16x32xbf16>
    %c0_33 = arith.constant 0 : index
    %c0_34 = arith.constant 0 : index
    %c0_35 = arith.constant 0 : index
    %125 = vector.load %arg5[%c0_33, %c0_34, %c0_35] : memref<1x32x32xbf16, #tpu.memory_space<vmem>>, vector<1x32x32xbf16>
    %126 = vector.shape_cast %125 : vector<1x32x32xbf16> to vector<32x32xbf16>
    %cst_36 = arith.constant dense<0.000000e+00> : vector<16x32xf32>
    %127 = tpu.matmul %124, %126, %cst_36 {dimension_numbers = #tpu.dot_dimension_numbers<[1], [0], [0], [1], [0, 0, 1, 1], [], []>} : vector<16x32xbf16>, vector<32x32xbf16>, vector<16x32xf32> -> vector<16x32xf32>
    %c0_37 = arith.constant 0 : index
    %c0_38 = arith.constant 0 : index
    %c0_39 = arith.constant 0 : index
    %128 = vector.load %arg6[%c0_37, %c0_38, %c0_39] : memref<1x1x32xf32, #tpu.memory_space<vmem>>, vector<1x1x32xf32>
    %129 = vector.shape_cast %128 : vector<1x1x32xf32> to vector<1x32xf32>
    %130 = vector.broadcast %129 : vector<1x32xf32> to vector<16x32xf32>
    %131 = arith.addf %127, %130 : vector<16x32xf32>
    %132 = arith.addf %3, %131 : vector<16x32xf32>
    %c0_40 = arith.constant 0 : index
    %c0_41 = arith.constant 0 : index
    %c0_42 = arith.constant 0 : index
    %133 = vector.load %arg11[%c0_40, %c0_41, %c0_42] : memref<1x1x32xf32, #tpu.memory_space<vmem>>, vector<1x1x32xf32>
    %134 = vector.shape_cast %133 : vector<1x1x32xf32> to vector<1x32xf32>
    %c0_43 = arith.constant 0 : index
    %c0_44 = arith.constant 0 : index
    %c0_45 = arith.constant 0 : index
    %135 = vector.load %arg12[%c0_43, %c0_44, %c0_45] : memref<1x1x32xf32, #tpu.memory_space<vmem>>, vector<1x1x32xf32>
    %136 = vector.shape_cast %135 : vector<1x1x32xf32> to vector<1x32xf32>
    %cst_46 = arith.constant dense<0.000000e+00> : vector<16xf32>
    %137 = vector.multi_reduction <add>, %132, %cst_46 [1] : vector<16x32xf32> to vector<16xf32>
    %138 = vector.shape_cast %137 : vector<16xf32> to vector<16x1xf32>
    %cst_47 = arith.constant 3.200000e+01 : f32
    %139 = vector.broadcast %cst_47 : f32 to vector<16x1xf32>
    %140 = arith.divf %138, %139 : vector<16x1xf32>
    %141 = vector.broadcast %140 : vector<16x1xf32> to vector<16x32xf32>
    %142 = arith.subf %132, %141 : vector<16x32xf32>
    %143 = arith.mulf %142, %142 : vector<16x32xf32>
    %cst_48 = arith.constant dense<0.000000e+00> : vector<16xf32>
    %144 = vector.multi_reduction <add>, %143, %cst_48 [1] : vector<16x32xf32> to vector<16xf32>
    %145 = vector.shape_cast %144 : vector<16xf32> to vector<16x1xf32>
    %cst_49 = arith.constant 3.200000e+01 : f32
    %146 = vector.broadcast %cst_49 : f32 to vector<16x1xf32>
    %147 = arith.divf %145, %146 : vector<16x1xf32>
    %148 = vector.broadcast %140 : vector<16x1xf32> to vector<16x32xf32>
    %149 = arith.subf %132, %148 : vector<16x32xf32>
    %cst_50 = arith.constant 9.99999974E-6 : f32
    %150 = vector.broadcast %cst_50 : f32 to vector<16x1xf32>
    %151 = arith.addf %147, %150 : vector<16x1xf32>
    %152 = math.rsqrt %151 : vector<16x1xf32>
    %153 = vector.broadcast %152 : vector<16x1xf32> to vector<16x32xf32>
    %154 = arith.mulf %149, %153 : vector<16x32xf32>
    %155 = vector.broadcast %134 : vector<1x32xf32> to vector<16x32xf32>
    %156 = arith.mulf %154, %155 : vector<16x32xf32>
    %157 = vector.broadcast %136 : vector<1x32xf32> to vector<16x32xf32>
    %158 = arith.addf %156, %157 : vector<16x32xf32>
    %159 = arith.truncf %158 : vector<16x32xf32> to vector<16x32xbf16>
    %c0_51 = arith.constant 0 : index
    %c0_52 = arith.constant 0 : index
    %c0_53 = arith.constant 0 : index
    %160 = vector.load %arg7[%c0_51, %c0_52, %c0_53] : memref<1x32x64xbf16, #tpu.memory_space<vmem>>, vector<1x32x64xbf16>
    %161 = vector.shape_cast %160 : vector<1x32x64xbf16> to vector<32x64xbf16>
    %cst_54 = arith.constant dense<0.000000e+00> : vector<16x64xf32>
    %162 = tpu.matmul %159, %161, %cst_54 {dimension_numbers = #tpu.dot_dimension_numbers<[1], [0], [0], [1], [0, 0, 1, 1], [], []>} : vector<16x32xbf16>, vector<32x64xbf16>, vector<16x64xf32> -> vector<16x64xf32>
    %c0_55 = arith.constant 0 : index
    %c0_56 = arith.constant 0 : index
    %c0_57 = arith.constant 0 : index
    %163 = vector.load %arg8[%c0_55, %c0_56, %c0_57] : memref<1x1x64xf32, #tpu.memory_space<vmem>>, vector<1x1x64xf32>
    %164 = vector.shape_cast %163 : vector<1x1x64xf32> to vector<1x64xf32>
    %165 = vector.broadcast %164 : vector<1x64xf32> to vector<16x64xf32>
    %166 = arith.addf %162, %165 : vector<16x64xf32>
    %cst_58 = arith.constant 0.000000e+00 : f32
    %167 = vector.broadcast %cst_58 : f32 to vector<16x64xf32>
    %168 = arith.maximumf %166, %167 : vector<16x64xf32>
    %169 = arith.truncf %168 : vector<16x64xf32> to vector<16x64xbf16>
    %c0_59 = arith.constant 0 : index
    %c0_60 = arith.constant 0 : index
    %c0_61 = arith.constant 0 : index
    %170 = vector.load %arg9[%c0_59, %c0_60, %c0_61] : memref<1x64x32xbf16, #tpu.memory_space<vmem>>, vector<1x64x32xbf16>
    %171 = vector.shape_cast %170 : vector<1x64x32xbf16> to vector<64x32xbf16>
    %cst_62 = arith.constant dense<0.000000e+00> : vector<16x32xf32>
    %172 = tpu.matmul %169, %171, %cst_62 {dimension_numbers = #tpu.dot_dimension_numbers<[1], [0], [0], [1], [0, 0, 1, 1], [], []>} : vector<16x64xbf16>, vector<64x32xbf16>, vector<16x32xf32> -> vector<16x32xf32>
    %c0_63 = arith.constant 0 : index
    %c0_64 = arith.constant 0 : index
    %c0_65 = arith.constant 0 : index
    %173 = vector.load %arg10[%c0_63, %c0_64, %c0_65] : memref<1x1x32xf32, #tpu.memory_space<vmem>>, vector<1x1x32xf32>
    %174 = vector.shape_cast %173 : vector<1x1x32xf32> to vector<1x32xf32>
    %175 = vector.broadcast %174 : vector<1x32xf32> to vector<16x32xf32>
    %176 = arith.addf %172, %175 : vector<16x32xf32>
    %177 = arith.addf %158, %176 : vector<16x32xf32>
    %c0_66 = arith.constant 0 : index
    %c0_67 = arith.constant 0 : index
    %c0_68 = arith.constant 0 : index
    %178 = vector.load %arg13[%c0_66, %c0_67, %c0_68] : memref<1x1x32xf32, #tpu.memory_space<vmem>>, vector<1x1x32xf32>
    %179 = vector.shape_cast %178 : vector<1x1x32xf32> to vector<1x32xf32>
    %c0_69 = arith.constant 0 : index
    %c0_70 = arith.constant 0 : index
    %c0_71 = arith.constant 0 : index
    %180 = vector.load %arg14[%c0_69, %c0_70, %c0_71] : memref<1x1x32xf32, #tpu.memory_space<vmem>>, vector<1x1x32xf32>
    %181 = vector.shape_cast %180 : vector<1x1x32xf32> to vector<1x32xf32>
    %cst_72 = arith.constant dense<0.000000e+00> : vector<16xf32>
    %182 = vector.multi_reduction <add>, %177, %cst_72 [1] : vector<16x32xf32> to vector<16xf32>
    %183 = vector.shape_cast %182 : vector<16xf32> to vector<16x1xf32>
    %cst_73 = arith.constant 3.200000e+01 : f32
    %184 = vector.broadcast %cst_73 : f32 to vector<16x1xf32>
    %185 = arith.divf %183, %184 : vector<16x1xf32>
    %186 = vector.broadcast %185 : vector<16x1xf32> to vector<16x32xf32>
    %187 = arith.subf %177, %186 : vector<16x32xf32>
    %188 = arith.mulf %187, %187 : vector<16x32xf32>
    %cst_74 = arith.constant dense<0.000000e+00> : vector<16xf32>
    %189 = vector.multi_reduction <add>, %188, %cst_74 [1] : vector<16x32xf32> to vector<16xf32>
    %190 = vector.shape_cast %189 : vector<16xf32> to vector<16x1xf32>
    %cst_75 = arith.constant 3.200000e+01 : f32
    %191 = vector.broadcast %cst_75 : f32 to vector<16x1xf32>
    %192 = arith.divf %190, %191 : vector<16x1xf32>
    %193 = vector.broadcast %185 : vector<16x1xf32> to vector<16x32xf32>
    %194 = arith.subf %177, %193 : vector<16x32xf32>
    %cst_76 = arith.constant 9.99999974E-6 : f32
    %195 = vector.broadcast %cst_76 : f32 to vector<16x1xf32>
    %196 = arith.addf %192, %195 : vector<16x1xf32>
    %197 = math.rsqrt %196 : vector<16x1xf32>
    %198 = vector.broadcast %197 : vector<16x1xf32> to vector<16x32xf32>
    %199 = arith.mulf %194, %198 : vector<16x32xf32>
    %200 = vector.broadcast %179 : vector<1x32xf32> to vector<16x32xf32>
    %201 = arith.mulf %199, %200 : vector<16x32xf32>
    %202 = vector.broadcast %181 : vector<1x32xf32> to vector<16x32xf32>
    %203 = arith.addf %201, %202 : vector<16x32xf32>
    %c0_77 = arith.constant 0 : index
    %c0_78 = arith.constant 0 : index
    %204 = vector.load %arg16[%c0_77, %c0_78] : memref<16x32xf32, #tpu.memory_space<vmem>>, vector<16x32xf32>
    tpu.vector_store %arg16[%c0_77, %c0_78], %203 {strides = array<i32>} : memref<16x32xf32, #tpu.memory_space<vmem>>, vector<16x32xf32>,
    %c1_i32 = arith.constant 1 : i32
    %205 = arith.cmpi eq, %arg0, %c1_i32 : i32
    %206 = arith.extui %205 : i1 to i32
    %c0_i32_79 = arith.constant 0 : i32
    %207 = arith.cmpi ne, %206, %c0_i32_79 : i32
    scf.if %207 {
      %c0_80 = arith.constant 0 : index
      %c0_81 = arith.constant 0 : index
      %208 = vector.load %arg15[%c0_80, %c0_81] : memref<16x32xf32, #tpu.memory_space<vmem>>, vector<16x32xf32>
      tpu.vector_store %arg15[%c0_80, %c0_81], %203 {strides = array<i32>} : memref<16x32xf32, #tpu.memory_space<vmem>>, vector<16x32xf32>,
    } else {
    }
    return
  }
  func.func @transform_0(%arg0: i32) -> (i32, i32) {
    %c0_i32 = arith.constant 0 : i32
    %c0_i32_0 = arith.constant 0 : i32
    %c0_i32_1 = arith.constant 0 : i32
    return %c0_i32, %c0_i32_0 : i32, i32
  }
  func.func @transform_1(%arg0: i32) -> (i32, i32) {
    %c0_i32 = arith.constant 0 : i32
    %c0_i32_0 = arith.constant 0 : i32
    %c0_i32_1 = arith.constant 0 : i32
    return %c0_i32, %c0_i32_0 : i32, i32
  }
  func.func @transform_2(%arg0: i32) -> (i32, i32, i32) {
    %c0_i32 = arith.constant 0 : i32
    %c0_i32_0 = arith.constant 0 : i32
    %c0_i32_1 = arith.constant 0 : i32
    return %arg0, %c0_i32, %c0_i32_0 : i32, i32, i32
  }
  func.func @transform_3(%arg0: i32) -> (i32, i32, i32) {
    %c0_i32 = arith.constant 0 : i32
    %c0_i32_0 = arith.constant 0 : i32
    %c0_i32_1 = arith.constant 0 : i32
    return %arg0, %c0_i32, %c0_i32_0 : i32, i32, i32
  }
  func.func @transform_4(%arg0: i32) -> (i32, i32, i32) {
    %c0_i32 = arith.constant 0 : i32
    %c0_i32_0 = arith.constant 0 : i32
    %c0_i32_1 = arith.constant 0 : i32
    return %arg0, %c0_i32, %c0_i32_0 : i32, i32, i32
  }
  func.func @transform_5(%arg0: i32) -> (i32, i32, i32) {
    %c0_i32 = arith.constant 0 : i32
    %c0_i32_0 = arith.constant 0 : i32
    %c0_i32_1 = arith.constant 0 : i32
    return %arg0, %c0_i32, %c0_i32_0 : i32, i32, i32
  }
  func.func @transform_6(%arg0: i32) -> (i32, i32, i32) {
    %c0_i32 = arith.constant 0 : i32
    %c0_i32_0 = arith.constant 0 : i32
    %c0_i32_1 = arith.constant 0 : i32
    return %arg0, %c0_i32, %c0_i32_0 : i32, i32, i32
  }
  func.func @transform_7(%arg0: i32) -> (i32, i32, i32) {
    %c0_i32 = arith.constant 0 : i32
    %c0_i32_0 = arith.constant 0 : i32
    %c0_i32_1 = arith.constant 0 : i32
    return %arg0, %c0_i32, %c0_i32_0 : i32, i32, i32
  }
  func.func @transform_8(%arg0: i32) -> (i32, i32, i32) {
    %c0_i32 = arith.constant 0 : i32
    %c0_i32_0 = arith.constant 0 : i32
    %c0_i32_1 = arith.constant 0 : i32
    return %arg0, %c0_i32, %c0_i32_0 : i32, i32, i32
  }
  func.func @transform_9(%arg0: i32) -> (i32, i32, i32) {
    %c0_i32 = arith.constant 0 : i32
    %c0_i32_0 = arith.constant 0 : i32
    %c0_i32_1 = arith.constant 0 : i32
    return %arg0, %c0_i32, %c0_i32_0 : i32, i32, i32
  }
  func.func @transform_10(%arg0: i32) -> (i32, i32, i32) {
    %c0_i32 = arith.constant 0 : i32
    %c0_i32_0 = arith.constant 0 : i32
    %c0_i32_1 = arith.constant 0 : i32
    return %arg0, %c0_i32, %c0_i32_0 : i32, i32, i32
  }
  func.func @transform_11(%arg0: i32) -> (i32, i32, i32) {
    %c0_i32 = arith.constant 0 : i32
    %c0_i32_0 = arith.constant 0 : i32
    %c0_i32_1 = arith.constant 0 : i32
    return %arg0, %c0_i32, %c0_i32_0 : i32, i32, i32
  }
  func.func @transform_12(%arg0: i32) -> (i32, i32, i32) {
    %c0_i32 = arith.constant 0 : i32
    %c0_i32_0 = arith.constant 0 : i32
    %c0_i32_1 = arith.constant 0 : i32
    return %arg0, %c0_i32, %c0_i32_0 : i32, i32, i32
  }
  func.func @transform_13(%arg0: i32) -> (i32, i32, i32) {
    %c0_i32 = arith.constant 0 : i32
    %c0_i32_0 = arith.constant 0 : i32
    %c0_i32_1 = arith.constant 0 : i32
    return %arg0, %c0_i32, %c0_i32_0 : i32, i32, i32
  }
  func.func @transform_14(%arg0: i32) -> (i32, i32) {
    %c0_i32 = arith.constant 0 : i32
    %c0_i32_0 = arith.constant 0 : i32
    %c0_i32_1 = arith.constant 0 : i32
    return %c0_i32, %c0_i32_0 : i32, i32
  }
}

module attributes {stable_mosaic.version = 11 : i64} {
  func.func @_encode_head_kernel(%arg0: memref<16x32xf32, #tpu.memory_space<vmem>>, %arg1: memref<2x16xf32, #tpu.memory_space<vmem>>, %arg2: memref<32x32xbf16, #tpu.memory_space<vmem>>, %arg3: memref<1x32xf32, #tpu.memory_space<vmem>>, %arg4: memref<16x32xbf16, #tpu.memory_space<vmem>>, %arg5: memref<1x32xf32, #tpu.memory_space<vmem>>, %arg6: memref<2x16xf32, #tpu.memory_space<vmem>>, %arg7: memref<2x16xf32, #tpu.memory_space<vmem>>, %arg8: memref<2x32xf32, #tpu.memory_space<vmem>>) attributes {dimension_semantics = [], scalar_prefetch = 0 : i64, scratch_operands = 0 : i64, tpu.core_type = #tpu.core_type<tc>} {
    %c0 = arith.constant 0 : index
    %c0_0 = arith.constant 0 : index
    %0 = vector.load %arg0[%c0, %c0_0] : memref<16x32xf32, #tpu.memory_space<vmem>>, vector<16x32xf32>
    %1 = vector.shape_cast %0 : vector<16x32xf32> to vector<2x8x32xf32>
    %cst = arith.constant dense<0.000000e+00> : vector<2x32xf32>
    %2 = vector.multi_reduction <add>, %1, %cst [1] : vector<2x8x32xf32> to vector<2x32xf32>
    %cst_1 = arith.constant 8.000000e+00 : f32
    %3 = vector.broadcast %cst_1 : f32 to vector<2x32xf32>
    %4 = arith.divf %2, %3 : vector<2x32xf32>
    %5 = arith.truncf %4 : vector<2x32xf32> to vector<2x32xbf16>
    %c0_2 = arith.constant 0 : index
    %c0_3 = arith.constant 0 : index
    %6 = vector.load %arg2[%c0_2, %c0_3] : memref<32x32xbf16, #tpu.memory_space<vmem>>, vector<32x32xbf16>
    %cst_4 = arith.constant dense<0.000000e+00> : vector<2x32xf32>
    %7 = tpu.matmul %5, %6, %cst_4 {dimension_numbers = #tpu.dot_dimension_numbers<[1], [0], [0], [1], [0, 0, 1, 1], [], []>} : vector<2x32xbf16>, vector<32x32xbf16>, vector<2x32xf32> -> vector<2x32xf32>
    %c0_5 = arith.constant 0 : index
    %c0_6 = arith.constant 0 : index
    %8 = vector.load %arg3[%c0_5, %c0_6] : memref<1x32xf32, #tpu.memory_space<vmem>>, vector<1x32xf32>
    %9 = vector.broadcast %8 : vector<1x32xf32> to vector<2x32xf32>
    %10 = arith.addf %7, %9 : vector<2x32xf32>
    %11 = vector.extract_strided_slice %10 {offsets = [0, 0], sizes = [2, 16], strides = [1, 1]} : vector<2x32xf32> to vector<2x16xf32>
    %12 = vector.extract_strided_slice %10 {offsets = [0, 16], sizes = [2, 16], strides = [1, 1]} : vector<2x32xf32> to vector<2x16xf32>
    %cst_7 = arith.constant 5.000000e-01 : f32
    %13 = vector.broadcast %cst_7 : f32 to vector<2x16xf32>
    %14 = arith.mulf %13, %12 : vector<2x16xf32>
    %15 = math.exp %14 : vector<2x16xf32>
    %c0_8 = arith.constant 0 : index
    %c0_9 = arith.constant 0 : index
    %16 = vector.load %arg1[%c0_8, %c0_9] : memref<2x16xf32, #tpu.memory_space<vmem>>, vector<2x16xf32>
    %17 = arith.mulf %16, %15 : vector<2x16xf32>
    %18 = arith.addf %11, %17 : vector<2x16xf32>
    %19 = arith.truncf %18 : vector<2x16xf32> to vector<2x16xbf16>
    %c0_10 = arith.constant 0 : index
    %c0_11 = arith.constant 0 : index
    %20 = vector.load %arg4[%c0_10, %c0_11] : memref<16x32xbf16, #tpu.memory_space<vmem>>, vector<16x32xbf16>
    %cst_12 = arith.constant dense<0.000000e+00> : vector<2x32xf32>
    %21 = tpu.matmul %19, %20, %cst_12 {dimension_numbers = #tpu.dot_dimension_numbers<[1], [0], [0], [1], [0, 0, 1, 1], [], []>} : vector<2x16xbf16>, vector<16x32xbf16>, vector<2x32xf32> -> vector<2x32xf32>
    %c0_13 = arith.constant 0 : index
    %c0_14 = arith.constant 0 : index
    %22 = vector.load %arg5[%c0_13, %c0_14] : memref<1x32xf32, #tpu.memory_space<vmem>>, vector<1x32xf32>
    %23 = vector.broadcast %22 : vector<1x32xf32> to vector<2x32xf32>
    %24 = arith.addf %21, %23 : vector<2x32xf32>
    %c0_15 = arith.constant 0 : index
    %c0_16 = arith.constant 0 : index
    %25 = vector.load %arg6[%c0_15, %c0_16] : memref<2x16xf32, #tpu.memory_space<vmem>>, vector<2x16xf32>
    tpu.vector_store %arg6[%c0_15, %c0_16], %11 {strides = array<i32>} : memref<2x16xf32, #tpu.memory_space<vmem>>, vector<2x16xf32>,
    %c0_17 = arith.constant 0 : index
    %c0_18 = arith.constant 0 : index
    %26 = vector.load %arg7[%c0_17, %c0_18] : memref<2x16xf32, #tpu.memory_space<vmem>>, vector<2x16xf32>
    tpu.vector_store %arg7[%c0_17, %c0_18], %12 {strides = array<i32>} : memref<2x16xf32, #tpu.memory_space<vmem>>, vector<2x16xf32>,
    %c0_19 = arith.constant 0 : index
    %c0_20 = arith.constant 0 : index
    %27 = vector.load %arg8[%c0_19, %c0_20] : memref<2x32xf32, #tpu.memory_space<vmem>>, vector<2x32xf32>
    tpu.vector_store %arg8[%c0_19, %c0_20], %24 {strides = array<i32>} : memref<2x32xf32, #tpu.memory_space<vmem>>, vector<2x32xf32>,
    return
  }
}

module attributes {stable_mosaic.version = 11 : i64} {
  func.func @_output_proj_kernel(%arg0: memref<16x32xf32, #tpu.memory_space<vmem>>, %arg1: memref<32x64xbf16, #tpu.memory_space<vmem>>, %arg2: memref<1x64xf32, #tpu.memory_space<vmem>>, %arg3: memref<16x64xf32, #tpu.memory_space<vmem>>) attributes {dimension_semantics = [], scalar_prefetch = 0 : i64, scratch_operands = 0 : i64, tpu.core_type = #tpu.core_type<tc>} {
    %c0 = arith.constant 0 : index
    %c0_0 = arith.constant 0 : index
    %0 = vector.load %arg0[%c0, %c0_0] : memref<16x32xf32, #tpu.memory_space<vmem>>, vector<16x32xf32>
    %1 = arith.truncf %0 : vector<16x32xf32> to vector<16x32xbf16>
    %c0_1 = arith.constant 0 : index
    %c0_2 = arith.constant 0 : index
    %2 = vector.load %arg1[%c0_1, %c0_2] : memref<32x64xbf16, #tpu.memory_space<vmem>>, vector<32x64xbf16>
    %cst = arith.constant dense<0.000000e+00> : vector<16x64xf32>
    %3 = tpu.matmul %1, %2, %cst {dimension_numbers = #tpu.dot_dimension_numbers<[1], [0], [0], [1], [0, 0, 1, 1], [], []>} : vector<16x32xbf16>, vector<32x64xbf16>, vector<16x64xf32> -> vector<16x64xf32>
    %c0_3 = arith.constant 0 : index
    %c0_4 = arith.constant 0 : index
    %4 = vector.load %arg2[%c0_3, %c0_4] : memref<1x64xf32, #tpu.memory_space<vmem>>, vector<1x64xf32>
    %5 = vector.broadcast %4 : vector<1x64xf32> to vector<16x64xf32>
    %6 = arith.addf %3, %5 : vector<16x64xf32>
    %c0_5 = arith.constant 0 : index
    %c0_6 = arith.constant 0 : index
    %7 = vector.load %arg3[%c0_5, %c0_6] : memref<16x64xf32, #tpu.memory_space<vmem>>, vector<16x64xf32>
    tpu.vector_store %arg3[%c0_5, %c0_6], %6 {strides = array<i32>} : memref<16x64xf32, #tpu.memory_space<vmem>>, vector<16x64xf32>,
    return
  }
}

module attributes {stable_mosaic.version = 11 : i64} {
  func.func @_decoder_layer_kernel(%arg0: i32, %arg1: memref<16x32xf32, #tpu.memory_space<vmem>>, %arg2: memref<2x32xf32, #tpu.memory_space<vmem>>, %arg3: memref<2x8xf32, #tpu.memory_space<vmem>>, %arg4: memref<1x32x96xbf16, #tpu.memory_space<vmem>>, %arg5: memref<1x1x96xf32, #tpu.memory_space<vmem>>, %arg6: memref<1x32x32xbf16, #tpu.memory_space<vmem>>, %arg7: memref<1x1x32xf32, #tpu.memory_space<vmem>>, %arg8: memref<1x32x32xbf16, #tpu.memory_space<vmem>>, %arg9: memref<1x1x32xf32, #tpu.memory_space<vmem>>, %arg10: memref<1x32x32xbf16, #tpu.memory_space<vmem>>, %arg11: memref<1x1x32xf32, #tpu.memory_space<vmem>>, %arg12: memref<1x32x64xbf16, #tpu.memory_space<vmem>>, %arg13: memref<1x1x64xf32, #tpu.memory_space<vmem>>, %arg14: memref<1x64x32xbf16, #tpu.memory_space<vmem>>, %arg15: memref<1x1x32xf32, #tpu.memory_space<vmem>>, %arg16: memref<1x1x32xf32, #tpu.memory_space<vmem>>, %arg17: memref<1x1x32xf32, #tpu.memory_space<vmem>>, %arg18: memref<1x1x32xf32, #tpu.memory_space<vmem>>, %arg19: memref<1x1x32xf32, #tpu.memory_space<vmem>>, %arg20: memref<1x1x32xf32, #tpu.memory_space<vmem>>, %arg21: memref<1x1x32xf32, #tpu.memory_space<vmem>>, %arg22: memref<16x32xf32, #tpu.memory_space<vmem>>, %arg23: memref<16x32xf32, #tpu.memory_space<vmem>>) attributes {dimension_semantics = [#tpu.dimension_semantics<arbitrary>], iteration_bounds = array<i64: 2>, scalar_prefetch = 0 : i64, scratch_operands = 1 : i64, tpu.core_type = #tpu.core_type<tc>, window_params = [{pipeline_mode = #tpu.pipeline_mode<synchronous>, transform_indices = @transform_0, window_bounds = array<i64: 16, 32>}, {pipeline_mode = #tpu.pipeline_mode<synchronous>, transform_indices = @transform_1, window_bounds = array<i64: 2, 32>}, {pipeline_mode = #tpu.pipeline_mode<synchronous>, transform_indices = @transform_2, window_bounds = array<i64: 2, 8>}, {transform_indices = @transform_3, window_bounds = array<i64: 1, 32, 96>}, {transform_indices = @transform_4, window_bounds = array<i64: 1, 1, 96>}, {transform_indices = @transform_5, window_bounds = array<i64: 1, 32, 32>}, {transform_indices = @transform_6, window_bounds = array<i64: 1, 1, 32>}, {transform_indices = @transform_7, window_bounds = array<i64: 1, 32, 32>}, {transform_indices = @transform_8, window_bounds = array<i64: 1, 1, 32>}, {transform_indices = @transform_9, window_bounds = array<i64: 1, 32, 32>}, {transform_indices = @transform_10, window_bounds = array<i64: 1, 1, 32>}, {transform_indices = @transform_11, window_bounds = array<i64: 1, 32, 64>}, {transform_indices = @transform_12, window_bounds = array<i64: 1, 1, 64>}, {transform_indices = @transform_13, window_bounds = array<i64: 1, 64, 32>}, {transform_indices = @transform_14, window_bounds = array<i64: 1, 1, 32>}, {transform_indices = @transform_15, window_bounds = array<i64: 1, 1, 32>}, {transform_indices = @transform_16, window_bounds = array<i64: 1, 1, 32>}, {transform_indices = @transform_17, window_bounds = array<i64: 1, 1, 32>}, {transform_indices = @transform_18, window_bounds = array<i64: 1, 1, 32>}, {transform_indices = @transform_19, window_bounds = array<i64: 1, 1, 32>}, {transform_indices = @transform_20, window_bounds = array<i64: 1, 1, 32>}, {pipeline_mode = #tpu.pipeline_mode<synchronous>, transform_indices = @transform_21, window_bounds = array<i64: 16, 32>}]} {
    %c0_i32 = arith.constant 0 : i32
    %0 = arith.cmpi eq, %arg0, %c0_i32 : i32
    %1 = arith.extui %0 : i1 to i32
    %c0_i32_0 = arith.constant 0 : i32
    %2 = arith.cmpi ne, %1, %c0_i32_0 : i32
    scf.if %2 {
      %c0_107 = arith.constant 0 : index
      %c0_108 = arith.constant 0 : index
      %256 = vector.load %arg1[%c0_107, %c0_108] : memref<16x32xf32, #tpu.memory_space<vmem>>, vector<16x32xf32>
      %c0_109 = arith.constant 0 : index
      %c0_110 = arith.constant 0 : index
      %257 = vector.load %arg23[%c0_109, %c0_110] : memref<16x32xf32, #tpu.memory_space<vmem>>, vector<16x32xf32>
      tpu.vector_store %arg23[%c0_109, %c0_110], %256 {strides = array<i32>} : memref<16x32xf32, #tpu.memory_space<vmem>>, vector<16x32xf32>,
    } else {
    }
    %c0 = arith.constant 0 : index
    %c0_1 = arith.constant 0 : index
    %3 = vector.load %arg23[%c0, %c0_1] : memref<16x32xf32, #tpu.memory_space<vmem>>, vector<16x32xf32>
    %c0_2 = arith.constant 0 : index
    %c0_3 = arith.constant 0 : index
    %4 = vector.load %arg3[%c0_2, %c0_3] : memref<2x8xf32, #tpu.memory_space<vmem>>, vector<2x8xf32>
    %cst = arith.constant 0.000000e+00 : f32
    %5 = vector.broadcast %cst : f32 to vector<2x8xf32>
    %6 = arith.cmpf oeq, %4, %5 : vector<2x8xf32>
    %cst_4 = arith.constant -1.000000e+30 : f32
    %cst_5 = arith.constant 0.000000e+00 : f32
    %7 = vector.broadcast %cst_4 : f32 to vector<2x8xf32>
    %8 = vector.broadcast %cst_5 : f32 to vector<2x8xf32>
    %9 = arith.select %6, %7, %8 : vector<2x8xi1>, vector<2x8xf32>
    %10 = vector.shape_cast %9 : vector<2x8xf32> to vector<2x1x8xf32>
    %11 = arith.truncf %3 : vector<16x32xf32> to vector<16x32xbf16>
    %c0_6 = arith.constant 0 : index
    %c0_7 = arith.constant 0 : index
    %c0_8 = arith.constant 0 : index
    %12 = vector.load %arg4[%c0_6, %c0_7, %c0_8] : memref<1x32x96xbf16, #tpu.memory_space<vmem>>, vector<1x32x96xbf16>
    %13 = vector.shape_cast %12 : vector<1x32x96xbf16> to vector<32x96xbf16>
    %cst_9 = arith.constant dense<0.000000e+00> : vector<16x96xf32>
    %14 = tpu.matmul %11, %13, %cst_9 {dimension_numbers = #tpu.dot_dimension_numbers<[1], [0], [0], [1], [0, 0, 1, 1], [], []>} : vector<16x32xbf16>, vector<32x96xbf16>, vector<16x96xf32> -> vector<16x96xf32>
    %c0_10 = arith.constant 0 : index
    %c0_11 = arith.constant 0 : index
    %c0_12 = arith.constant 0 : index
    %15 = vector.load %arg5[%c0_10, %c0_11, %c0_12] : memref<1x1x96xf32, #tpu.memory_space<vmem>>, vector<1x1x96xf32>
    %16 = vector.shape_cast %15 : vector<1x1x96xf32> to vector<1x96xf32>
    %17 = vector.broadcast %16 : vector<1x96xf32> to vector<16x96xf32>
    %18 = arith.addf %14, %17 : vector<16x96xf32>
    %19 = vector.extract_strided_slice %18 {offsets = [0, 0], sizes = [16, 8], strides = [1, 1]} : vector<16x96xf32> to vector<16x8xf32>
    %20 = vector.shape_cast %19 : vector<16x8xf32> to vector<2x8x8xf32>
    %21 = arith.truncf %20 : vector<2x8x8xf32> to vector<2x8x8xbf16>
    %22 = vector.extract_strided_slice %18 {offsets = [0, 32], sizes = [16, 8], strides = [1, 1]} : vector<16x96xf32> to vector<16x8xf32>
    %23 = vector.shape_cast %22 : vector<16x8xf32> to vector<2x8x8xf32>
    %24 = arith.truncf %23 : vector<2x8x8xf32> to vector<2x8x8xbf16>
    %25 = vector.extract_strided_slice %18 {offsets = [0, 64], sizes = [16, 8], strides = [1, 1]} : vector<16x96xf32> to vector<16x8xf32>
    %26 = vector.shape_cast %25 : vector<16x8xf32> to vector<2x8x8xf32>
    %27 = arith.truncf %26 : vector<2x8x8xf32> to vector<2x8x8xbf16>
    "tpu.trace_start"() <{level = 10 : i32, message = "bqd,bkd->bqk"}> : () -> ()
    %cst_13 = arith.constant dense<0.000000e+00> : vector<2x8x8xf32>
    %28 = tpu.matmul %21, %24, %cst_13 {dimension_numbers = #tpu.dot_dimension_numbers<[2], [2], [1], [1], [0, 0, 0, 1, 1, 1], [0], [0]>} : vector<2x8x8xbf16>, vector<2x8x8xbf16>, vector<2x8x8xf32> -> vector<2x8x8xf32>
    "tpu.trace_stop"() : () -> ()
    %cst_14 = arith.constant 0.353553385 : f32
    %29 = vector.broadcast %cst_14 : f32 to vector<2x8x8xf32>
    %30 = arith.mulf %28, %29 : vector<2x8x8xf32>
    %31 = vector.broadcast %10 : vector<2x1x8xf32> to vector<2x8x8xf32>
    %32 = arith.addf %30, %31 : vector<2x8x8xf32>
    %cst_15 = arith.constant dense<0xFF800000> : vector<2x8xf32>
    %33 = vector.multi_reduction <maximumf>, %32, %cst_15 [2] : vector<2x8x8xf32> to vector<2x8xf32>
    %34 = vector.shape_cast %33 : vector<2x8xf32> to vector<2x8x1xf32>
    %35 = vector.broadcast %34 : vector<2x8x1xf32> to vector<2x8x8xf32>
    %36 = arith.subf %32, %35 : vector<2x8x8xf32>
    %37 = math.exp %36 : vector<2x8x8xf32>
    %cst_16 = arith.constant dense<0.000000e+00> : vector<2x8xf32>
    %38 = vector.multi_reduction <add>, %37, %cst_16 [2] : vector<2x8x8xf32> to vector<2x8xf32>
    %39 = vector.shape_cast %38 : vector<2x8xf32> to vector<2x8x1xf32>
    %40 = vector.broadcast %39 : vector<2x8x1xf32> to vector<2x8x8xf32>
    %41 = arith.divf %37, %40 : vector<2x8x8xf32>
    %42 = arith.truncf %41 : vector<2x8x8xf32> to vector<2x8x8xbf16>
    "tpu.trace_start"() <{level = 10 : i32, message = "bqk,bkd->bqd"}> : () -> ()
    %cst_17 = arith.constant dense<0.000000e+00> : vector<2x8x8xf32>
    %43 = tpu.matmul %42, %27, %cst_17 {dimension_numbers = #tpu.dot_dimension_numbers<[2], [1], [1], [2], [0, 0, 0, 1, 1, 2], [0], [0]>} : vector<2x8x8xbf16>, vector<2x8x8xbf16>, vector<2x8x8xf32> -> vector<2x8x8xf32>
    "tpu.trace_stop"() : () -> ()
    %44 = vector.shape_cast %43 : vector<2x8x8xf32> to vector<16x8xf32>
    %45 = vector.extract_strided_slice %18 {offsets = [0, 8], sizes = [16, 8], strides = [1, 1]} : vector<16x96xf32> to vector<16x8xf32>
    %46 = vector.shape_cast %45 : vector<16x8xf32> to vector<2x8x8xf32>
    %47 = arith.truncf %46 : vector<2x8x8xf32> to vector<2x8x8xbf16>
    %48 = vector.extract_strided_slice %18 {offsets = [0, 40], sizes = [16, 8], strides = [1, 1]} : vector<16x96xf32> to vector<16x8xf32>
    %49 = vector.shape_cast %48 : vector<16x8xf32> to vector<2x8x8xf32>
    %50 = arith.truncf %49 : vector<2x8x8xf32> to vector<2x8x8xbf16>
    %51 = vector.extract_strided_slice %18 {offsets = [0, 72], sizes = [16, 8], strides = [1, 1]} : vector<16x96xf32> to vector<16x8xf32>
    %52 = vector.shape_cast %51 : vector<16x8xf32> to vector<2x8x8xf32>
    %53 = arith.truncf %52 : vector<2x8x8xf32> to vector<2x8x8xbf16>
    "tpu.trace_start"() <{level = 10 : i32, message = "bqd,bkd->bqk"}> : () -> ()
    %cst_18 = arith.constant dense<0.000000e+00> : vector<2x8x8xf32>
    %54 = tpu.matmul %47, %50, %cst_18 {dimension_numbers = #tpu.dot_dimension_numbers<[2], [2], [1], [1], [0, 0, 0, 1, 1, 1], [0], [0]>} : vector<2x8x8xbf16>, vector<2x8x8xbf16>, vector<2x8x8xf32> -> vector<2x8x8xf32>
    "tpu.trace_stop"() : () -> ()
    %cst_19 = arith.constant 0.353553385 : f32
    %55 = vector.broadcast %cst_19 : f32 to vector<2x8x8xf32>
    %56 = arith.mulf %54, %55 : vector<2x8x8xf32>
    %57 = vector.broadcast %10 : vector<2x1x8xf32> to vector<2x8x8xf32>
    %58 = arith.addf %56, %57 : vector<2x8x8xf32>
    %cst_20 = arith.constant dense<0xFF800000> : vector<2x8xf32>
    %59 = vector.multi_reduction <maximumf>, %58, %cst_20 [2] : vector<2x8x8xf32> to vector<2x8xf32>
    %60 = vector.shape_cast %59 : vector<2x8xf32> to vector<2x8x1xf32>
    %61 = vector.broadcast %60 : vector<2x8x1xf32> to vector<2x8x8xf32>
    %62 = arith.subf %58, %61 : vector<2x8x8xf32>
    %63 = math.exp %62 : vector<2x8x8xf32>
    %cst_21 = arith.constant dense<0.000000e+00> : vector<2x8xf32>
    %64 = vector.multi_reduction <add>, %63, %cst_21 [2] : vector<2x8x8xf32> to vector<2x8xf32>
    %65 = vector.shape_cast %64 : vector<2x8xf32> to vector<2x8x1xf32>
    %66 = vector.broadcast %65 : vector<2x8x1xf32> to vector<2x8x8xf32>
    %67 = arith.divf %63, %66 : vector<2x8x8xf32>
    %68 = arith.truncf %67 : vector<2x8x8xf32> to vector<2x8x8xbf16>
    "tpu.trace_start"() <{level = 10 : i32, message = "bqk,bkd->bqd"}> : () -> ()
    %cst_22 = arith.constant dense<0.000000e+00> : vector<2x8x8xf32>
    %69 = tpu.matmul %68, %53, %cst_22 {dimension_numbers = #tpu.dot_dimension_numbers<[2], [1], [1], [2], [0, 0, 0, 1, 1, 2], [0], [0]>} : vector<2x8x8xbf16>, vector<2x8x8xbf16>, vector<2x8x8xf32> -> vector<2x8x8xf32>
    "tpu.trace_stop"() : () -> ()
    %70 = vector.shape_cast %69 : vector<2x8x8xf32> to vector<16x8xf32>
    %71 = vector.extract_strided_slice %18 {offsets = [0, 16], sizes = [16, 8], strides = [1, 1]} : vector<16x96xf32> to vector<16x8xf32>
    %72 = vector.shape_cast %71 : vector<16x8xf32> to vector<2x8x8xf32>
    %73 = arith.truncf %72 : vector<2x8x8xf32> to vector<2x8x8xbf16>
    %74 = vector.extract_strided_slice %18 {offsets = [0, 48], sizes = [16, 8], strides = [1, 1]} : vector<16x96xf32> to vector<16x8xf32>
    %75 = vector.shape_cast %74 : vector<16x8xf32> to vector<2x8x8xf32>
    %76 = arith.truncf %75 : vector<2x8x8xf32> to vector<2x8x8xbf16>
    %77 = vector.extract_strided_slice %18 {offsets = [0, 80], sizes = [16, 8], strides = [1, 1]} : vector<16x96xf32> to vector<16x8xf32>
    %78 = vector.shape_cast %77 : vector<16x8xf32> to vector<2x8x8xf32>
    %79 = arith.truncf %78 : vector<2x8x8xf32> to vector<2x8x8xbf16>
    "tpu.trace_start"() <{level = 10 : i32, message = "bqd,bkd->bqk"}> : () -> ()
    %cst_23 = arith.constant dense<0.000000e+00> : vector<2x8x8xf32>
    %80 = tpu.matmul %73, %76, %cst_23 {dimension_numbers = #tpu.dot_dimension_numbers<[2], [2], [1], [1], [0, 0, 0, 1, 1, 1], [0], [0]>} : vector<2x8x8xbf16>, vector<2x8x8xbf16>, vector<2x8x8xf32> -> vector<2x8x8xf32>
    "tpu.trace_stop"() : () -> ()
    %cst_24 = arith.constant 0.353553385 : f32
    %81 = vector.broadcast %cst_24 : f32 to vector<2x8x8xf32>
    %82 = arith.mulf %80, %81 : vector<2x8x8xf32>
    %83 = vector.broadcast %10 : vector<2x1x8xf32> to vector<2x8x8xf32>
    %84 = arith.addf %82, %83 : vector<2x8x8xf32>
    %cst_25 = arith.constant dense<0xFF800000> : vector<2x8xf32>
    %85 = vector.multi_reduction <maximumf>, %84, %cst_25 [2] : vector<2x8x8xf32> to vector<2x8xf32>
    %86 = vector.shape_cast %85 : vector<2x8xf32> to vector<2x8x1xf32>
    %87 = vector.broadcast %86 : vector<2x8x1xf32> to vector<2x8x8xf32>
    %88 = arith.subf %84, %87 : vector<2x8x8xf32>
    %89 = math.exp %88 : vector<2x8x8xf32>
    %cst_26 = arith.constant dense<0.000000e+00> : vector<2x8xf32>
    %90 = vector.multi_reduction <add>, %89, %cst_26 [2] : vector<2x8x8xf32> to vector<2x8xf32>
    %91 = vector.shape_cast %90 : vector<2x8xf32> to vector<2x8x1xf32>
    %92 = vector.broadcast %91 : vector<2x8x1xf32> to vector<2x8x8xf32>
    %93 = arith.divf %89, %92 : vector<2x8x8xf32>
    %94 = arith.truncf %93 : vector<2x8x8xf32> to vector<2x8x8xbf16>
    "tpu.trace_start"() <{level = 10 : i32, message = "bqk,bkd->bqd"}> : () -> ()
    %cst_27 = arith.constant dense<0.000000e+00> : vector<2x8x8xf32>
    %95 = tpu.matmul %94, %79, %cst_27 {dimension_numbers = #tpu.dot_dimension_numbers<[2], [1], [1], [2], [0, 0, 0, 1, 1, 2], [0], [0]>} : vector<2x8x8xbf16>, vector<2x8x8xbf16>, vector<2x8x8xf32> -> vector<2x8x8xf32>
    "tpu.trace_stop"() : () -> ()
    %96 = vector.shape_cast %95 : vector<2x8x8xf32> to vector<16x8xf32>
    %97 = vector.extract_strided_slice %18 {offsets = [0, 24], sizes = [16, 8], strides = [1, 1]} : vector<16x96xf32> to vector<16x8xf32>
    %98 = vector.shape_cast %97 : vector<16x8xf32> to vector<2x8x8xf32>
    %99 = arith.truncf %98 : vector<2x8x8xf32> to vector<2x8x8xbf16>
    %100 = vector.extract_strided_slice %18 {offsets = [0, 56], sizes = [16, 8], strides = [1, 1]} : vector<16x96xf32> to vector<16x8xf32>
    %101 = vector.shape_cast %100 : vector<16x8xf32> to vector<2x8x8xf32>
    %102 = arith.truncf %101 : vector<2x8x8xf32> to vector<2x8x8xbf16>
    %103 = vector.extract_strided_slice %18 {offsets = [0, 88], sizes = [16, 8], strides = [1, 1]} : vector<16x96xf32> to vector<16x8xf32>
    %104 = vector.shape_cast %103 : vector<16x8xf32> to vector<2x8x8xf32>
    %105 = arith.truncf %104 : vector<2x8x8xf32> to vector<2x8x8xbf16>
    "tpu.trace_start"() <{level = 10 : i32, message = "bqd,bkd->bqk"}> : () -> ()
    %cst_28 = arith.constant dense<0.000000e+00> : vector<2x8x8xf32>
    %106 = tpu.matmul %99, %102, %cst_28 {dimension_numbers = #tpu.dot_dimension_numbers<[2], [2], [1], [1], [0, 0, 0, 1, 1, 1], [0], [0]>} : vector<2x8x8xbf16>, vector<2x8x8xbf16>, vector<2x8x8xf32> -> vector<2x8x8xf32>
    "tpu.trace_stop"() : () -> ()
    %cst_29 = arith.constant 0.353553385 : f32
    %107 = vector.broadcast %cst_29 : f32 to vector<2x8x8xf32>
    %108 = arith.mulf %106, %107 : vector<2x8x8xf32>
    %109 = vector.broadcast %10 : vector<2x1x8xf32> to vector<2x8x8xf32>
    %110 = arith.addf %108, %109 : vector<2x8x8xf32>
    %cst_30 = arith.constant dense<0xFF800000> : vector<2x8xf32>
    %111 = vector.multi_reduction <maximumf>, %110, %cst_30 [2] : vector<2x8x8xf32> to vector<2x8xf32>
    %112 = vector.shape_cast %111 : vector<2x8xf32> to vector<2x8x1xf32>
    %113 = vector.broadcast %112 : vector<2x8x1xf32> to vector<2x8x8xf32>
    %114 = arith.subf %110, %113 : vector<2x8x8xf32>
    %115 = math.exp %114 : vector<2x8x8xf32>
    %cst_31 = arith.constant dense<0.000000e+00> : vector<2x8xf32>
    %116 = vector.multi_reduction <add>, %115, %cst_31 [2] : vector<2x8x8xf32> to vector<2x8xf32>
    %117 = vector.shape_cast %116 : vector<2x8xf32> to vector<2x8x1xf32>
    %118 = vector.broadcast %117 : vector<2x8x1xf32> to vector<2x8x8xf32>
    %119 = arith.divf %115, %118 : vector<2x8x8xf32>
    %120 = arith.truncf %119 : vector<2x8x8xf32> to vector<2x8x8xbf16>
    "tpu.trace_start"() <{level = 10 : i32, message = "bqk,bkd->bqd"}> : () -> ()
    %cst_32 = arith.constant dense<0.000000e+00> : vector<2x8x8xf32>
    %121 = tpu.matmul %120, %105, %cst_32 {dimension_numbers = #tpu.dot_dimension_numbers<[2], [1], [1], [2], [0, 0, 0, 1, 1, 2], [0], [0]>} : vector<2x8x8xbf16>, vector<2x8x8xbf16>, vector<2x8x8xf32> -> vector<2x8x8xf32>
    "tpu.trace_stop"() : () -> ()
    %122 = vector.shape_cast %121 : vector<2x8x8xf32> to vector<16x8xf32>
    %123 = tpu.concatenate %44, %70, %96, %122 in 1 : vector<16x8xf32>, vector<16x8xf32>, vector<16x8xf32>, vector<16x8xf32> -> vector<16x32xf32>
    %124 = arith.truncf %123 : vector<16x32xf32> to vector<16x32xbf16>
    %c0_33 = arith.constant 0 : index
    %c0_34 = arith.constant 0 : index
    %c0_35 = arith.constant 0 : index
    %125 = vector.load %arg6[%c0_33, %c0_34, %c0_35] : memref<1x32x32xbf16, #tpu.memory_space<vmem>>, vector<1x32x32xbf16>
    %126 = vector.shape_cast %125 : vector<1x32x32xbf16> to vector<32x32xbf16>
    %cst_36 = arith.constant dense<0.000000e+00> : vector<16x32xf32>
    %127 = tpu.matmul %124, %126, %cst_36 {dimension_numbers = #tpu.dot_dimension_numbers<[1], [0], [0], [1], [0, 0, 1, 1], [], []>} : vector<16x32xbf16>, vector<32x32xbf16>, vector<16x32xf32> -> vector<16x32xf32>
    %c0_37 = arith.constant 0 : index
    %c0_38 = arith.constant 0 : index
    %c0_39 = arith.constant 0 : index
    %128 = vector.load %arg7[%c0_37, %c0_38, %c0_39] : memref<1x1x32xf32, #tpu.memory_space<vmem>>, vector<1x1x32xf32>
    %129 = vector.shape_cast %128 : vector<1x1x32xf32> to vector<1x32xf32>
    %130 = vector.broadcast %129 : vector<1x32xf32> to vector<16x32xf32>
    %131 = arith.addf %127, %130 : vector<16x32xf32>
    %132 = arith.addf %3, %131 : vector<16x32xf32>
    %c0_40 = arith.constant 0 : index
    %c0_41 = arith.constant 0 : index
    %c0_42 = arith.constant 0 : index
    %133 = vector.load %arg16[%c0_40, %c0_41, %c0_42] : memref<1x1x32xf32, #tpu.memory_space<vmem>>, vector<1x1x32xf32>
    %134 = vector.shape_cast %133 : vector<1x1x32xf32> to vector<1x32xf32>
    %c0_43 = arith.constant 0 : index
    %c0_44 = arith.constant 0 : index
    %c0_45 = arith.constant 0 : index
    %135 = vector.load %arg17[%c0_43, %c0_44, %c0_45] : memref<1x1x32xf32, #tpu.memory_space<vmem>>, vector<1x1x32xf32>
    %136 = vector.shape_cast %135 : vector<1x1x32xf32> to vector<1x32xf32>
    %cst_46 = arith.constant dense<0.000000e+00> : vector<16xf32>
    %137 = vector.multi_reduction <add>, %132, %cst_46 [1] : vector<16x32xf32> to vector<16xf32>
    %138 = vector.shape_cast %137 : vector<16xf32> to vector<16x1xf32>
    %cst_47 = arith.constant 3.200000e+01 : f32
    %139 = vector.broadcast %cst_47 : f32 to vector<16x1xf32>
    %140 = arith.divf %138, %139 : vector<16x1xf32>
    %141 = vector.broadcast %140 : vector<16x1xf32> to vector<16x32xf32>
    %142 = arith.subf %132, %141 : vector<16x32xf32>
    %143 = arith.mulf %142, %142 : vector<16x32xf32>
    %cst_48 = arith.constant dense<0.000000e+00> : vector<16xf32>
    %144 = vector.multi_reduction <add>, %143, %cst_48 [1] : vector<16x32xf32> to vector<16xf32>
    %145 = vector.shape_cast %144 : vector<16xf32> to vector<16x1xf32>
    %cst_49 = arith.constant 3.200000e+01 : f32
    %146 = vector.broadcast %cst_49 : f32 to vector<16x1xf32>
    %147 = arith.divf %145, %146 : vector<16x1xf32>
    %148 = vector.broadcast %140 : vector<16x1xf32> to vector<16x32xf32>
    %149 = arith.subf %132, %148 : vector<16x32xf32>
    %cst_50 = arith.constant 9.99999974E-6 : f32
    %150 = vector.broadcast %cst_50 : f32 to vector<16x1xf32>
    %151 = arith.addf %147, %150 : vector<16x1xf32>
    %152 = math.rsqrt %151 : vector<16x1xf32>
    %153 = vector.broadcast %152 : vector<16x1xf32> to vector<16x32xf32>
    %154 = arith.mulf %149, %153 : vector<16x32xf32>
    %155 = vector.broadcast %134 : vector<1x32xf32> to vector<16x32xf32>
    %156 = arith.mulf %154, %155 : vector<16x32xf32>
    %157 = vector.broadcast %136 : vector<1x32xf32> to vector<16x32xf32>
    %158 = arith.addf %156, %157 : vector<16x32xf32>
    %c0_51 = arith.constant 0 : index
    %c0_52 = arith.constant 0 : index
    %159 = vector.load %arg2[%c0_51, %c0_52] : memref<2x32xf32, #tpu.memory_space<vmem>>, vector<2x32xf32>
    %160 = arith.truncf %159 : vector<2x32xf32> to vector<2x32xbf16>
    %c0_53 = arith.constant 0 : index
    %c0_54 = arith.constant 0 : index
    %c0_55 = arith.constant 0 : index
    %161 = vector.load %arg8[%c0_53, %c0_54, %c0_55] : memref<1x32x32xbf16, #tpu.memory_space<vmem>>, vector<1x32x32xbf16>
    %162 = vector.shape_cast %161 : vector<1x32x32xbf16> to vector<32x32xbf16>
    %cst_56 = arith.constant dense<0.000000e+00> : vector<2x32xf32>
    %163 = tpu.matmul %160, %162, %cst_56 {dimension_numbers = #tpu.dot_dimension_numbers<[1], [0], [0], [1], [0, 0, 1, 1], [], []>} : vector<2x32xbf16>, vector<32x32xbf16>, vector<2x32xf32> -> vector<2x32xf32>
    %c0_57 = arith.constant 0 : index
    %c0_58 = arith.constant 0 : index
    %c0_59 = arith.constant 0 : index
    %164 = vector.load %arg9[%c0_57, %c0_58, %c0_59] : memref<1x1x32xf32, #tpu.memory_space<vmem>>, vector<1x1x32xf32>
    %165 = vector.shape_cast %164 : vector<1x1x32xf32> to vector<1x32xf32>
    %166 = vector.broadcast %165 : vector<1x32xf32> to vector<2x32xf32>
    %167 = arith.addf %163, %166 : vector<2x32xf32>
    %168 = arith.truncf %167 : vector<2x32xf32> to vector<2x32xbf16>
    %c0_60 = arith.constant 0 : index
    %c0_61 = arith.constant 0 : index
    %c0_62 = arith.constant 0 : index
    %169 = vector.load %arg10[%c0_60, %c0_61, %c0_62] : memref<1x32x32xbf16, #tpu.memory_space<vmem>>, vector<1x32x32xbf16>
    %170 = vector.shape_cast %169 : vector<1x32x32xbf16> to vector<32x32xbf16>
    %cst_63 = arith.constant dense<0.000000e+00> : vector<2x32xf32>
    %171 = tpu.matmul %168, %170, %cst_63 {dimension_numbers = #tpu.dot_dimension_numbers<[1], [0], [0], [1], [0, 0, 1, 1], [], []>} : vector<2x32xbf16>, vector<32x32xbf16>, vector<2x32xf32> -> vector<2x32xf32>
    %c0_64 = arith.constant 0 : index
    %c0_65 = arith.constant 0 : index
    %c0_66 = arith.constant 0 : index
    %172 = vector.load %arg11[%c0_64, %c0_65, %c0_66] : memref<1x1x32xf32, #tpu.memory_space<vmem>>, vector<1x1x32xf32>
    %173 = vector.shape_cast %172 : vector<1x1x32xf32> to vector<1x32xf32>
    %174 = vector.broadcast %173 : vector<1x32xf32> to vector<2x32xf32>
    %175 = arith.addf %171, %174 : vector<2x32xf32>
    %176 = vector.shape_cast %175 : vector<2x32xf32> to vector<2x1x32xf32>
    %177 = vector.shape_cast %176 : vector<2x1x32xf32> to vector<2x1x32xf32>
    %178 = vector.broadcast %177 : vector<2x1x32xf32> to vector<2x8x32xf32>
    %179 = vector.shape_cast %178 : vector<2x8x32xf32> to vector<16x32xf32>
    %180 = arith.addf %158, %179 : vector<16x32xf32>
    %c0_67 = arith.constant 0 : index
    %c0_68 = arith.constant 0 : index
    %c0_69 = arith.constant 0 : index
    %181 = vector.load %arg18[%c0_67, %c0_68, %c0_69] : memref<1x1x32xf32, #tpu.memory_space<vmem>>, vector<1x1x32xf32>
    %182 = vector.shape_cast %181 : vector<1x1x32xf32> to vector<1x32xf32>
    %c0_70 = arith.constant 0 : index
    %c0_71 = arith.constant 0 : index
    %c0_72 = arith.constant 0 : index
    %183 = vector.load %arg19[%c0_70, %c0_71, %c0_72] : memref<1x1x32xf32, #tpu.memory_space<vmem>>, vector<1x1x32xf32>
    %184 = vector.shape_cast %183 : vector<1x1x32xf32> to vector<1x32xf32>
    %cst_73 = arith.constant dense<0.000000e+00> : vector<16xf32>
    %185 = vector.multi_reduction <add>, %180, %cst_73 [1] : vector<16x32xf32> to vector<16xf32>
    %186 = vector.shape_cast %185 : vector<16xf32> to vector<16x1xf32>
    %cst_74 = arith.constant 3.200000e+01 : f32
    %187 = vector.broadcast %cst_74 : f32 to vector<16x1xf32>
    %188 = arith.divf %186, %187 : vector<16x1xf32>
    %189 = vector.broadcast %188 : vector<16x1xf32> to vector<16x32xf32>
    %190 = arith.subf %180, %189 : vector<16x32xf32>
    %191 = arith.mulf %190, %190 : vector<16x32xf32>
    %cst_75 = arith.constant dense<0.000000e+00> : vector<16xf32>
    %192 = vector.multi_reduction <add>, %191, %cst_75 [1] : vector<16x32xf32> to vector<16xf32>
    %193 = vector.shape_cast %192 : vector<16xf32> to vector<16x1xf32>
    %cst_76 = arith.constant 3.200000e+01 : f32
    %194 = vector.broadcast %cst_76 : f32 to vector<16x1xf32>
    %195 = arith.divf %193, %194 : vector<16x1xf32>
    %196 = vector.broadcast %188 : vector<16x1xf32> to vector<16x32xf32>
    %197 = arith.subf %180, %196 : vector<16x32xf32>
    %cst_77 = arith.constant 9.99999974E-6 : f32
    %198 = vector.broadcast %cst_77 : f32 to vector<16x1xf32>
    %199 = arith.addf %195, %198 : vector<16x1xf32>
    %200 = math.rsqrt %199 : vector<16x1xf32>
    %201 = vector.broadcast %200 : vector<16x1xf32> to vector<16x32xf32>
    %202 = arith.mulf %197, %201 : vector<16x32xf32>
    %203 = vector.broadcast %182 : vector<1x32xf32> to vector<16x32xf32>
    %204 = arith.mulf %202, %203 : vector<16x32xf32>
    %205 = vector.broadcast %184 : vector<1x32xf32> to vector<16x32xf32>
    %206 = arith.addf %204, %205 : vector<16x32xf32>
    %207 = arith.truncf %206 : vector<16x32xf32> to vector<16x32xbf16>
    %c0_78 = arith.constant 0 : index
    %c0_79 = arith.constant 0 : index
    %c0_80 = arith.constant 0 : index
    %208 = vector.load %arg12[%c0_78, %c0_79, %c0_80] : memref<1x32x64xbf16, #tpu.memory_space<vmem>>, vector<1x32x64xbf16>
    %209 = vector.shape_cast %208 : vector<1x32x64xbf16> to vector<32x64xbf16>
    %cst_81 = arith.constant dense<0.000000e+00> : vector<16x64xf32>
    %210 = tpu.matmul %207, %209, %cst_81 {dimension_numbers = #tpu.dot_dimension_numbers<[1], [0], [0], [1], [0, 0, 1, 1], [], []>} : vector<16x32xbf16>, vector<32x64xbf16>, vector<16x64xf32> -> vector<16x64xf32>
    %c0_82 = arith.constant 0 : index
    %c0_83 = arith.constant 0 : index
    %c0_84 = arith.constant 0 : index
    %211 = vector.load %arg13[%c0_82, %c0_83, %c0_84] : memref<1x1x64xf32, #tpu.memory_space<vmem>>, vector<1x1x64xf32>
    %212 = vector.shape_cast %211 : vector<1x1x64xf32> to vector<1x64xf32>
    %213 = vector.broadcast %212 : vector<1x64xf32> to vector<16x64xf32>
    %214 = arith.addf %210, %213 : vector<16x64xf32>
    %cst_85 = arith.constant 0.000000e+00 : f32
    %215 = vector.broadcast %cst_85 : f32 to vector<16x64xf32>
    %216 = arith.maximumf %214, %215 : vector<16x64xf32>
    %217 = arith.truncf %216 : vector<16x64xf32> to vector<16x64xbf16>
    %c0_86 = arith.constant 0 : index
    %c0_87 = arith.constant 0 : index
    %c0_88 = arith.constant 0 : index
    %218 = vector.load %arg14[%c0_86, %c0_87, %c0_88] : memref<1x64x32xbf16, #tpu.memory_space<vmem>>, vector<1x64x32xbf16>
    %219 = vector.shape_cast %218 : vector<1x64x32xbf16> to vector<64x32xbf16>
    %cst_89 = arith.constant dense<0.000000e+00> : vector<16x32xf32>
    %220 = tpu.matmul %217, %219, %cst_89 {dimension_numbers = #tpu.dot_dimension_numbers<[1], [0], [0], [1], [0, 0, 1, 1], [], []>} : vector<16x64xbf16>, vector<64x32xbf16>, vector<16x32xf32> -> vector<16x32xf32>
    %c0_90 = arith.constant 0 : index
    %c0_91 = arith.constant 0 : index
    %c0_92 = arith.constant 0 : index
    %221 = vector.load %arg15[%c0_90, %c0_91, %c0_92] : memref<1x1x32xf32, #tpu.memory_space<vmem>>, vector<1x1x32xf32>
    %222 = vector.shape_cast %221 : vector<1x1x32xf32> to vector<1x32xf32>
    %223 = vector.broadcast %222 : vector<1x32xf32> to vector<16x32xf32>
    %224 = arith.addf %220, %223 : vector<16x32xf32>
    %225 = arith.addf %206, %224 : vector<16x32xf32>
    %c0_93 = arith.constant 0 : index
    %c0_94 = arith.constant 0 : index
    %c0_95 = arith.constant 0 : index
    %226 = vector.load %arg20[%c0_93, %c0_94, %c0_95] : memref<1x1x32xf32, #tpu.memory_space<vmem>>, vector<1x1x32xf32>
    %227 = vector.shape_cast %226 : vector<1x1x32xf32> to vector<1x32xf32>
    %c0_96 = arith.constant 0 : index
    %c0_97 = arith.constant 0 : index
    %c0_98 = arith.constant 0 : index
    %228 = vector.load %arg21[%c0_96, %c0_97, %c0_98] : memref<1x1x32xf32, #tpu.memory_space<vmem>>, vector<1x1x32xf32>
    %229 = vector.shape_cast %228 : vector<1x1x32xf32> to vector<1x32xf32>
    %cst_99 = arith.constant dense<0.000000e+00> : vector<16xf32>
    %230 = vector.multi_reduction <add>, %225, %cst_99 [1] : vector<16x32xf32> to vector<16xf32>
    %231 = vector.shape_cast %230 : vector<16xf32> to vector<16x1xf32>
    %cst_100 = arith.constant 3.200000e+01 : f32
    %232 = vector.broadcast %cst_100 : f32 to vector<16x1xf32>
    %233 = arith.divf %231, %232 : vector<16x1xf32>
    %234 = vector.broadcast %233 : vector<16x1xf32> to vector<16x32xf32>
    %235 = arith.subf %225, %234 : vector<16x32xf32>
    %236 = arith.mulf %235, %235 : vector<16x32xf32>
    %cst_101 = arith.constant dense<0.000000e+00> : vector<16xf32>
    %237 = vector.multi_reduction <add>, %236, %cst_101 [1] : vector<16x32xf32> to vector<16xf32>
    %238 = vector.shape_cast %237 : vector<16xf32> to vector<16x1xf32>
    %cst_102 = arith.constant 3.200000e+01 : f32
    %239 = vector.broadcast %cst_102 : f32 to vector<16x1xf32>
    %240 = arith.divf %238, %239 : vector<16x1xf32>
    %241 = vector.broadcast %233 : vector<16x1xf32> to vector<16x32xf32>
    %242 = arith.subf %225, %241 : vector<16x32xf32>
    %cst_103 = arith.constant 9.99999974E-6 : f32
    %243 = vector.broadcast %cst_103 : f32 to vector<16x1xf32>
    %244 = arith.addf %240, %243 : vector<16x1xf32>
    %245 = math.rsqrt %244 : vector<16x1xf32>
    %246 = vector.broadcast %245 : vector<16x1xf32> to vector<16x32xf32>
    %247 = arith.mulf %242, %246 : vector<16x32xf32>
    %248 = vector.broadcast %227 : vector<1x32xf32> to vector<16x32xf32>
    %249 = arith.mulf %247, %248 : vector<16x32xf32>
    %250 = vector.broadcast %229 : vector<1x32xf32> to vector<16x32xf32>
    %251 = arith.addf %249, %250 : vector<16x32xf32>
    %c0_104 = arith.constant 0 : index
    %c0_105 = arith.constant 0 : index
    %252 = vector.load %arg23[%c0_104, %c0_105] : memref<16x32xf32, #tpu.memory_space<vmem>>, vector<16x32xf32>
    tpu.vector_store %arg23[%c0_104, %c0_105], %251 {strides = array<i32>} : memref<16x32xf32, #tpu.memory_space<vmem>>, vector<16x32xf32>,
    %c1_i32 = arith.constant 1 : i32
    %253 = arith.cmpi eq, %arg0, %c1_i32 : i32
    %254 = arith.extui %253 : i1 to i32
    %c0_i32_106 = arith.constant 0 : i32
    %255 = arith.cmpi ne, %254, %c0_i32_106 : i32
    scf.if %255 {
      %c0_107 = arith.constant 0 : index
      %c0_108 = arith.constant 0 : index
      %256 = vector.load %arg22[%c0_107, %c0_108] : memref<16x32xf32, #tpu.memory_space<vmem>>, vector<16x32xf32>
      tpu.vector_store %arg22[%c0_107, %c0_108], %251 {strides = array<i32>} : memref<16x32xf32, #tpu.memory_space<vmem>>, vector<16x32xf32>,
    } else {
    }
    return
  }
  func.func @transform_0(%arg0: i32) -> (i32, i32) {
    %c0_i32 = arith.constant 0 : i32
    %c0_i32_0 = arith.constant 0 : i32
    %c0_i32_1 = arith.constant 0 : i32
    return %c0_i32, %c0_i32_0 : i32, i32
  }
  func.func @transform_1(%arg0: i32) -> (i32, i32) {
    %c0_i32 = arith.constant 0 : i32
    %c0_i32_0 = arith.constant 0 : i32
    %c0_i32_1 = arith.constant 0 : i32
    return %c0_i32, %c0_i32_0 : i32, i32
  }
  func.func @transform_2(%arg0: i32) -> (i32, i32) {
    %c0_i32 = arith.constant 0 : i32
    %c0_i32_0 = arith.constant 0 : i32
    %c0_i32_1 = arith.constant 0 : i32
    return %c0_i32, %c0_i32_0 : i32, i32
  }
  func.func @transform_3(%arg0: i32) -> (i32, i32, i32) {
    %c0_i32 = arith.constant 0 : i32
    %c0_i32_0 = arith.constant 0 : i32
    %c0_i32_1 = arith.constant 0 : i32
    return %arg0, %c0_i32, %c0_i32_0 : i32, i32, i32
  }
  func.func @transform_4(%arg0: i32) -> (i32, i32, i32) {
    %c0_i32 = arith.constant 0 : i32
    %c0_i32_0 = arith.constant 0 : i32
    %c0_i32_1 = arith.constant 0 : i32
    return %arg0, %c0_i32, %c0_i32_0 : i32, i32, i32
  }
  func.func @transform_5(%arg0: i32) -> (i32, i32, i32) {
    %c0_i32 = arith.constant 0 : i32
    %c0_i32_0 = arith.constant 0 : i32
    %c0_i32_1 = arith.constant 0 : i32
    return %arg0, %c0_i32, %c0_i32_0 : i32, i32, i32
  }
  func.func @transform_6(%arg0: i32) -> (i32, i32, i32) {
    %c0_i32 = arith.constant 0 : i32
    %c0_i32_0 = arith.constant 0 : i32
    %c0_i32_1 = arith.constant 0 : i32
    return %arg0, %c0_i32, %c0_i32_0 : i32, i32, i32
  }
  func.func @transform_7(%arg0: i32) -> (i32, i32, i32) {
    %c0_i32 = arith.constant 0 : i32
    %c0_i32_0 = arith.constant 0 : i32
    %c0_i32_1 = arith.constant 0 : i32
    return %arg0, %c0_i32, %c0_i32_0 : i32, i32, i32
  }
  func.func @transform_8(%arg0: i32) -> (i32, i32, i32) {
    %c0_i32 = arith.constant 0 : i32
    %c0_i32_0 = arith.constant 0 : i32
    %c0_i32_1 = arith.constant 0 : i32
    return %arg0, %c0_i32, %c0_i32_0 : i32, i32, i32
  }
  func.func @transform_9(%arg0: i32) -> (i32, i32, i32) {
    %c0_i32 = arith.constant 0 : i32
    %c0_i32_0 = arith.constant 0 : i32
    %c0_i32_1 = arith.constant 0 : i32
    return %arg0, %c0_i32, %c0_i32_0 : i32, i32, i32
  }
  func.func @transform_10(%arg0: i32) -> (i32, i32, i32) {
    %c0_i32 = arith.constant 0 : i32
    %c0_i32_0 = arith.constant 0 : i32
    %c0_i32_1 = arith.constant 0 : i32
    return %arg0, %c0_i32, %c0_i32_0 : i32, i32, i32
  }
  func.func @transform_11(%arg0: i32) -> (i32, i32, i32) {
    %c0_i32 = arith.constant 0 : i32
    %c0_i32_0 = arith.constant 0 : i32
    %c0_i32_1 = arith.constant 0 : i32
    return %arg0, %c0_i32, %c0_i32_0 : i32, i32, i32
  }
  func.func @transform_12(%arg0: i32) -> (i32, i32, i32) {
    %c0_i32 = arith.constant 0 : i32
    %c0_i32_0 = arith.constant 0 : i32
    %c0_i32_1 = arith.constant 0 : i32
    return %arg0, %c0_i32, %c0_i32_0 : i32, i32, i32
  }
  func.func @transform_13(%arg0: i32) -> (i32, i32, i32) {
    %c0_i32 = arith.constant 0 : i32
    %c0_i32_0 = arith.constant 0 : i32
    %c0_i32_1 = arith.constant 0 : i32
    return %arg0, %c0_i32, %c0_i32_0 : i32, i32, i32
  }
  func.func @transform_14(%arg0: i32) -> (i32, i32, i32) {
    %c0_i32 = arith.constant 0 : i32
    %c0_i32_0 = arith.constant 0 : i32
    %c0_i32_1 = arith.constant 0 : i32
    return %arg0, %c0_i32, %c0_i32_0 : i32, i32, i32
  }
  func.func @transform_15(%arg0: i32) -> (i32, i32, i32) {
    %c0_i32 = arith.constant 0 : i32
    %c0_i32_0 = arith.constant 0 : i32
    %c0_i32_1 = arith.constant 0 : i32
    return %arg0, %c0_i32, %c0_i32_0 : i32, i32, i32
  }
  func.func @transform_16(%arg0: i32) -> (i32, i32, i32) {
    %c0_i32 = arith.constant 0 : i32
    %c0_i32_0 = arith.constant 0 : i32
    %c0_i32_1 = arith.constant 0 : i32
    return %arg0, %c0_i32, %c0_i32_0 : i32, i32, i32
  }
  func.func @transform_17(%arg0: i32) -> (i32, i32, i32) {
    %c0_i32 = arith.constant 0 : i32
    %c0_i32_0 = arith.constant 0 : i32
    %c0_i32_1 = arith.constant 0 : i32
    return %arg0, %c0_i32, %c0_i32_0 : i32, i32, i32
  }
  func.func @transform_18(%arg0: i32) -> (i32, i32, i32) {
    %c0_i32 = arith.constant 0 : i32
    %c0_i32_0 = arith.constant 0 : i32
    %c0_i32_1 = arith.constant 0 : i32
    return %arg0, %c0_i32, %c0_i32_0 : i32, i32, i32
  }
  func.func @transform_19(%arg0: i32) -> (i32, i32, i32) {
    %c0_i32 = arith.constant 0 : i32
    %c0_i32_0 = arith.constant 0 : i32
    %c0_i32_1 = arith.constant 0 : i32
    return %arg0, %c0_i32, %c0_i32_0 : i32, i32, i32
  }
  func.func @transform_20(%arg0: i32) -> (i32, i32, i32) {
    %c0_i32 = arith.constant 0 : i32
    %c0_i32_0 = arith.constant 0 : i32
    %c0_i32_1 = arith.constant 0 : i32
    return %arg0, %c0_i32, %c0_i32_0 : i32, i32, i32
  }
  func.func @transform_21(%arg0: i32) -> (i32, i32) {
    %c0_i32 = arith.constant 0 : i32
    %c0_i32_0 = arith.constant 0 : i32
    %c0_i32_1 = arith.constant 0 : i32
    return %c0_i32, %c0_i32_0 : i32, i32
  }
}

</mosaic_0001>

<bundles_post_ra>
// kernel: transformer_vae_forward.7
= control target key start
LH: loop header
LB: loop body
LE: loop exit
PB: predicated region body
PF: predicated region fallthrough
CT: control target
= control target key end

     0   :  { %v152_v1 = vmov 0.0   ;;  %vm153_vm0 = vmmov 0   ;;  %s204_s0 = inlined_call_operand.vmem [shape: f32[16,32], index: 0, kind: input, shape index: {}]   ;;  %s205_s1 = inlined_call_operand.vmem [shape: bf16[32,64], index: 1, kind: input, shape index: {}]   ;;  %s206_s2 = inlined_call_operand.vmem [shape: f32[1,64], index: 2, kind: input, shape index: {}]   ;;  %s207_s3 = inlined_call_operand.hbm [shape: f32[16,64], index: 3, kind: output, shape index: {}]  }
   0x1   :  { %v126_v0 = vld [vmem:[%s205_s1] sm:$0xff]   ;;  %113 = vmatprep.subr.bf16.mxu0 %v152_v1  ;;  %v127_v2 = vld [vmem:[%s205_s1 + $0x8] sm:$0xff]   ;;  %117 = vmatprep.mubr.msk.bf16.mxu0 %vm153_vm0, %v152_v1 }
   0x2   :  { %114 = vmatpush3.bf16.msra.mxu0 %v126_v0  ;;  %v16_v3 = vld [vmem:[%s204_s0] sm:$0xff]  ;;  %v17_v4 = vld [vmem:[%s204_s0 + $0x8] sm:$0xff] }
   0x3   :  { %115 = vmatprep.subr.bf16.mxu0 %v152_v1 }
   0x4   :  { %8 = vsyncpa [#allocation3], 0  ;;  %v18_v5 = vpack.c.bf16 %v17_v4, %v16_v3  ;;  %vm42_vm1 = vcmask 261120   ;;  %v106_v6 = vld [vmem:[%s206_s2] ss:$0 sm:$0xff]  ;;  %s154_s1 = smov [#allocation2]  }
   0x5   :  { %s95_s22 = sshll.u32 %s154_s1, 4  ;;  %vm87_vm2 = vcmask 523264   ;;  %s96_s22 = int_to_ptr.vmem [resolvable:$true] %s95_s22 }
   0x6   :  { %116 = vmatpush3.bf16.msra.mxu0 %v127_v2  ;;  %s128_s0 = scalar_lea.vmem %s96_s22, 256  ;;  %p133_p1 = scmp.lt.s32.totalorder %s96_s22, %s96_s22 }
   0x7   :  { %p129_p0 = scmp.ne.s32.totalorder %s96_s22, %s128_s0  ;;  %p134_p2 = scmp.lt.s32.totalorder %s128_s0, %s128_s0 }
   0x9   :  { %118 = vmatmul.mubr.msk.bf16.vlgmr.msra.gmra.mrb[0].mxu0 %vm42_vm1, %v18_v5  ;;  %p135_p3 = por %p134_p2, %p133_p1 }
   0xb   :  { %p136_p4 = pnand %p135_p3, %p129_p0 }
  0xdc   :  { %v80_v7 = vpop.f32.mrb[0].mxu0 }
  0xdd   :  { %v81_v8 = vadd.f32 %v106_v6, %v80_v7  ;;  %v119_v9 = vpop.f32.mrb[1].mxu0 }
  0xde   :  { %v83_v10 = vpop.f32.mrb[2].mxu0 }
  0xdf   :  { %88 = vst.msk [vmem:[#allocation2] sm:$0xff] %vm87_vm2, %v81_v8  ;;  %v84_v11 = vadd.f32 %v106_v6, %v83_v10  ;;  %v120_v12 = vpop.f32.mrb[3].mxu0 }
  0xe1   :  { %89 = vst.msk [vmem:[#allocation2 + $0x8] sm:$0xff] %vm87_vm2, %v84_v11 }
  0xe2   :  { %139 = shalt.err (!%p136_p4)
}
  0xe3   :  { %s140_s24 = scalar_lea.hbm %s207_s3, 256 }
  0xe4   :  { %p141_p5 = scmp.ne.s32.totalorder %s207_s3, %s140_s24  ;;  %p144_p6 = scmp.lt.u32.totalorder %s140_s24, %s207_s3 }
  0xe6   :  { %p146_p7 = pnand %p144_p6, %p141_p5 }
  0xe8   :  { %149 = shalt.err (!%p146_p7)
}
  0xe9   :  { %s155_s29 = smov 128   ;;  %s156_s30 = smov 8  }
  0xea   :  { %101 = dma.vmem_to_hbm [thread:$0]  %s96_s22, 256, %s207_s3, [#allocation3], %s155_s29, %s155_s29, %s156_s30  }
  0xeb   :  { %150 = dma.done.wait [#allocation3], 256  }
  0xec   :  { %151 = vsyncadd [#allocation3], 4294967040 }
  0xed   :  { %105 = vsyncpa [#allocation3], 1 }

// kernel: transformer_vae_forward.5
= control target key start
LH: loop header
LB: loop body
LE: loop exit
PB: predicated region body
PF: predicated region fallthrough
CT: control target
= control target key end

     0   :  { %14 = vsyncpa [#allocation3], 0  ;;  %v319_v1 = vmov 0.0   ;;  %vm320_vm0 = vmmov 0   ;;  %vm31_vm1 = vcmask 261120   ;;  %s425_s0 = inlined_call_operand.vmem [shape: f32[16,32], index: 0, kind: input, shape index: {}]   ;;  %s426_s1 = inlined_call_operand.vmem [shape: f32[2,16], index: 1, kind: input, shape index: {}]   ;;  %s427_s2 = inlined_call_operand.vmem [shape: bf16[32,32], index: 2, kind: input, shape index: {}]   ;;  %s428_s3 = inlined_call_operand.vmem [shape: f32[1,32], index: 3, kind: input, shape index: {}]   ;;  %s429_s4 = inlined_call_operand.vmem [shape: bf16[16,32], index: 4, kind: input, shape index: {}]   ;;  %s430_s5 = inlined_call_operand.vmem [shape: f32[1,32], index: 5, kind: input, shape index: {}]   ;;  %s431_s6 = inlined_call_operand.hbm [shape: f32[2,16], index: 6, kind: output, shape index: {0}]   ;;  %s432_s7 = inlined_call_operand.hbm [shape: f32[2,16], index: 7, kind: output, shape index: {1}]   ;;  %s433_s8 = inlined_call_operand.vmem [shape: f32[2,32], index: 8, kind: output, shape index: {2}]  }
   0x1   :  { %v266_v0 = vld [vmem:[%s427_s2] sm:$0xff]   ;;  %247 = vmatprep.subr.bf16.mxu0 %v319_v1  ;;  %255 = vmatprep.subr.bf16.mxu1 %v319_v1  ;;  %v267_v2 = vld [vmem:[%s427_s2 + $0x8] sm:$0xff]  }
   0x2   :  { %248 = vmatpush3.bf16.msra.mxu0 %v266_v0  ;;  %251 = vmatprep.mubr.msk.bf16.mxu0 %vm320_vm0, %v319_v1  ;;  %v29_v3 = vld [vmem:[%s425_s0] sm:$0xff]  ;;  %v30_v4 = vld [vmem:[%s425_s0 + $0x8] sm:$0xff] }
   0x3   :  { %249 = vmatprep.subr.bf16.mxu0 %v319_v1  ;;  %v32_v5 = vsel %vm31_vm1, %v29_v3, 0.0  ;;  %v39_v6 = vsel %vm31_vm1, %v30_v4, 0.0  ;;  %257 = vmatprep.mubr.msk.bf16.mxu1 %vm320_vm0, %v319_v1 }
   0x4   :  { %v33_v7 = vrot.slane %v32_v5, 4  ;;  %v40_v8 = vrot.slane %v39_v6, 4 }
   0x5   :  { %15 = vsyncpa [#allocation5], 0  ;;  %vm66_vm2 = vcmask 1041409   ;;  %v235_v27 = vld [vmem:[%s428_s3] ss:$0 sm:$0xff]  ;;  %vm194_vm3 = vcmask 123904  }
   0x6   :  { %250 = vmatpush3.bf16.msra.mxu0 %v267_v2  ;;  %v34_v9 = vadd.f32 %v33_v7, %v32_v5  ;;  %v41_v10 = vadd.f32 %v40_v8, %v39_v6  ;;  %v268_v35 = vld [vmem:[%s429_s4] sm:$0xff]   ;;  %s321_s15 = smov 112   ;;  %vm150_vm4 = vcmask 130048   ;;  %s322_s4 = smov [#allocation2]  }
   0x7   :  { %256 = vmatpush3.bf16.msra.mxu1 %v268_v35  ;;  %v127_v37 = vld [vmem:[%s426_s1] sm:$0x3]  ;;  %s209_s17 = sshll.u32 %s322_s4, 4  ;;  %s323_s18 = smov [#allocation4]   ;;  %s210_s17 = int_to_ptr.vmem [resolvable:$true] %s209_s17 }
   0x8   :  { %v35_v11 = vrot.slane %v34_v9, 2  ;;  %v42_v12 = vrot.slane %v41_v10, 2  ;;  %s219_s19 = sshll.u32 %s323_s18, 4  ;;  %s271_s20 = scalar_lea.vmem %s210_s17, 32  ;;  %s220_s19 = int_to_ptr.vmem [resolvable:$true] %s219_s19 }
   0x9   :  { %p272_p0 = scmp.ne.s32.totalorder %s210_s17, %s271_s20  ;;  %p276_p1 = scmp.lt.s32.totalorder %s210_s17, %s210_s17 }
   0xa   :  { %v36_v13 = vadd.f32 %v35_v11, %v34_v9  ;;  %v43_v14 = vadd.f32 %v42_v12, %v41_v10  ;;  %p277_p2 = scmp.lt.s32.totalorder %s271_s20, %s271_s20 }
   0xc   :  { %v37_v15 = vrot.slane %v36_v13, 1  ;;  %v44_v16 = vrot.slane %v43_v14, 1  ;;  %p278_p3 = por %p277_p2, %p276_p1 }
   0xe   :  { %v38_v17 = vadd.f32 %v37_v15, %v36_v13  ;;  %v45_v18 = vadd.f32 %v44_v16, %v43_v14  ;;  %p279_p4 = pnand %p278_p3, %p272_p0 }
  0x10   :  { %v47_v19 = vmul.f32 0.125, %v38_v17  ;;  %v48_v20 = vmul.f32 0.125, %v45_v18 }
  0x12   :  { %v49_v21 = vpack.c.bf16 %v47_v19, %v47_v19  ;;  %v50_v22 = vpack.c.bf16 %v48_v20, %v48_v20 }
  0x14   :  { %v64_v23 = vunpack.c.l.b16 %v49_v21  ;;  %v65_v24 = vunpack.c.l.b16 %v50_v22 }
  0x16   :  { %v67_v25 = vsel %vm66_vm2, %v65_v24, %v64_v23 }
  0x17   :  { %v68_v26 = vpack.c.b16 %v67_v25, %v67_v25 }
  0x19   :  { %252 = vmatmul.mubr.msk.bf16.vlgmr.msra.gmra.mrb[0].mxu0 %vm31_vm1, %v68_v26 }
  0xec   :  { %v118_v28 = vpop.f32.mrb[0].mxu0 }
  0xed   :  { %v119_v29 = vadd.f32 %v235_v27, %v118_v28  ;;  %v253_v30 = vpop.f32.mrb[1].mxu0 }
  0xee   :  { %v121_v31 = vpop.f32.mrb[2].mxu0 }
  0xef   :  { %v124_v32 = vmul.f32 0.5, %v119_v29  ;;  %v254_v33 = vpop.f32.mrb[3].mxu0  ;;  %195 = vst.msk [vmem:[#allocation2] sm:$0x3] %vm194_vm3, %v119_v29 }
  0xf1   :  { %v125_v34 = vmul.f32 1.442695, %v124_v32 }
  0xf3   :  { %269 = vpow2.f32 %v125_v34 }
  0xfd   :  { %v270_v36 = vpop.eup %269 }
  0xfe   :  { %129 = vrot.lane.b32.xlu0 %v270_v36, %s321_s15 }
 0x102   :  { %197 = vrot.lane.b32.xlu0 %v119_v29, %s321_s15 }
 0x170   :  { %v130_v38 = vpop.permute.xlu0 %129 }
 0x171   :  { %v132_v39 = vmul.f32 %v130_v38, %v127_v37 }
 0x173   :  { %v133_v40 = vadd.f32 %v132_v39, %v119_v29 }
 0x174   :  { %v198_v41 = vpop.permute.xlu0 %197 }
 0x175   :  { %v134_v42 = vpack.c.bf16 %v133_v40, %v133_v40  ;;  %200 = vst.msk [vmem:[#allocation4] sm:$0x3] %vm194_vm3, %v198_v41 }
 0x177   :  { %258 = vmatmul.mubr.msk.bf16.vlgmr.msra.gmra.mrb[0].mxu1 %vm150_vm4, %v134_v42 }
 0x178   :  { %282 = shalt.err (!%p279_p4)
}
 0x179   :  { %s283_s22 = scalar_lea.hbm %s431_s6, 32 }
 0x17a   :  { %p284_p5 = scmp.ne.s32.totalorder %s431_s6, %s283_s22  ;;  %p287_p6 = scmp.lt.u32.totalorder %s283_s22, %s431_s6 }
 0x17c   :  { %p289_p7 = pnand %p287_p6, %p284_p5 }
 0x17e   :  { %292 = shalt.err (!%p289_p7)
}
 0x17f   :  { %212 = dma.vmem_to_hbm [thread:$0]  %s210_s17, 32, %s431_s6, [#allocation3]  }
 0x180   :  { %s293_s29 = scalar_lea.vmem %s220_s19, 32  ;;  %p298_p9 = scmp.lt.s32.totalorder %s220_s19, %s220_s19 }
 0x181   :  { %p294_p8 = scmp.ne.s32.totalorder %s220_s19, %s293_s29  ;;  %p299_p10 = scmp.lt.s32.totalorder %s293_s29, %s293_s29 }
 0x183   :  { %p300_p11 = por %p299_p10, %p298_p9 }
 0x185   :  { %p301_p12 = pnand %p300_p11, %p294_p8 }
 0x187   :  { %304 = shalt.err (!%p301_p12)
}
 0x188   :  { %s305_s10 = scalar_lea.hbm %s432_s7, 32 }
 0x189   :  { %p306_p13 = scmp.ne.s32.totalorder %s432_s7, %s305_s10  ;;  %p309_p0 = scmp.lt.u32.totalorder %s305_s10, %s432_s7 }
 0x18b   :  { %p311_p1 = pnand %p309_p0, %p306_p13 }
 0x18d   :  { %314 = shalt.err (!%p311_p1)
}
 0x18e   :  { %222 = dma.vmem_to_hbm [thread:$0]  %s220_s19, 32, %s432_s7, [#allocation5]   ;;  %v239_v43 = vld [vmem:[%s430_s5] ss:$0 sm:$0xff]  ;;  %vm201_vm5 = vcmask 254976  }
 0x24a   :  { %v188_v44 = vpop.f32.mrb[0].mxu1 }
 0x24b   :  { %v189_v45 = vadd.f32 %v239_v43, %v188_v44  ;;  %v259_v46 = vpop.f32.mrb[1].mxu1 }
 0x24c   :  { %v191_v47 = vpop.f32.mrb[2].mxu1 }
 0x24d   :  { %202 = vst.msk [vmem:[%s433_s8] sm:$0x3] %vm201_vm5, %v189_v45  ;;  %v260_v48 = vpop.f32.mrb[3].mxu1 }
 0x24e   :  { %315 = dma.done.wait [#allocation3], 32  }
 0x24f   :  { %316 = vsyncadd [#allocation3], 4294967264 }
 0x250   :  { %317 = dma.done.wait [#allocation5], 32  }
 0x251   :  { %318 = vsyncadd [#allocation5], 4294967264 }
 0x252   :  { %233 = vsyncpa [#allocation3], 1 }
 0x253   :  { %234 = vsyncpa [#allocation5], 1 }

// kernel: transformer_vae_forward.4
= control target key start
LH: loop header
LB: loop body
LE: loop exit
PB: predicated region body
PF: predicated region fallthrough
CT: control target
= control target key end

     0   :  { %s2558_s29 = smov 0   ;;  %s2887_s0 = inlined_call_operand.vmem [shape: f32[16,32], index: 0, kind: input, shape index: {}]   ;;  %s2888_s1 = inlined_call_operand.vmem [shape: f32[2,8], index: 1, kind: input, shape index: {}]   ;;  %s2889_s2 = inlined_call_operand.vmem [shape: bf16[2,32,96], index: 2, kind: input, shape index: {}]   ;;  %s2890_s3 = inlined_call_operand.vmem [shape: f32[2,1,96], index: 3, kind: input, shape index: {}]   ;;  %s2891_s4 = inlined_call_operand.vmem [shape: bf16[2,32,32], index: 4, kind: input, shape index: {}]   ;;  %s2892_s5 = inlined_call_operand.vmem [shape: f32[2,1,32], index: 5, kind: input, shape index: {}]   ;;  %s2893_s6 = inlined_call_operand.vmem [shape: bf16[2,32,64], index: 6, kind: input, shape index: {}]   ;;  %s2894_s7 = inlined_call_operand.vmem [shape: f32[2,1,64], index: 7, kind: input, shape index: {}]   ;;  %s2895_s8 = inlined_call_operand.vmem [shape: bf16[2,64,32], index: 8, kind: input, shape index: {}]   ;;  %s2896_s9 = inlined_call_operand.vmem [shape: f32[2,1,32], index: 9, kind: input, shape index: {}]   ;;  %s2897_s10 = inlined_call_operand.vmem [shape: f32[2,1,32], index: 10, kind: input, shape index: {}]   ;;  %s2898_s11 = inlined_call_operand.vmem [shape: f32[2,1,32], index: 11, kind: input, shape index: {}]   ;;  %s2899_s12 = inlined_call_operand.vmem [shape: f32[2,1,32], index: 12, kind: input, shape index: {}]   ;;  %s2900_s13 = inlined_call_operand.vmem [shape: f32[2,1,32], index: 13, kind: input, shape index: {}]   ;;  %s2901_s14 = inlined_call_operand.vmem [shape: f32[16,32], index: 14, kind: output, shape index: {}]  }
   0x1   :  { %2904 = sst [smem:[#allocation4_spill]] %s2888_s1 }
   0x2   :  { %2905 = sst [smem:[#allocation5_spill]] %s2889_s2 }
   0x3   :  { %2906 = sst [smem:[#allocation6_spill]] %s2891_s4 }
   0x4   :  { %2907 = sst [smem:[#allocation7_spill]] %s2893_s6 }
   0x5   :  { %2908 = sst [smem:[#allocation8_spill]] %s2894_s7 }
   0x6   :  { %2909 = sst [smem:[#allocation9_spill]] %s2901_s14 }
   0x7 LB: > { %2910 = sst [smem:[#allocation3_spill]] %s2464_s29  ;;  %s2564_s30 = sadd.s32 4294967295, %s2464_s29   ;;  %s2464_s29 = sphi %s2558_s29, %s24_s29  }
   0x8   : > { %p2135_p0 = scmp.ge.s32.totalorder %s2464_s29, 1  ;;  %p501_p1 = scmp.lt.s32.totalorder %s2464_s29, 3 }
   0xa   : > { %p502_p2 = pnand %p2135_p0, %p501_p1 }
   0xb   : > { %p581_p3 = scmp.lt.s32.totalorder (!%p502_p2), %s2564_s30, 1  ;;  %s2911_s2 = sld [smem:[#allocation5_spill]] (!%p502_p2) }
   0xc   : > { %505 = sbr.rel (%p502_p2) target bundleno = 4150 (0x1036), region = 76  ;;  %s2912_s4 = sld [smem:[#allocation6_spill]] (!%p502_p2) }
   0xd   : > { %s2913_s6 = sld [smem:[#allocation7_spill]] (!%p502_p2)  ;;  %p2144_p4 = scmp.ne.s32.totalorder (!%p502_p2), %s2564_s30, 0 }
  0x13   : > { %s2570_s15 = scalar_select %p581_p3, %s2564_s30, 1 }
  0x14   : > { %629 = sbr.rel (%p2144_p4) target bundleno = 27 (0x1b), region = 80  ;;  %v630_v0 = vld [vmem:[%s2887_s0] sm:$0xff] (!%p2144_p4)  ;;  %vm632_vm0 = vcmask (!%p2144_p4), 261120   ;;  %v631_v1 = vld [vmem:[%s2887_s0 + $0x8] sm:$0xff] (!%p2144_p4) }
  0x15   : > { %s2186_s16 = sshll.u32 %s2570_s15, 4  ;;  %s2189_s20 = sshll.u32 %s2570_s15, 5  ;;  %633 = vst.msk [vmem:[#allocation2] sm:$0xff] (!%p2144_p4), %vm632_vm0, %v630_v0  ;;  %634 = vst.msk [vmem:[#allocation2 + $0x8] sm:$0xff] (!%p2144_p4), %vm632_vm0, %v631_v1 }
  0x16   : > { %s585_s22 = scalar_lea.vmem %s2911_s2, %s2186_s16  ;;  %s2583_s25 = scalar_lea.vmem %s2912_s4, %s2186_s16 }
  0x17   : > { %s2592_s1 = scalar_lea.vmem %s2913_s6, %s2186_s16  ;;  %s2602_s23 = scalar_lea.vmem %s2895_s8, %s2189_s20 }
  0x18   : > { %s612_s26 = scalar_lea.vmem %s2896_s9, %s2570_s15  ;;  %s615_s14 = scalar_lea.vmem %s2897_s10, %s2570_s15 }
  0x19   : > { %s618_s6 = scalar_lea.vmem %s2898_s11, %s2570_s15  ;;  %s621_s19 = scalar_lea.vmem %s2899_s12, %s2570_s15 }
  0x1a   : > { %s624_s20 = scalar_lea.vmem %s2900_s13, %s2570_s15 }
  0x1b PF: > { %v2408_v2 = vld [vmem:[%s585_s22] sm:$0xff]   ;;  %v2466_v3 = vmov 0.0   ;;  %v2409_v4 = vld [vmem:[%s585_s22 + $0x8] sm:$0xff]   ;;  %vm2467_vm1 = vmmov 0   ;;  %vm687_vm2 = vcmask 261120   ;;  %s2915_s27 = scalar_lea.vmem %s2890_s3, %s2570_s15  ;;  %s2468_s29 = smov 96   ;;  %v644_v23 = vlaneseq }
  0x1c   : > { %2236 = vmatprep.subr.bf16.mxu0 %v2466_v3  ;;  %2244 = vmatprep.subr.bf16.mxu1 %v2466_v3  ;;  %v2635_v5 = vld [vmem:[#allocation2] sm:$0xff]  ;;  %v2637_v6 = vld [vmem:[#allocation2 + $0x8] sm:$0xff]  ;;  %vm737_vm3 = vcmask 64512   ;;  %v2469_v21 = vmov 1966171168   ;;  %s2916_s18 = sld [smem:[#allocation4_spill]] }
  0x1d   : > { %2237 = vmatpush3.bf16.msra.mxu0 %v2408_v2  ;;  %2240 = vmatprep.mubr.msk.bf16.mxu0 %vm2467_vm1, %v2466_v3  ;;  %v663_v7 = vpack.c.bf16 %v2637_v6, %v2635_v5  ;;  %v2145_v8 = vld [vmem:[%s2915_s27] ss:$0 sm:$0xff]  ;;  %v642_v22 = vunpack.c.l.s4 %v2469_v21  ;;  %v645_v26 = vshrl.u32 %v644_v23, 7  ;;  %s2470_s2 = smov 64   ;;  %s2471_s4 = smov 88   ;;  %vm876_vm5 = vcmask 1043456  }
  0x1e   : > { %2238 = vmatprep.subr.bf16.mxu0 %v2466_v3  ;;  %2246 = vmatprep.mubr.msk.bf16.mxu1 %vm2467_vm1, %v2466_v3  ;;  %s2472_s21 = smov 120   ;;  %s2473_s28 = smov 56   ;;  %vm1666_vm6 = vcmask 130048   ;;  %vm1669_vm7 = vcmask 195584   ;;  %vm1897_vm8 = vcmask 523264  }
  0x1f   : > { %v643_v25 = vunpack.c.0.s8 %v642_v22  ;;  %v837_v31 = vsub.s32 0, %v645_v26  ;;  %s2474_s24 = smov 80   ;;  %s2475_s7 = smov 112  }
  0x20   : > { %s2476_s22 = smov 48   ;;  %s2477_s27 = smov 72  }
  0x21   : > { %2239 = vmatpush3.bf16.msra.mxu0 %v2409_v4  ;;  %v646_v27 = vsub.s32 %v643_v25, %v645_v26  ;;  %s2479_s16 = smov 40   ;;  %s2480_s17 = smov 8  }
  0x22   : > { %2250 = vmatprep.subr.bf16.mxu0 %v2466_v3  ;;  %v637_v24 = vld [vmem:[%s2916_s18] sm:$0x3]  ;;  %s2481_s18 = smov 16   ;;  %p2183_p5 = scmp.ne.s32.totalorder %s2564_s30, 1 }
  0x23   : > { %vm638_vm4 = vcmp.eq.f32.partialorder %v637_v24, 0.0 }
  0x24   : > { %2241 = vmatmul.mubr.msk.bf16.vlgmr.msra.gmra.mrb[0].mxu0 %vm687_vm2, %v663_v7  ;;  %v639_v28 = vsel %vm638_vm4, -1e+30, %v2466_v3 }
  0x25   : > { %2252 = vmatprep.mubr.msk.bf16.mxu0 %vm2467_vm1, %v2466_v3  ;;  %v647_v29 = vrot.slane %v639_v28, %v646_v27 }
  0x27   : > { %v655_v30 = vrot.slane %v647_v29, %v646_v27  ;;  %v648_v32 = vcombine.high %v647_v29, %v647_v29 }
  0x29   : > { %v2675_v33 = vrot.slane %v655_v30, %v837_v31  ;;  %v662_v34 = vrot.slane %v648_v32, %v646_v27 }
  0x2b   : > { %v2678_v41 = vrot.slane %v662_v34, %v837_v31 }
  0xf7   : > { %v725_v9 = vpop.f32.mrb[0].mxu0 }
  0xf8   : > { %v726_v10 = vadd.f32 %v2145_v8, %v725_v9  ;;  %v2242_v11 = vpop.f32.mrb[1].mxu0 }
  0xf9   : > { %v728_v12 = vpop.f32.mrb[2].mxu0 }
  0xfa   : > { %v2653_v13 = vpack.c.bf16 %v726_v10, %v726_v10  ;;  %v729_v14 = vadd.f32 %v2145_v8, %v728_v12  ;;  %v2243_v15 = vpop.f32.mrb[3].mxu0 }
  0xfc   : > { %735 = vrot.lane.b32.xlu0 %v2653_v13, %s2468_s29  ;;  %v2656_v16 = vpack.c.bf16 %v729_v14, %v729_v14 }
 0x100   : > { %785 = vrot.lane.b32.xlu0 %v2656_v16, %s2468_s29  ;;  %s2478_s29 = smov 104  }
 0x16e   : > { %v736_v17 = vpop.permute.xlu0 %735 }
 0x16f   : > { %v742_v18 = vsel %vm737_vm3, %v736_v17, 0 }
 0x170   : > { %2245 = vmatpush3.bf16.xpose.msra.mxu1 %v742_v18 }
 0x171   : > { %2256 = vmatprep.subr.bf16.mxu1 %v2466_v3 }
 0x172   : > { %v786_v19 = vpop.permute.xlu0 %785 }
 0x173   : > { %v791_v20 = vsel %vm737_vm3, %v786_v19, 0 }
 0x174   : > { %2251 = vmatpush3.bf16.xpose.msra.mxu0 %v791_v20 }
 0x175   : > { %2262 = vmatprep.subr.bf16.mxu0 %v2466_v3 }
 0x177   : > { %2247 = vmatmul.mubr.msk.bf16.vlgmr.msra.gmra.mrb[0].mxu1 %vm737_vm3, %v2653_v13 }
 0x178   : > { %2258 = vmatprep.mubr.msk.bf16.mxu1 %vm2467_vm1, %v2466_v3 }
 0x17b   : > { %2253 = vmatmul.mubr.msk.bf16.vlgmr.msra.gmra.mrb[4].mxu0 %vm737_vm3, %v2656_v16 }
 0x17c   : > { %2264 = vmatprep.mubr.msk.bf16.mxu0 %vm2467_vm1, %v2466_v3 }
 0x24a   : > { %v778_v35 = vpop.f32.mrb[0].mxu1 }
 0x24b   : > { %v833_v36 = vmul.f32 0.35355338, %v778_v35  ;;  %v2248_v37 = vpop.f32.mrb[1].mxu1 }
 0x24c   : > { %v781_v38 = vpop.f32.mrb[2].mxu1 }
 0x24d   : > { %v2249_v39 = vpop.f32.mrb[3].mxu1  ;;  %v845_v40 = vadd.f32 %v2675_v33, %v833_v36 }
 0x24e   : > { %v827_v42 = vpop.f32.mrb[4].mxu0 }
 0x24f   : > { %v834_v43 = vmul.f32 0.35355338, %v827_v42  ;;  %v2254_v44 = vpop.f32.mrb[5].mxu0  ;;  %v847_v45 = vsel %vm737_vm3, %v845_v40, -inf }
 0x250   : > { %848 = vmax.xlane.f32.xlu1 %v847_v45  ;;  %v830_v46 = vpop.f32.mrb[6].mxu0 }
 0x251   : > { %v2255_v47 = vpop.f32.mrb[7].mxu0  ;;  %v846_v48 = vadd.f32 %v2678_v41, %v834_v43 }
 0x253   : > { %v850_v49 = vsel %vm737_vm3, %v846_v48, -inf }
 0x254   : > { %851 = vmax.xlane.f32.xlu1 %v850_v49 }
 0x265   : > { %871 = vrot.lane.b32.xlu1 %v2653_v13, %s2470_s2 }
 0x269   : > { %920 = vrot.lane.b32.xlu1 %v2656_v16, %s2470_s2  ;;  %s2482_s2 = smov 24  }
 0x26d   : > { %970 = vrot.lane.b32.xlu1 %v2653_v13, %s2471_s4 }
 0x2dd   : > { %v849_v50 = vpop.xlane.xlu1 %848 }
 0x2de   : > { %v853_v51 = vsub.f32 %v845_v40, %v849_v50 }
 0x2e0   : > { %v855_v52 = vmul.f32 1.442695, %v853_v51 }
 0x2e1   : > { %v852_v53 = vpop.xlane.xlu1 %851 }
 0x2e2   : > { %2418 = vpow2.f32 %v855_v52  ;;  %v854_v54 = vsub.f32 %v846_v48, %v852_v53 }
 0x2e4   : > { %v857_v55 = vmul.f32 1.442695, %v854_v54 }
 0x2e5   : > { %v872_v56 = vpop.permute.xlu1 %871 }
 0x2e6   : > { %2420 = vpow2.f32 %v857_v55  ;;  %v878_v57 = vsel %vm876_vm5, %v872_v56, 0 }
 0x2e7   : > { %2257 = vmatpush3.bf16.msra.mxu1 %v878_v57 }
 0x2e8   : > { %2268 = vmatprep.subr.bf16.mxu1 %v2466_v3 }
 0x2e9   : > { %v921_v58 = vpop.permute.xlu1 %920 }
 0x2ea   : > { %v926_v59 = vsel %vm876_vm5, %v921_v58, 0 }
 0x2eb   : > { %2263 = vmatpush3.bf16.msra.mxu0 %v926_v59 }
 0x2ec   : > { %v2419_v60 = vpop.eup %2418  ;;  %2274 = vmatprep.subr.bf16.mxu0 %v2466_v3 }
 0x2ed   : > { %v859_v61 = vsel %vm737_vm3, %v2419_v60, 0.0  ;;  %v971_v0 = vpop.permute.xlu1 %970 }
 0x2ee   : > { %860 = vadd.xlane.f32.xlu0 %v859_v61  ;;  %v976_v10 = vsel %vm737_vm3, %v971_v0, 0 }
 0x2f0   : > { %v2421_v62 = vpop.eup %2420 }
 0x2f1   : > { %v862_v63 = vsel %vm737_vm3, %v2421_v62, 0.0 }
 0x2f2   : > { %863 = vadd.xlane.f32.xlu1 %v862_v63 }
 0x303   : > { %1020 = vrot.lane.b32.xlu1 %v2656_v16, %s2471_s4 }
 0x304   : > { %968 = vrot.lane.b32.xlu0 %v2653_v13, %s2472_s21 }
 0x307   : > { %1018 = vrot.lane.b32.xlu1 %v2656_v16, %s2472_s21  ;;  %s2917_s21 = scalar_lea.vmem %s2892_s5, %s2570_s15 }
 0x37b   : > { %v861_v1 = vpop.xlane.xlu0 %860 }
 0x37c   : > { %2422 = vrcp.f32 %v861_v1 }
 0x37f   : > { %v864_v2 = vpop.xlane.xlu1 %863  ;;  %v969_v17 = vpop.permute.xlu0 %968 }
 0x380   : > { %2424 = vrcp.f32 %v864_v2 }
 0x383   : > { %v1021_v12 = vpop.permute.xlu1 %1020 }
 0x384   : > { %v1026_v15 = vsel %vm737_vm3, %v1021_v12, 0 }
 0x386   : > { %v2423_v4 = vpop.eup %2422 }
 0x387   : > { %v866_v7 = vmul.f32 %v2423_v4, %v2419_v60  ;;  %v1019_v18 = vpop.permute.xlu1 %1018 }
 0x389   : > { %v869_v8 = vpack.c.bf16 %v866_v7, %v866_v7 }
 0x38a   : > { %v2425_v9 = vpop.eup %2424 }
 0x38b   : > { %v868_v11 = vmul.f32 %v2425_v9, %v2421_v62  ;;  %2259 = vmatmul.mubr.msk.bf16.vlgmr.msra.gmra.mrb[4].mxu1 %vm737_vm3, %v869_v8 }
 0x38c   : > { %2269 = vmatpush3.bf16.xpose.msra.mxu1 %v976_v10  ;;  %2270 = vmatprep.mubr.msk.bf16.mxu1 %vm2467_vm1, %v2466_v3 }
 0x38d   : > { %v870_v14 = vpack.c.bf16 %v868_v11, %v868_v11  ;;  %2280 = vmatprep.subr.bf16.mxu1 %v2466_v3 }
 0x38f   : > { %2265 = vmatmul.mubr.msk.bf16.vlgmr.msra.gmra.mrb[8].mxu0 %vm737_vm3, %v870_v14 }
 0x390   : > { %2275 = vmatpush3.bf16.xpose.msra.mxu0 %v1026_v15  ;;  %2276 = vmatprep.mubr.msk.bf16.mxu0 %vm2467_vm1, %v2466_v3 }
 0x391   : > { %2286 = vmatprep.subr.bf16.mxu0 %v2466_v3 }
 0x393   : > { %2271 = vmatmul.mubr.msk.bf16.vlgmr.msra.gmra.mrb[8].mxu1 %vm737_vm3, %v969_v17 }
 0x394   : > { %2282 = vmatprep.mubr.msk.bf16.mxu1 %vm2467_vm1, %v2466_v3 }
 0x397   : > { %2277 = vmatmul.mubr.msk.bf16.vlgmr.msra.gmra.mrb[12].mxu0 %vm737_vm3, %v1019_v18 }
 0x398   : > { %2288 = vmatprep.mubr.msk.bf16.mxu0 %vm2467_vm1, %v2466_v3 }
 0x45e   : > { %v2711_v19 = vpop.f32.mrb[4].mxu1 }
 0x45f   : > { %v2260_v20 = vpop.f32.mrb[5].mxu1 }
 0x460   : > { %v917_v21 = vpop.f32.mrb[6].mxu1 }
 0x461   : > { %v2261_v22 = vpop.f32.mrb[7].mxu1 }
 0x462   : > { %v2713_v23 = vpop.f32.mrb[8].mxu0 }
 0x463   : > { %v2266_v24 = vpop.f32.mrb[9].mxu0 }
 0x464   : > { %v965_v25 = vpop.f32.mrb[10].mxu0 }
 0x465   : > { %v2267_v26 = vpop.f32.mrb[11].mxu0 }
 0x466   : > { %v1012_v27 = vpop.f32.mrb[8].mxu1 }
 0x467   : > { %v1068_v28 = vmul.f32 0.35355338, %v1012_v27  ;;  %v2272_v29 = vpop.f32.mrb[9].mxu1 }
 0x468   : > { %v1015_v30 = vpop.f32.mrb[10].mxu1 }
 0x469   : > { %v2273_v31 = vpop.f32.mrb[11].mxu1  ;;  %v1070_v32 = vadd.f32 %v1068_v28, %v2675_v33 }
 0x46a   : > { %v1062_v34 = vpop.f32.mrb[12].mxu0 }
 0x46b   : > { %v1069_v35 = vmul.f32 0.35355338, %v1062_v34  ;;  %v2278_v36 = vpop.f32.mrb[13].mxu0  ;;  %v1072_v37 = vsel %vm737_vm3, %v1070_v32, -inf }
 0x46c   : > { %1073 = vmax.xlane.f32.xlu1 %v1072_v37  ;;  %v1065_v38 = vpop.f32.mrb[14].mxu0 }
 0x46d   : > { %v2279_v39 = vpop.f32.mrb[15].mxu0  ;;  %v1071_v40 = vadd.f32 %v1069_v35, %v2678_v41 }
 0x46f   : > { %v1075_v42 = vsel %vm737_vm3, %v1071_v40, -inf }
 0x470   : > { %1076 = vmax.xlane.f32.xlu0 %v1075_v42 }
 0x47d   : > { %1096 = vrot.lane.b32.xlu1 %v2653_v13, %s2473_s28 }
 0x481   : > { %1194 = vrot.lane.b32.xlu1 %v2653_v13, %s2474_s24 }
 0x486   : > { %1144 = vrot.lane.b32.xlu0 %v2656_v16, %s2473_s28 }
 0x48a   : > { %1192 = vrot.lane.b32.xlu0 %v2653_v13, %s2475_s7 }
 0x4f9   : > { %v1074_v43 = vpop.xlane.xlu1 %1073 }
 0x4fa   : > { %v1078_v44 = vsub.f32 %v1070_v32, %v1074_v43 }
 0x4fc   : > { %v1080_v45 = vmul.f32 1.442695, %v1078_v44 }
 0x4fd   : > { %v1097_v46 = vpop.permute.xlu1 %1096  ;;  %v1077_v47 = vpop.xlane.xlu0 %1076 }
 0x4fe   : > { %2426 = vpow2.f32 %v1080_v45  ;;  %v1102_v48 = vsel %vm876_vm5, %v1097_v46, 0  ;;  %v1079_v49 = vsub.f32 %v1071_v40, %v1077_v47 }
 0x4ff   : > { %2281 = vmatpush3.bf16.msra.mxu1 %v1102_v48 }
 0x500   : > { %v1082_v50 = vmul.f32 1.442695, %v1079_v49  ;;  %2292 = vmatprep.subr.bf16.mxu1 %v2466_v3 }
 0x501   : > { %v1145_v51 = vpop.permute.xlu0 %1144  ;;  %v1195_v57 = vpop.permute.xlu1 %1194 }
 0x502   : > { %2428 = vpow2.f32 %v1082_v50  ;;  %v1150_v52 = vsel %vm876_vm5, %v1145_v51, 0  ;;  %v1200_v0 = vsel %vm737_vm3, %v1195_v57, 0 }
 0x503   : > { %2287 = vmatpush3.bf16.msra.mxu0 %v1150_v52 }
 0x504   : > { %2298 = vmatprep.subr.bf16.mxu0 %v2466_v3 }
 0x505   : > { %v1193_v8 = vpop.permute.xlu0 %1192 }
 0x508   : > { %v2427_v53 = vpop.eup %2426 }
 0x509   : > { %v1084_v54 = vsel %vm737_vm3, %v2427_v53, 0.0 }
 0x50a   : > { %1085 = vadd.xlane.f32.xlu1 %v1084_v54 }
 0x50c   : > { %v2429_v55 = vpop.eup %2428 }
 0x50d   : > { %v1087_v56 = vsel %vm737_vm3, %v2429_v55, 0.0 }
 0x50e   : > { %1088 = vadd.xlane.f32.xlu1 %v1087_v56 }
 0x51f   : > { %1244 = vrot.lane.b32.xlu1 %v2656_v16, %s2474_s24 }
 0x523   : > { %1242 = vrot.lane.b32.xlu1 %v2656_v16, %s2475_s7 }
 0x597   : > { %v1086_v58 = vpop.xlane.xlu1 %1085 }
 0x598   : > { %2430 = vrcp.f32 %v1086_v58 }
 0x59b   : > { %v1089_v59 = vpop.xlane.xlu1 %1088 }
 0x59c   : > { %2432 = vrcp.f32 %v1089_v59 }
 0x59f   : > { %v1245_v2 = vpop.permute.xlu1 %1244 }
 0x5a0   : > { %v1250_v7 = vsel %vm737_vm3, %v1245_v2, 0 }
 0x5a2   : > { %v2431_v60 = vpop.eup %2430 }
 0x5a3   : > { %v1091_v61 = vmul.f32 %v2431_v60, %v2427_v53  ;;  %v1243_v9 = vpop.permute.xlu1 %1242 }
 0x5a5   : > { %v1094_v62 = vpack.c.bf16 %v1091_v61, %v1091_v61 }
 0x5a6   : > { %v2433_v63 = vpop.eup %2432 }
 0x5a7   : > { %v1093_v1 = vmul.f32 %v2433_v63, %v2429_v55  ;;  %2283 = vmatmul.mubr.msk.bf16.vlgmr.msra.gmra.mrb[12].mxu1 %vm737_vm3, %v1094_v62 }
 0x5a8   : > { %2293 = vmatpush3.bf16.xpose.msra.mxu1 %v1200_v0  ;;  %2294 = vmatprep.mubr.msk.bf16.mxu1 %vm2467_vm1, %v2466_v3 }
 0x5a9   : > { %v1095_v4 = vpack.c.bf16 %v1093_v1, %v1093_v1  ;;  %2304 = vmatprep.subr.bf16.mxu1 %v2466_v3 }
 0x5ab   : > { %2289 = vmatmul.mubr.msk.bf16.vlgmr.msra.gmra.mrb[16].mxu0 %vm737_vm3, %v1095_v4 }
 0x5ac   : > { %2299 = vmatpush3.bf16.xpose.msra.mxu0 %v1250_v7  ;;  %2300 = vmatprep.mubr.msk.bf16.mxu0 %vm2467_vm1, %v2466_v3 }
 0x5ad   : > { %2310 = vmatprep.subr.bf16.mxu0 %v2466_v3 }
 0x5af   : > { %2295 = vmatmul.mubr.msk.bf16.vlgmr.msra.gmra.mrb[16].mxu1 %vm737_vm3, %v1193_v8 }
 0x5b0   : > { %2306 = vmatprep.mubr.msk.bf16.mxu1 %vm2467_vm1, %v2466_v3 }
 0x5b3   : > { %2301 = vmatmul.mubr.msk.bf16.vlgmr.msra.gmra.mrb[20].mxu0 %vm737_vm3, %v1243_v9 }
 0x5b4   : > { %2312 = vmatprep.mubr.msk.bf16.mxu0 %vm2467_vm1, %v2466_v3 }
 0x67a   : > { %v2747_v10 = vpop.f32.mrb[12].mxu1 }
 0x67b   : > { %v2284_v11 = vpop.f32.mrb[13].mxu1 }
 0x67c   : > { %v1141_v12 = vpop.f32.mrb[14].mxu1 }
 0x67d   : > { %v2285_v14 = vpop.f32.mrb[15].mxu1 }
 0x67e   : > { %v2749_v15 = vpop.f32.mrb[16].mxu0 }
 0x67f   : > { %v2393_v17 = vpack.i.bf16 %v2749_v15, %v2747_v10  ;;  %v2290_v18 = vpop.f32.mrb[17].mxu0 }
 0x680   : > { %v1189_v20 = vpop.f32.mrb[18].mxu0 }
 0x681   : > { %v2291_v21 = vpop.f32.mrb[19].mxu0 }
 0x682   : > { %v1236_v22 = vpop.f32.mrb[16].mxu1 }
 0x683   : > { %v1292_v24 = vmul.f32 0.35355338, %v1236_v22  ;;  %v2296_v25 = vpop.f32.mrb[17].mxu1 }
 0x684   : > { %v1239_v26 = vpop.f32.mrb[18].mxu1 }
 0x685   : > { %v2297_v27 = vpop.f32.mrb[19].mxu1  ;;  %v1294_v28 = vadd.f32 %v1292_v24, %v2675_v33 }
 0x686   : > { %v1286_v29 = vpop.f32.mrb[20].mxu0 }
 0x687   : > { %v1293_v30 = vmul.f32 0.35355338, %v1286_v29  ;;  %v2302_v31 = vpop.f32.mrb[21].mxu0  ;;  %v1296_v32 = vsel %vm737_vm3, %v1294_v28, -inf }
 0x688   : > { %1297 = vmax.xlane.f32.xlu0 %v1296_v32  ;;  %v1289_v34 = vpop.f32.mrb[22].mxu0 }
 0x689   : > { %v2303_v35 = vpop.f32.mrb[23].mxu0  ;;  %v1295_v36 = vadd.f32 %v1293_v30, %v2678_v41 }
 0x68b   : > { %v1299_v37 = vsel %vm737_vm3, %v1295_v36, -inf }
 0x68c   : > { %1300 = vmax.xlane.f32.xlu1 %v1299_v37 }
 0x69d   : > { %1320 = vrot.lane.b32.xlu1 %v2653_v13, %s2476_s22 }
 0x6a1   : > { %1418 = vrot.lane.b32.xlu1 %v2653_v13, %s2477_s27 }
 0x6a5   : > { %1468 = vrot.lane.b32.xlu1 %v2656_v16, %s2477_s27  ;;  %s2918_s27 = sld [smem:[#allocation8_spill]] }
 0x6a9   : > { %1466 = vrot.lane.b32.xlu1 %v2656_v16, %s2478_s29 }
 0x715   : > { %v1298_v38 = vpop.xlane.xlu0 %1297 }
 0x716   : > { %v1302_v39 = vsub.f32 %v1294_v28, %v1298_v38 }
 0x718   : > { %v1304_v40 = vmul.f32 1.442695, %v1302_v39 }
 0x719   : > { %v1301_v42 = vpop.xlane.xlu1 %1300 }
 0x71a   : > { %2434 = vpow2.f32 %v1304_v40  ;;  %v1303_v43 = vsub.f32 %v1295_v36, %v1301_v42 }
 0x71c   : > { %v1306_v44 = vmul.f32 1.442695, %v1303_v43 }
 0x71d   : > { %v1321_v45 = vpop.permute.xlu1 %1320 }
 0x71e   : > { %2436 = vpow2.f32 %v1306_v44  ;;  %v1326_v46 = vsel %vm876_vm5, %v1321_v45, 0 }
 0x71f   : > { %2305 = vmatpush3.bf16.msra.mxu1 %v1326_v46 }
 0x720   : > { %2316 = vmatprep.subr.bf16.mxu1 %v2466_v3 }
 0x721   : > { %v1419_v56 = vpop.permute.xlu1 %1418 }
 0x722   : > { %v1424_v60 = vsel %vm737_vm3, %v1419_v56, 0 }
 0x724   : > { %v2435_v47 = vpop.eup %2434 }
 0x725   : > { %v1308_v48 = vsel %vm737_vm3, %v2435_v47, 0.0  ;;  %v1469_v62 = vpop.permute.xlu1 %1468 }
 0x726   : > { %1309 = vadd.xlane.f32.xlu0 %v1308_v48  ;;  %v1474_v0 = vsel %vm737_vm3, %v1469_v62, 0 }
 0x728   : > { %v2437_v49 = vpop.eup %2436 }
 0x729   : > { %v1311_v50 = vsel %vm737_vm3, %v2437_v49, 0.0  ;;  %v1467_v2 = vpop.permute.xlu1 %1466 }
 0x72a   : > { %1312 = vadd.xlane.f32.xlu0 %v1311_v50 }
 0x740   : > { %1368 = vrot.lane.b32.xlu0 %v2656_v16, %s2476_s22 }
 0x744   : > { %1416 = vrot.lane.b32.xlu0 %v2653_v13, %s2478_s29  ;;  %s2919_s29 = scalar_lea.vmem %s2918_s27, %s2570_s15 }
 0x7b3   : > { %v1310_v51 = vpop.xlane.xlu0 %1309 }
 0x7b4   : > { %2438 = vrcp.f32 %v1310_v51 }
 0x7b7   : > { %v1313_v52 = vpop.xlane.xlu0 %1312 }
 0x7b8   : > { %2440 = vrcp.f32 %v1313_v52 }
 0x7bb   : > { %v1369_v53 = vpop.permute.xlu0 %1368 }
 0x7bc   : > { %v1374_v54 = vsel %vm876_vm5, %v1369_v53, 0  ;;  %v2410_v53 = vld [vmem:[%s2583_s25] sm:$0xff]  }
 0x7bd   : > { %2311 = vmatpush3.bf16.msra.mxu0 %v1374_v54  ;;  %v2411_v54 = vld [vmem:[%s2583_s25 + $0x8] sm:$0xff]   ;;  %s2920_s25 = sld [smem:[#allocation9_spill]] (!%p2183_p5) }
 0x7be   : > { %v2439_v55 = vpop.eup %2438  ;;  %2322 = vmatprep.subr.bf16.mxu0 %v2466_v3 }
 0x7bf   : > { %v1315_v57 = vmul.f32 %v2439_v55, %v2435_v47  ;;  %v1417_v1 = vpop.permute.xlu0 %1416 }
 0x7c1   : > { %v1318_v58 = vpack.c.bf16 %v1315_v57, %v1315_v57 }
 0x7c2   : > { %v2441_v59 = vpop.eup %2440 }
 0x7c3   : > { %v1317_v61 = vmul.f32 %v2441_v59, %v2437_v49  ;;  %2307 = vmatmul.mubr.msk.bf16.vlgmr.msra.gmra.mrb[20].mxu1 %vm737_vm3, %v1318_v58 }
 0x7c4   : > { %2317 = vmatpush3.bf16.xpose.msra.mxu1 %v1424_v60  ;;  %2318 = vmatprep.mubr.msk.bf16.mxu1 %vm2467_vm1, %v2466_v3 }
 0x7c5   : > { %v1319_v63 = vpack.c.bf16 %v1317_v61, %v1317_v61  ;;  %2328 = vmatprep.subr.bf16.mxu1 %v2466_v3 }
 0x7c7   : > { %2313 = vmatmul.mubr.msk.bf16.vlgmr.msra.gmra.mrb[24].mxu0 %vm737_vm3, %v1319_v63 }
 0x7c8   : > { %2323 = vmatpush3.bf16.xpose.msra.mxu0 %v1474_v0  ;;  %2324 = vmatprep.mubr.msk.bf16.mxu0 %vm2467_vm1, %v2466_v3 }
 0x7c9   : > { %2334 = vmatprep.subr.bf16.mxu0 %v2466_v3 }
 0x7cb   : > { %2319 = vmatmul.mubr.msk.bf16.vlgmr.msra.gmra.mrb[24].mxu1 %vm737_vm3, %v1417_v1 }
 0x7cc   : > { %2330 = vmatprep.mubr.msk.bf16.mxu1 %vm2467_vm1, %v2466_v3 }
 0x7cf   : > { %2325 = vmatmul.mubr.msk.bf16.vlgmr.msra.gmra.mrb[28].mxu0 %vm737_vm3, %v1467_v2 }
 0x7d0   : > { %2336 = vmatprep.mubr.msk.bf16.mxu0 %vm2467_vm1, %v2466_v3 }
 0x896   : > { %v1362_v4 = vpop.f32.mrb[20].mxu1 }
 0x897   : > { %v2308_v7 = vpop.f32.mrb[21].mxu1 }
 0x898   : > { %v1365_v8 = vpop.f32.mrb[22].mxu1 }
 0x899   : > { %v2309_v9 = vpop.f32.mrb[23].mxu1 }
 0x89a   : > { %v1410_v11 = vpop.f32.mrb[24].mxu0 }
 0x89b   : > { %v2398_v12 = vpack.i.bf16 %v1410_v11, %v1362_v4  ;;  %v2314_v14 = vpop.f32.mrb[25].mxu0 }
 0x89c   : > { %v1413_v18 = vpop.f32.mrb[26].mxu0 }
 0x89d   : > { %v2315_v20 = vpop.f32.mrb[27].mxu0 }
 0x89e   : > { %v1460_v21 = vpop.f32.mrb[24].mxu1 }
 0x89f   : > { %v1516_v22 = vmul.f32 0.35355338, %v1460_v21  ;;  %v2320_v24 = vpop.f32.mrb[25].mxu1 }
 0x8a0   : > { %v1463_v25 = vpop.f32.mrb[26].mxu1 }
 0x8a1   : > { %v2321_v26 = vpop.f32.mrb[27].mxu1  ;;  %v1518_v27 = vadd.f32 %v1516_v22, %v2675_v33 }
 0x8a2   : > { %v1510_v28 = vpop.f32.mrb[28].mxu0 }
 0x8a3   : > { %v1517_v29 = vmul.f32 0.35355338, %v1510_v28  ;;  %v2326_v30 = vpop.f32.mrb[29].mxu0  ;;  %v1520_v31 = vsel %vm737_vm3, %v1518_v27, -inf }
 0x8a4   : > { %1521 = vmax.xlane.f32.xlu0 %v1520_v31  ;;  %v1513_v32 = vpop.f32.mrb[30].mxu0 }
 0x8a5   : > { %v2327_v34 = vpop.f32.mrb[31].mxu0  ;;  %v1519_v35 = vadd.f32 %v1517_v29, %v2678_v41 }
 0x8a7   : > { %v1523_v36 = vsel %vm737_vm3, %v1519_v35, -inf }
 0x8a8   : > { %1524 = vmax.xlane.f32.xlu1 %v1523_v36 }
 0x8b9   : > { %1544 = vrot.lane.b32.xlu1 %v2653_v13, %s2479_s16 }
 0x8bd   : > { %2394 = vrot.lane.b32.xlu1 %v2393_v17, %s2480_s17 }
 0x8c1   : > { %2399 = vrot.lane.b32.xlu1 %v2398_v12, %s2481_s18 }
 0x931   : > { %v1522_v33 = vpop.xlane.xlu0 %1521 }
 0x932   : > { %v1526_v37 = vsub.f32 %v1518_v27, %v1522_v33 }
 0x934   : > { %v1528_v38 = vmul.f32 1.442695, %v1526_v37 }
 0x935   : > { %v1525_v39 = vpop.xlane.xlu1 %1524 }
 0x936   : > { %2442 = vpow2.f32 %v1528_v38  ;;  %v1527_v40 = vsub.f32 %v1519_v35, %v1525_v39 }
 0x938   : > { %v1530_v41 = vmul.f32 1.442695, %v1527_v40 }
 0x939   : > { %v1545_v42 = vpop.permute.xlu1 %1544 }
 0x93a   : > { %2444 = vpow2.f32 %v1530_v41  ;;  %v1550_v43 = vsel %vm876_vm5, %v1545_v42, 0 }
 0x93b   : > { %2329 = vmatpush3.bf16.msra.mxu1 %v1550_v43  ;;  %v2412_v43 = vld [vmem:[%s2592_s1] sm:$0xff]  }
 0x93c   : > { %2340 = vmatprep.subr.bf16.mxu1 %v2466_v3 }
 0x93d   : > { %v2395_v0 = vpop.permute.xlu1 %2394 }
 0x93e   : > { %v2397_v2 = vunpack.i.h.bf16 %v2395_v0  ;;  %v2396_v4 = vunpack.i.l.bf16 %v2395_v0 }
 0x940   : > { %v2443_v13 = vpop.eup %2442  ;;  %v1665_v11 = vsel %vm737_vm3, %v2713_v23, %v2397_v2  ;;  %v1664_v12 = vsel %vm737_vm3, %v2711_v19, %v2396_v4  ;;  %v2165_v23 = vld [vmem:[%s2917_s21] ss:$0 sm:$0xff] }
 0x941   : > { %v1532_v10 = vsel %vm737_vm3, %v2443_v13, 0.0  ;;  %v2400_v1 = vpop.permute.xlu1 %2399 }
 0x942   : > { %1533 = vadd.xlane.f32.xlu0 %v1532_v10  ;;  %v2402_v7 = vunpack.i.h.bf16 %v2400_v1  ;;  %v2401_v8 = vunpack.i.l.bf16 %v2400_v1  ;;  %v2414_v10 = vld [vmem:[%s2602_s23] sm:$0xff]  }
 0x944   : > { %v2445_v15 = vpop.eup %2444  ;;  %v1667_v20 = vsel %vm1666_vm6, %v1664_v12, %v2401_v8  ;;  %v1668_v21 = vsel %vm1666_vm6, %v1665_v11, %v2402_v7 }
 0x945   : > { %v1535_v17 = vsel %vm737_vm3, %v2445_v15, 0.0 }
 0x946   : > { %1536 = vadd.xlane.f32.xlu0 %v1535_v17 }
 0x95c   : > { %1592 = vrot.lane.b32.xlu0 %v2656_v16, %s2479_s16 }
 0x9cf   : > { %v1534_v44 = vpop.xlane.xlu0 %1533 }
 0x9d0   : > { %2446 = vrcp.f32 %v1534_v44 }
 0x9d3   : > { %v1537_v45 = vpop.xlane.xlu0 %1536 }
 0x9d4   : > { %2448 = vrcp.f32 %v1537_v45 }
 0x9d7   : > { %v1593_v46 = vpop.permute.xlu0 %1592 }
 0x9d8   : > { %v1598_v47 = vsel %vm876_vm5, %v1593_v46, 0 }
 0x9d9   : > { %2335 = vmatpush3.bf16.msra.mxu0 %v1598_v47 }
 0x9da   : > { %v2447_v48 = vpop.eup %2446  ;;  %2348 = vmatprep.subr.bf16.mxu0 %v2466_v3 }
 0x9db   : > { %v1539_v49 = vmul.f32 %v2447_v48, %v2443_v13  ;;  %v2413_v13 = vld [vmem:[%s2592_s1 + $0x8] sm:$0xff]  }
 0x9dd   : > { %v1542_v50 = vpack.c.bf16 %v1539_v49, %v1539_v49 }
 0x9de   : > { %v2449_v51 = vpop.eup %2448 }
 0x9df   : > { %v1541_v52 = vmul.f32 %v2449_v51, %v2445_v15  ;;  %2331 = vmatmul.mubr.msk.bf16.vlgmr.msra.gmra.mrb[28].mxu1 %vm737_vm3, %v1542_v50  ;;  %v2415_v15 = vld [vmem:[%s2602_s23 + $0x8] sm:$0xff]   ;;  %v2169_v50 = vld [vmem:[%s615_s14] ss:$0 sm:$0xff] }
 0x9e0   : > { %2344 = vmatprep.mubr.msk.bf16.mxu1 %vm2467_vm1, %v2466_v3  ;;  %2341 = vmatpush3.bf16.msra.mxu1 %v2410_v53 }
 0x9e1   : > { %v1543_v16 = vpack.c.bf16 %v1541_v52, %v1541_v52  ;;  %2342 = vmatprep.subr.bf16.mxu1 %v2466_v3 }
 0x9e3   : > { %2337 = vmatmul.mubr.msk.bf16.vlgmr.msra.gmra.mrb[32].mxu0 %vm737_vm3, %v1543_v16 }
 0x9e4   : > { %2352 = vmatprep.mubr.msk.bf16.mxu0 %vm2467_vm1, %v2466_v3  ;;  %2343 = vmatpush3.bf16.msra.mxu1 %v2411_v54  ;;  %v2170_v54 = vld [vmem:[%s618_s6] ss:$0 sm:$0xff] }
 0x9e5   : > { %2356 = vmatprep.subr.bf16.mxu1 %v2466_v3  ;;  %2349 = vmatpush3.bf16.msra.mxu0 %v2412_v43  ;;  %v2182_v43 = vld [vmem:[%s624_s20] ss:$0 sm:$0xff] }
 0x9e6   : > { %2350 = vmatprep.subr.bf16.mxu0 %v2466_v3 }
 0x9e9   : > { %2351 = vmatpush3.bf16.msra.mxu0 %v2413_v13 }
 0xab2   : > { %v1586_v55 = vpop.f32.mrb[28].mxu1 }
 0xab3   : > { %v2332_v56 = vpop.f32.mrb[29].mxu1 }
 0xab4   : > { %v1589_v57 = vpop.f32.mrb[30].mxu1 }
 0xab5   : > { %v2333_v58 = vpop.f32.mrb[31].mxu1 }
 0xab6   : > { %v1634_v59 = vpop.f32.mrb[32].mxu0 }
 0xab7   : > { %v2403_v60 = vpack.i.bf16 %v1634_v59, %v1586_v55  ;;  %v2338_v61 = vpop.f32.mrb[33].mxu0  ;;  %v2416_v59 = vld [vmem:[%s2602_s23 + $0x10] sm:$0xff]  }
 0xab8   : > { %v1637_v62 = vpop.f32.mrb[34].mxu0  ;;  %v2171_v61 = vld [vmem:[%s2919_s29] ss:$0 sm:$0xff] }
 0xab9   : > { %2404 = vrot.lane.b32.xlu0 %v2403_v60, %s2482_s2  ;;  %v2339_v63 = vpop.f32.mrb[35].mxu0  ;;  %v2417_v60 = vld [vmem:[%s2602_s23 + $0x18] sm:$0xff]  }
 0xb2b   : > { %v2405_v9 = vpop.permute.xlu0 %2404 }
 0xb2c   : > { %v2407_v14 = vunpack.i.h.bf16 %v2405_v9  ;;  %v2406_v18 = vunpack.i.l.bf16 %v2405_v9 }
 0xb2e   : > { %v1671_v22 = vsel %vm1669_vm7, %v1668_v21, %v2407_v14  ;;  %v1670_v24 = vsel %vm1669_vm7, %v1667_v20, %v2406_v18 }
 0xb2f   : > { %v1672_v25 = vpack.c.bf16 %v1671_v22, %v1670_v24 }
 0xb31   : > { %2345 = vmatmul.mubr.msk.bf16.vlgmr.msra.gmra.mrb[32].mxu1 %vm687_vm2, %v1672_v25 }
 0xb32   : > { %2364 = vmatprep.mubr.msk.bf16.mxu1 %vm2467_vm1, %v2466_v3  ;;  %2357 = vmatpush3.bf16.msra.mxu1 %v2414_v10 }
 0xb33   : > { %2358 = vmatprep.subr.bf16.mxu1 %v2466_v3 }
 0xb36   : > { %2359 = vmatpush3.bf16.msra.mxu1 %v2415_v15 }
 0xb37   : > { %2360 = vmatprep.subr.bf16.mxu1 %v2466_v3 }
 0xb3a   : > { %2361 = vmatpush3.bf16.msra.mxu1 %v2416_v59 }
 0xb3b   : > { %2362 = vmatprep.subr.bf16.mxu1 %v2466_v3  ;;  %v2175_v3 = vld [vmem:[%s612_s26] ss:$0 sm:$0xff] }
 0xb3e   : > { %2363 = vmatpush3.bf16.msra.mxu1 %v2417_v60 }
 0xc04   : > { %v1733_v26 = vpop.f32.mrb[32].mxu1 }
 0xc05   : > { %v1734_v27 = vadd.f32 %v2165_v23, %v1733_v26  ;;  %v2346_v19 = vpop.f32.mrb[33].mxu1 }
 0xc06   : > { %v1736_v28 = vpop.f32.mrb[34].mxu1 }
 0xc07   : > { %v1737_v29 = vadd.f32 %v2165_v23, %v1736_v28  ;;  %v2347_v30 = vpop.f32.mrb[35].mxu1  ;;  %v1740_v31 = vadd.f32 %v1734_v27, %v2635_v5 }
 0xc09   : > { %v1744_v32 = vsel %vm687_vm2, %v1740_v31, 0.0  ;;  %v1741_v34 = vadd.f32 %v1737_v29, %v2637_v6 }
 0xc0a   : > { %1745 = vadd.xlane.f32.xlu1 %v1744_v32 }
 0xc0b   : > { %v1747_v35 = vsel %vm687_vm2, %v1741_v34, 0.0 }
 0xc0c   : > { %1748 = vadd.xlane.f32.xlu0 %v1747_v35 }
 0xc97   : > { %v1746_v36 = vpop.xlane.xlu1 %1745 }
 0xc98   : > { %v1751_v33 = vmul.f32 0.03125, %v1746_v36 }
 0xc99   : > { %v1749_v37 = vpop.xlane.xlu0 %1748 }
 0xc9a   : > { %v1753_v38 = vsub.f32 %v1740_v31, %v1751_v33  ;;  %v1752_v39 = vmul.f32 0.03125, %v1749_v37 }
 0xc9c   : > { %v1754_v40 = vsub.f32 %v1741_v34, %v1752_v39  ;;  %v1755_v41 = vmul.f32 %v1753_v38, %v1753_v38 }
 0xc9e   : > { %v1757_v5 = vsel %vm687_vm2, %v1755_v41, 0.0  ;;  %v1756_v42 = vmul.f32 %v1754_v40, %v1754_v40 }
 0xc9f   : > { %1758 = vadd.xlane.f32.xlu0 %v1757_v5  ;;  %v2181_v5 = vld [vmem:[%s621_s19] ss:$0 sm:$0xff] }
 0xca0   : > { %v1760_v6 = vsel %vm687_vm2, %v1756_v42, 0.0 }
 0xca1   : > { %1761 = vadd.xlane.f32.xlu1 %v1760_v6 }
 0xd2c   : > { %v1759_v17 = vpop.xlane.xlu0 %1758 }
 0xd2d   : > { %v1763_v44 = vmul.f32 0.03125, %v1759_v17 }
 0xd2e   : > { %v1762_v45 = vpop.xlane.xlu1 %1761 }
 0xd2f   : > { %v1765_v46 = vadd.f32 1e-05, %v1763_v44  ;;  %v1764_v47 = vmul.f32 0.03125, %v1762_v45 }
 0xd31   : > { %2450 = vrsqrt.f32 %v1765_v46  ;;  %v1766_v48 = vadd.f32 1e-05, %v1764_v47 }
 0xd33   : > { %2452 = vrsqrt.f32 %v1766_v48 }
 0xd3b   : > { %v2451_v49 = vpop.eup %2450 }
 0xd3c   : > { %v1769_v51 = vmul.f32 %v2451_v49, %v1753_v38 }
 0xd3d   : > { %v2453_v52 = vpop.eup %2452 }
 0xd3e   : > { %v1777_v16 = vmul.f32 %v2169_v50, %v1769_v51  ;;  %v1770_v53 = vmul.f32 %v2453_v52, %v1754_v40 }
 0xd40   : > { %v1778_v55 = vmul.f32 %v2169_v50, %v1770_v53  ;;  %v1785_v56 = vadd.f32 %v2170_v54, %v1777_v16 }
 0xd42   : > { %v1786_v57 = vadd.f32 %v2170_v54, %v1778_v55 }
 0xd44   : > { %v1787_v58 = vpack.c.bf16 %v1786_v57, %v1785_v56 }
 0xd46   : > { %2353 = vmatmul.mubr.msk.bf16.vlgmr.msra.gmra.mrb[36].mxu0 %vm687_vm2, %v1787_v58 }
 0xe19   : > { %v1848_v62 = vpop.f32.mrb[36].mxu0 }
 0xe1a   : > { %v1849_v63 = vadd.f32 %v2171_v61, %v1848_v62  ;;  %v2354_v0 = vpop.f32.mrb[37].mxu0 }
 0xe1b   : > { %v1851_v1 = vpop.f32.mrb[38].mxu0 }
 0xe1c   : > { %v1852_v2 = vadd.f32 %v2171_v61, %v1851_v1  ;;  %v2355_v4 = vpop.f32.mrb[39].mxu0  ;;  %v1855_v7 = vmax.f32 %v1849_v63, 0.0 }
 0xe1e   : > { %v1856_v8 = vmax.f32 %v1852_v2, 0.0 }
 0xe20   : > { %v1857_v9 = vpack.c.bf16 %v1856_v8, %v1855_v7 }
 0xe22   : > { %2365 = vmatmul.mubr.msk.bf16.vlgmr.msra.gmra.mrb[36].mxu1 %vm1897_vm8, %v1857_v9 }
 0xef5   : > { %v1935_v11 = vpop.f32.mrb[36].mxu1 }
 0xef6   : > { %v1936_v12 = vadd.f32 %v2175_v3, %v1935_v11  ;;  %v2366_v14 = vpop.f32.mrb[37].mxu1 }
 0xef7   : > { %v1938_v18 = vpop.f32.mrb[38].mxu1 }
 0xef8   : > { %v1939_v20 = vadd.f32 %v2175_v3, %v1938_v18  ;;  %v2367_v21 = vpop.f32.mrb[39].mxu1  ;;  %v1942_v22 = vadd.f32 %v1936_v12, %v1785_v56 }
 0xefa   : > { %v1946_v24 = vsel %vm687_vm2, %v1942_v22, 0.0  ;;  %v1943_v25 = vadd.f32 %v1939_v20, %v1786_v57 }
 0xefb   : > { %1947 = vadd.xlane.f32.xlu0 %v1946_v24 }
 0xefc   : > { %v1949_v23 = vsel %vm687_vm2, %v1943_v25, 0.0 }
 0xefd   : > { %1950 = vadd.xlane.f32.xlu1 %v1949_v23 }
 0xf88   : > { %v1948_v26 = vpop.xlane.xlu0 %1947 }
 0xf89   : > { %v1952_v27 = vmul.f32 0.03125, %v1948_v26 }
 0xf8a   : > { %v1951_v19 = vpop.xlane.xlu1 %1950 }
 0xf8b   : > { %v1954_v28 = vsub.f32 %v1942_v22, %v1952_v27  ;;  %v1953_v29 = vmul.f32 0.03125, %v1951_v19 }
 0xf8d   : > { %v1955_v30 = vsub.f32 %v1943_v25, %v1953_v29  ;;  %v1956_v31 = vmul.f32 %v1954_v28, %v1954_v28 }
 0xf8f   : > { %v1958_v32 = vsel %vm687_vm2, %v1956_v31, 0.0  ;;  %v1957_v34 = vmul.f32 %v1955_v30, %v1955_v30 }
 0xf90   : > { %1959 = vadd.xlane.f32.xlu0 %v1958_v32 }
 0xf91   : > { %v1961_v35 = vsel %vm687_vm2, %v1957_v34, 0.0 }
 0xf92   : > { %1962 = vadd.xlane.f32.xlu1 %v1961_v35 }
0x101d   : > { %v1960_v36 = vpop.xlane.xlu0 %1959 }
0x101e   : > { %v1964_v33 = vmul.f32 0.03125, %v1960_v36 }
0x101f   : > { %v1963_v37 = vpop.xlane.xlu1 %1962 }
0x1020   : > { %v1966_v38 = vadd.f32 1e-05, %v1964_v33  ;;  %v1965_v39 = vmul.f32 0.03125, %v1963_v37 }
0x1022   : > { %2454 = vrsqrt.f32 %v1966_v38  ;;  %v1967_v40 = vadd.f32 1e-05, %v1965_v39 }
0x1024   : > { %2456 = vrsqrt.f32 %v1967_v40 }
0x102c   : > { %v2455_v41 = vpop.eup %2454 }
0x102d   : > { %v1970_v42 = vmul.f32 %v2455_v41, %v1954_v28 }
0x102e   : > { %v2457_v6 = vpop.eup %2456 }
0x102f   : > { %v1978_v13 = vmul.f32 %v2181_v5, %v1970_v42  ;;  %v1971_v10 = vmul.f32 %v2457_v6, %v1955_v30  ;;  %1993 = sbr.rel (%p2183_p5) target bundleno = 4150 (0x1036), region = 84 }
0x1031   : > { %v1986_v15 = vadd.f32 %v2182_v43, %v1978_v13  ;;  %v1979_v17 = vmul.f32 %v2181_v5, %v1971_v10 }
0x1033   : > { %1988 = vst.msk [vmem:[#allocation2] sm:$0xff] %vm687_vm2, %v1986_v15  ;;  %v1987_v44 = vadd.f32 %v2182_v43, %v1979_v17  ;;  %1994 = vst.msk [vmem:[%s2920_s25] sm:$0xff] (!%p2183_p5), %vm687_vm2, %v1986_v15 }
0x1035   : > { %1989 = vst.msk [vmem:[#allocation2 + $0x8] sm:$0xff] %vm687_vm2, %v1987_v44  ;;  %1995 = vst.msk [vmem:[%s2920_s25 + $0x8] sm:$0xff] (!%p2183_p5), %vm687_vm2, %v1987_v44 }
0x1036 PF: > { %s2921_s4 = sld [smem:[#allocation3_spill]] }
0x103c   : > { %s24_s29 = sadd.s32 1, %s2921_s4  }
0x103d   : > { %p21_p6 = scmp.ge.s32.totalorder %s24_s29, 4  }
0x103f   :  { %23 = sbr.rel (!%p21_p6) target bundleno = 7 (0x7), region = 143 }

// kernel: transformer_vae_forward.6
= control target key start
LH: loop header
LB: loop body
LE: loop exit
PB: predicated region body
PF: predicated region fallthrough
CT: control target
= control target key end

     0   :  { %s3612_s0 = inlined_call_operand.vmem [shape: f32[16,32], index: 0, kind: input, shape index: {}]   ;;  %s3613_s1 = inlined_call_operand.vmem [shape: f32[2,32], index: 1, kind: input, shape index: {}]   ;;  %s3614_s2 = inlined_call_operand.vmem [shape: f32[2,8], index: 2, kind: input, shape index: {}]   ;;  %s3615_s3 = inlined_call_operand.vmem [shape: bf16[2,32,96], index: 3, kind: input, shape index: {}]   ;;  %s3616_s4 = inlined_call_operand.vmem [shape: f32[2,1,96], index: 4, kind: input, shape index: {}]   ;;  %s3617_s5 = inlined_call_operand.vmem [shape: bf16[2,32,32], index: 5, kind: input, shape index: {}]   ;;  %s3618_s6 = inlined_call_operand.vmem [shape: f32[2,1,32], index: 6, kind: input, shape index: {}]   ;;  %s3619_s7 = inlined_call_operand.vmem [shape: bf16[2,32,32], index: 7, kind: input, shape index: {}]   ;;  %s3620_s8 = inlined_call_operand.vmem [shape: f32[2,1,32], index: 8, kind: input, shape index: {}]   ;;  %s3621_s9 = inlined_call_operand.vmem [shape: bf16[2,32,32], index: 9, kind: input, shape index: {}]   ;;  %s3622_s10 = inlined_call_operand.vmem [shape: f32[2,1,32], index: 10, kind: input, shape index: {}]   ;;  %s3623_s11 = inlined_call_operand.vmem [shape: bf16[2,32,64], index: 11, kind: input, shape index: {}]   ;;  %s3624_s12 = inlined_call_operand.vmem [shape: f32[2,1,64], index: 12, kind: input, shape index: {}]   ;;  %s3625_s13 = inlined_call_operand.vmem [shape: bf16[2,64,32], index: 13, kind: input, shape index: {}]   ;;  %s3626_s14 = inlined_call_operand.vmem [shape: f32[2,1,32], index: 14, kind: input, shape index: {}]   ;;  %s3627_s15 = inlined_call_operand.vmem [shape: f32[2,1,32], index: 15, kind: input, shape index: {}]   ;;  %s3628_s16 = inlined_call_operand.vmem [shape: f32[2,1,32], index: 16, kind: input, shape index: {}]   ;;  %s3629_s17 = inlined_call_operand.vmem [shape: f32[2,1,32], index: 17, kind: input, shape index: {}]   ;;  %s3630_s18 = inlined_call_operand.vmem [shape: f32[2,1,32], index: 18, kind: input, shape index: {}]   ;;  %s3631_s19 = inlined_call_operand.vmem [shape: f32[2,1,32], index: 19, kind: input, shape index: {}]   ;;  %s3632_s20 = inlined_call_operand.vmem [shape: f32[2,1,32], index: 20, kind: input, shape index: {}]   ;;  %s3633_s21 = inlined_call_operand.vmem [shape: f32[16,32], index: 21, kind: output, shape index: {}]  }
   0x1   :  { %3639 = sst [smem:[#allocation6_spill]] %s3612_s0 }
   0x2   :  { %3640 = sst [smem:[#allocation7_spill]] %s3613_s1 }
   0x3   :  { %3641 = sst [smem:[#allocation8_spill]] %s3614_s2  ;;  %s3198_s2 = smov 0  }
   0x4   :  { %3642 = sst [smem:[#allocation9_spill]] %s3615_s3 }
   0x5   :  { %3643 = sst [smem:[#allocation10_spill]] %s3616_s4 }
   0x6   :  { %3644 = sst [smem:[#allocation11_spill]] %s3617_s5 }
   0x7   :  { %3645 = sst [smem:[#allocation12_spill]] %s3618_s6 }
   0x8   :  { %3646 = sst [smem:[#allocation13_spill]] %s3619_s7 }
   0x9   :  { %3647 = sst [smem:[#allocation14_spill]] %s3621_s9 }
   0xa   :  { %3648 = sst [smem:[#allocation15_spill]] %s3623_s11 }
   0xb   :  { %3649 = sst [smem:[#allocation16_spill]] %s3624_s12 }
   0xc   :  { %3650 = sst [smem:[#allocation17_spill]] %s3625_s13 }
   0xd   :  { %3651 = sst [smem:[#allocation18_spill]] %s3632_s20 }
   0xe   :  { %3652 = sst [smem:[#allocation19_spill]] %s3633_s21 }
   0xf LB: > { %3653 = sst [smem:[#allocation3_spill]] %s3069_s2  ;;  %s3204_s25 = sadd.s32 4294967295, %s3069_s2   ;;  %s3069_s2 = sphi %s3198_s2, %s31_s2  }
  0x10   : > { %3654 = sst [smem:[#allocation4_spill]] %s3204_s25  ;;  %p2694_p0 = scmp.ge.s32.totalorder %s3069_s2, 1 }
  0x11   : > { %p728_p1 = scmp.lt.s32.totalorder %s3069_s2, 3 }
  0x13   : > { %p729_p2 = pnand %p2694_p0, %p728_p1 }
  0x15   : > { %732 = sbr.rel (%p729_p2) target bundleno = 4492 (0x118c), region = 104 }
  0x1c   : > { %p844_p3 = scmp.lt.s32.totalorder %s3204_s25, 1  ;;  %s3656_s5 = sld [smem:[#allocation9_spill]] }
  0x1d   : > { %s3658_s24 = sld [smem:[#allocation11_spill]]  ;;  %s3660_s7 = sld [smem:[#allocation13_spill]] }
  0x1e   : > { %s3210_s26 = scalar_select %p844_p3, %s3204_s25, 1 }
  0x1f   : > { %s3661_s9 = sld [smem:[#allocation14_spill]]  ;;  %s3662_s11 = sld [smem:[#allocation15_spill]] }
  0x20   : > { %s2759_s27 = sshll.u32 %s3210_s26, 4  ;;  %s2764_s4 = sshll.u32 %s3210_s26, 5 }
  0x21   : > { %s3664_s13 = sld [smem:[#allocation17_spill]]  ;;  %s3665_s21 = sld [smem:[#allocation18_spill]] }
  0x22   : > { %s3220_s22 = scalar_lea.vmem %s3656_s5, %s2759_s27  ;;  %s3666_s20 = sld [smem:[#allocation4_spill]] }
  0x23   : > { %3657 = sst [smem:[#allocation5_spill]] %s3220_s22  ;;  %s3225_s2 = scalar_lea.vmem %s3658_s24, %s2759_s27 }
  0x24   : > { %s3234_s29 = scalar_lea.vmem %s3660_s7, %s2759_s27  ;;  %s900_s7 = scalar_lea.vmem %s3629_s17, %s3210_s26 }
  0x25   : > { %s3243_s23 = scalar_lea.vmem %s3661_s9, %s2759_s27  ;;  %s3252_s6 = scalar_lea.vmem %s3662_s11, %s2759_s27 }
  0x26   : > { %s906_s9 = scalar_lea.vmem %s3631_s19, %s3210_s26 }
  0x27   : > { %s3262_s0 = scalar_lea.vmem %s3664_s13, %s2764_s4  ;;  %s903_s4 = scalar_lea.vmem %s3630_s18, %s3210_s26 }
  0x28   : > { %s909_s24 = scalar_lea.vmem %s3665_s21, %s3210_s26  ;;  %p2707_p4 = scmp.ne.s32.totalorder %s3666_s20, 0 }
  0x29   : > { %s3667_s11 = sld [smem:[#allocation6_spill]] (!%p2707_p4)  ;;  %vm917_vm0 = vcmask (!%p2707_p4), 261120  }
  0x2a   : > { %914 = sbr.rel (%p2707_p4) target bundleno = 49 (0x31), region = 108 }
  0x2f   : > { %v915_v0 = vld [vmem:[%s3667_s11] sm:$0xff] (!%p2707_p4)  ;;  %v916_v1 = vld [vmem:[%s3667_s11 + $0x8] sm:$0xff] (!%p2707_p4) }
  0x30   : > { %918 = vst.msk [vmem:[#allocation2] sm:$0xff] (!%p2707_p4), %vm917_vm0, %v915_v0  ;;  %919 = vst.msk [vmem:[#allocation2 + $0x8] sm:$0xff] (!%p2707_p4), %vm917_vm0, %v916_v1 }
  0x31 PF: > { %s3668_s12 = sld [smem:[#allocation5_spill]]  ;;  %v3071_v3 = vmov 0.0   ;;  %vm3072_vm1 = vmmov 0   ;;  %vm972_vm2 = vcmask 261120   ;;  %s3669_s20 = sld [smem:[#allocation10_spill]]  ;;  %vm1022_vm3 = vcmask 64512  }
  0x32   : > { %2817 = vmatprep.subr.bf16.mxu0 %v3071_v3  ;;  %2825 = vmatprep.subr.bf16.mxu1 %v3071_v3  ;;  %s3073_s30 = smov 96   ;;  %v3074_v21 = vmov 1966171168   ;;  %v929_v23 = vlaneseq  ;;  %s3671_s27 = sld [smem:[#allocation8_spill]]  ;;  %vm1161_vm5 = vcmask 1043456   ;;  %vm1951_vm6 = vcmask 130048  }
  0x33   : > { %2821 = vmatprep.mubr.msk.bf16.mxu0 %vm3072_vm1, %v3071_v3  ;;  %2827 = vmatprep.mubr.msk.bf16.mxu1 %vm3072_vm1, %v3071_v3  ;;  %v927_v22 = vunpack.c.l.s4 %v3074_v21  ;;  %s3075_s25 = smov 64   ;;  %s3076_s3 = smov 88   ;;  %vm1954_vm7 = vcmask 195584   ;;  %vm2396_vm8 = vcmask 523264  }
  0x34   : > { %v930_v26 = vshrl.u32 %v929_v23, 7  ;;  %s3077_s28 = smov 120   ;;  %s3079_s13 = smov 80  }
  0x35   : > { %v928_v25 = vunpack.c.0.s8 %v927_v22  ;;  %s3080_s1 = smov 112   ;;  %s3084_s22 = smov 40  }
  0x36   : > { %v3349_v31 = vsub.s32 0, %v930_v26  ;;  %s3085_s21 = smov 8  }
  0x37   : > { %v3005_v2 = vld [vmem:[%s3668_s12] sm:$0xff]   ;;  %v3006_v4 = vld [vmem:[%s3668_s12 + $0x8] sm:$0xff]   ;;  %s3670_s5 = scalar_lea.vmem %s3669_s20, %s3210_s26  ;;  %v3344_v27 = vsub.s32 %v928_v25, %v930_v26  ;;  %s3078_s12 = smov 56  }
  0x38   : > { %2818 = vmatpush3.bf16.msra.mxu0 %v3005_v2  ;;  %v3305_v5 = vld [vmem:[#allocation2] sm:$0xff]  ;;  %v3307_v6 = vld [vmem:[#allocation2 + $0x8] sm:$0xff]  ;;  %s3081_s20 = smov 48  }
  0x39   : > { %2819 = vmatprep.subr.bf16.mxu0 %v3071_v3  ;;  %v948_v7 = vpack.c.bf16 %v3307_v6, %v3305_v5  ;;  %v2708_v8 = vld [vmem:[%s3670_s5] ss:$0 sm:$0xff]  ;;  %s3082_s5 = smov 72  }
  0x3a   : > { %v922_v24 = vld [vmem:[%s3671_s27] sm:$0x3]  ;;  %s3086_s27 = smov 16  }
  0x3b   : > { %vm923_vm4 = vcmp.eq.f32.partialorder %v922_v24, 0.0 }
  0x3c   : > { %2820 = vmatpush3.bf16.msra.mxu0 %v3006_v4  ;;  %v924_v28 = vsel %vm923_vm4, -1e+30, %v3071_v3 }
  0x3d   : > { %2831 = vmatprep.subr.bf16.mxu0 %v3071_v3  ;;  %v932_v29 = vrot.slane %v924_v28, %v3344_v27 }
  0x3f   : > { %2822 = vmatmul.mubr.msk.bf16.vlgmr.msra.gmra.mrb[0].mxu0 %vm972_vm2, %v948_v7  ;;  %v940_v30 = vrot.slane %v932_v29, %v3344_v27  ;;  %v933_v32 = vcombine.high %v932_v29, %v932_v29 }
  0x40   : > { %2833 = vmatprep.mubr.msk.bf16.mxu0 %vm3072_vm1, %v3071_v3 }
  0x41   : > { %v3352_v33 = vrot.slane %v940_v30, %v3349_v31  ;;  %v947_v34 = vrot.slane %v933_v32, %v3344_v27 }
  0x43   : > { %v3357_v41 = vrot.slane %v947_v34, %v3349_v31 }
 0x112   : > { %v1010_v9 = vpop.f32.mrb[0].mxu0 }
 0x113   : > { %v1011_v10 = vadd.f32 %v2708_v8, %v1010_v9  ;;  %v2823_v11 = vpop.f32.mrb[1].mxu0 }
 0x114   : > { %v1013_v12 = vpop.f32.mrb[2].mxu0 }
 0x115   : > { %v3323_v13 = vpack.c.bf16 %v1011_v10, %v1011_v10  ;;  %v1014_v14 = vadd.f32 %v2708_v8, %v1013_v12  ;;  %v2824_v15 = vpop.f32.mrb[3].mxu0 }
 0x117   : > { %1020 = vrot.lane.b32.xlu0 %v3323_v13, %s3073_s30  ;;  %v3326_v16 = vpack.c.bf16 %v1014_v14, %v1014_v14 }
 0x11b   : > { %1070 = vrot.lane.b32.xlu0 %v3326_v16, %s3073_s30  ;;  %s3083_s30 = smov 104  }
 0x189   : > { %v1021_v17 = vpop.permute.xlu0 %1020 }
 0x18a   : > { %v1027_v18 = vsel %vm1022_vm3, %v1021_v17, 0 }
 0x18b   : > { %2826 = vmatpush3.bf16.xpose.msra.mxu1 %v1027_v18 }
 0x18c   : > { %2837 = vmatprep.subr.bf16.mxu1 %v3071_v3 }
 0x18d   : > { %v1071_v19 = vpop.permute.xlu0 %1070 }
 0x18e   : > { %v1076_v20 = vsel %vm1022_vm3, %v1071_v19, 0 }
 0x18f   : > { %2832 = vmatpush3.bf16.xpose.msra.mxu0 %v1076_v20 }
 0x190   : > { %2843 = vmatprep.subr.bf16.mxu0 %v3071_v3 }
 0x192   : > { %2828 = vmatmul.mubr.msk.bf16.vlgmr.msra.gmra.mrb[0].mxu1 %vm1022_vm3, %v3323_v13 }
 0x193   : > { %2839 = vmatprep.mubr.msk.bf16.mxu1 %vm3072_vm1, %v3071_v3 }
 0x196   : > { %2834 = vmatmul.mubr.msk.bf16.vlgmr.msra.gmra.mrb[4].mxu0 %vm1022_vm3, %v3326_v16 }
 0x197   : > { %2845 = vmatprep.mubr.msk.bf16.mxu0 %vm3072_vm1, %v3071_v3 }
 0x265   : > { %v1063_v35 = vpop.f32.mrb[0].mxu1 }
 0x266   : > { %v1118_v36 = vmul.f32 0.35355338, %v1063_v35  ;;  %v2829_v37 = vpop.f32.mrb[1].mxu1 }
 0x267   : > { %v1066_v38 = vpop.f32.mrb[2].mxu1 }
 0x268   : > { %v2830_v39 = vpop.f32.mrb[3].mxu1  ;;  %v1130_v40 = vadd.f32 %v3352_v33, %v1118_v36 }
 0x269   : > { %v1112_v42 = vpop.f32.mrb[4].mxu0 }
 0x26a   : > { %v1119_v43 = vmul.f32 0.35355338, %v1112_v42  ;;  %v2835_v44 = vpop.f32.mrb[5].mxu0  ;;  %v1132_v45 = vsel %vm1022_vm3, %v1130_v40, -inf }
 0x26b   : > { %1133 = vmax.xlane.f32.xlu1 %v1132_v45  ;;  %v1115_v46 = vpop.f32.mrb[6].mxu0 }
 0x26c   : > { %v2836_v47 = vpop.f32.mrb[7].mxu0  ;;  %v1131_v48 = vadd.f32 %v3357_v41, %v1119_v43 }
 0x26e   : > { %v1135_v49 = vsel %vm1022_vm3, %v1131_v48, -inf }
 0x26f   : > { %1136 = vmax.xlane.f32.xlu1 %v1135_v49 }
 0x280   : > { %1156 = vrot.lane.b32.xlu1 %v3323_v13, %s3075_s25 }
 0x284   : > { %1205 = vrot.lane.b32.xlu1 %v3326_v16, %s3075_s25 }
 0x288   : > { %1255 = vrot.lane.b32.xlu1 %v3323_v13, %s3076_s3 }
 0x2f8   : > { %v1134_v50 = vpop.xlane.xlu1 %1133 }
 0x2f9   : > { %v1138_v51 = vsub.f32 %v1130_v40, %v1134_v50 }
 0x2fb   : > { %v1140_v52 = vmul.f32 1.442695, %v1138_v51 }
 0x2fc   : > { %v1137_v53 = vpop.xlane.xlu1 %1136 }
 0x2fd   : > { %3019 = vpow2.f32 %v1140_v52  ;;  %v1139_v54 = vsub.f32 %v1131_v48, %v1137_v53 }
 0x2ff   : > { %v1142_v55 = vmul.f32 1.442695, %v1139_v54 }
 0x300   : > { %v1157_v56 = vpop.permute.xlu1 %1156 }
 0x301   : > { %3021 = vpow2.f32 %v1142_v55  ;;  %v1163_v57 = vsel %vm1161_vm5, %v1157_v56, 0 }
 0x302   : > { %2838 = vmatpush3.bf16.msra.mxu1 %v1163_v57 }
 0x303   : > { %2849 = vmatprep.subr.bf16.mxu1 %v3071_v3 }
 0x304   : > { %v1206_v58 = vpop.permute.xlu1 %1205 }
 0x305   : > { %v1211_v59 = vsel %vm1161_vm5, %v1206_v58, 0 }
 0x306   : > { %2844 = vmatpush3.bf16.msra.mxu0 %v1211_v59 }
 0x307   : > { %v3020_v60 = vpop.eup %3019  ;;  %2855 = vmatprep.subr.bf16.mxu0 %v3071_v3 }
 0x308   : > { %v1144_v61 = vsel %vm1022_vm3, %v3020_v60, 0.0  ;;  %v1256_v0 = vpop.permute.xlu1 %1255 }
 0x309   : > { %1145 = vadd.xlane.f32.xlu0 %v1144_v61  ;;  %v1261_v10 = vsel %vm1022_vm3, %v1256_v0, 0 }
 0x30b   : > { %v3022_v62 = vpop.eup %3021 }
 0x30c   : > { %v1147_v63 = vsel %vm1022_vm3, %v3022_v62, 0.0 }
 0x30d   : > { %1148 = vadd.xlane.f32.xlu1 %v1147_v63 }
 0x31e   : > { %1305 = vrot.lane.b32.xlu1 %v3326_v16, %s3076_s3  ;;  %s3677_s3 = scalar_lea.vmem %s3627_s15, %s3210_s26 }
 0x31f   : > { %1253 = vrot.lane.b32.xlu0 %v3323_v13, %s3077_s28 }
 0x322   : > { %1303 = vrot.lane.b32.xlu1 %v3326_v16, %s3077_s28  ;;  %s3672_s28 = sld [smem:[#allocation7_spill]] }
 0x396   : > { %v1146_v1 = vpop.xlane.xlu0 %1145 }
 0x397   : > { %3023 = vrcp.f32 %v1146_v1 }
 0x39a   : > { %v1149_v2 = vpop.xlane.xlu1 %1148  ;;  %v1254_v17 = vpop.permute.xlu0 %1253 }
 0x39b   : > { %3025 = vrcp.f32 %v1149_v2 }
 0x39e   : > { %v1306_v12 = vpop.permute.xlu1 %1305 }
 0x39f   : > { %v1311_v15 = vsel %vm1022_vm3, %v1306_v12, 0 }
 0x3a1   : > { %v3024_v4 = vpop.eup %3023 }
 0x3a2   : > { %v1151_v7 = vmul.f32 %v3024_v4, %v3020_v60  ;;  %v1304_v18 = vpop.permute.xlu1 %1303 }
 0x3a4   : > { %v1154_v8 = vpack.c.bf16 %v1151_v7, %v1151_v7 }
 0x3a5   : > { %v3026_v9 = vpop.eup %3025 }
 0x3a6   : > { %v1153_v11 = vmul.f32 %v3026_v9, %v3022_v62  ;;  %2840 = vmatmul.mubr.msk.bf16.vlgmr.msra.gmra.mrb[4].mxu1 %vm1022_vm3, %v1154_v8 }
 0x3a7   : > { %2850 = vmatpush3.bf16.xpose.msra.mxu1 %v1261_v10  ;;  %2851 = vmatprep.mubr.msk.bf16.mxu1 %vm3072_vm1, %v3071_v3 }
 0x3a8   : > { %v1155_v14 = vpack.c.bf16 %v1153_v11, %v1153_v11  ;;  %2861 = vmatprep.subr.bf16.mxu1 %v3071_v3 }
 0x3aa   : > { %2846 = vmatmul.mubr.msk.bf16.vlgmr.msra.gmra.mrb[8].mxu0 %vm1022_vm3, %v1155_v14 }
 0x3ab   : > { %2856 = vmatpush3.bf16.xpose.msra.mxu0 %v1311_v15  ;;  %2857 = vmatprep.mubr.msk.bf16.mxu0 %vm3072_vm1, %v3071_v3 }
 0x3ac   : > { %2867 = vmatprep.subr.bf16.mxu0 %v3071_v3 }
 0x3ae   : > { %2852 = vmatmul.mubr.msk.bf16.vlgmr.msra.gmra.mrb[8].mxu1 %vm1022_vm3, %v1254_v17 }
 0x3af   : > { %2863 = vmatprep.mubr.msk.bf16.mxu1 %vm3072_vm1, %v3071_v3 }
 0x3b2   : > { %2858 = vmatmul.mubr.msk.bf16.vlgmr.msra.gmra.mrb[12].mxu0 %vm1022_vm3, %v1304_v18 }
 0x3b3   : > { %2869 = vmatprep.mubr.msk.bf16.mxu0 %vm3072_vm1, %v3071_v3 }
 0x479   : > { %v3390_v19 = vpop.f32.mrb[4].mxu1 }
 0x47a   : > { %v2841_v20 = vpop.f32.mrb[5].mxu1 }
 0x47b   : > { %v1202_v21 = vpop.f32.mrb[6].mxu1 }
 0x47c   : > { %v2842_v22 = vpop.f32.mrb[7].mxu1 }
 0x47d   : > { %v3392_v23 = vpop.f32.mrb[8].mxu0 }
 0x47e   : > { %v2847_v24 = vpop.f32.mrb[9].mxu0 }
 0x47f   : > { %v1250_v25 = vpop.f32.mrb[10].mxu0 }
 0x480   : > { %v2848_v26 = vpop.f32.mrb[11].mxu0 }
 0x481   : > { %v1297_v28 = vpop.f32.mrb[8].mxu1 }
 0x482   : > { %v1353_v29 = vmul.f32 0.35355338, %v1297_v28  ;;  %v2853_v30 = vpop.f32.mrb[9].mxu1 }
 0x483   : > { %v1300_v32 = vpop.f32.mrb[10].mxu1 }
 0x484   : > { %v2854_v34 = vpop.f32.mrb[11].mxu1  ;;  %v1355_v35 = vadd.f32 %v1353_v29, %v3352_v33 }
 0x485   : > { %v1347_v36 = vpop.f32.mrb[12].mxu0 }
 0x486   : > { %v1354_v37 = vmul.f32 0.35355338, %v1347_v36  ;;  %v2859_v38 = vpop.f32.mrb[13].mxu0  ;;  %v1357_v39 = vsel %vm1022_vm3, %v1355_v35, -inf }
 0x487   : > { %1358 = vmax.xlane.f32.xlu1 %v1357_v39  ;;  %v1350_v40 = vpop.f32.mrb[14].mxu0 }
 0x488   : > { %v2860_v42 = vpop.f32.mrb[15].mxu0  ;;  %v1356_v43 = vadd.f32 %v1354_v37, %v3357_v41 }
 0x48a   : > { %v1360_v44 = vsel %vm1022_vm3, %v1356_v43, -inf }
 0x48b   : > { %1361 = vmax.xlane.f32.xlu0 %v1360_v44 }
 0x498   : > { %1381 = vrot.lane.b32.xlu1 %v3323_v13, %s3078_s12 }
 0x49c   : > { %1479 = vrot.lane.b32.xlu1 %v3323_v13, %s3079_s13 }
 0x4a1   : > { %1429 = vrot.lane.b32.xlu0 %v3326_v16, %s3078_s12 }
 0x4a5   : > { %1477 = vrot.lane.b32.xlu0 %v3323_v13, %s3080_s1 }
 0x514   : > { %v1359_v45 = vpop.xlane.xlu1 %1358 }
 0x515   : > { %v1363_v46 = vsub.f32 %v1355_v35, %v1359_v45 }
 0x517   : > { %v1365_v47 = vmul.f32 1.442695, %v1363_v46 }
 0x518   : > { %v1382_v48 = vpop.permute.xlu1 %1381  ;;  %v1362_v49 = vpop.xlane.xlu0 %1361 }
 0x519   : > { %3027 = vpow2.f32 %v1365_v47  ;;  %v1387_v50 = vsel %vm1161_vm5, %v1382_v48, 0  ;;  %v1364_v51 = vsub.f32 %v1356_v43, %v1362_v49 }
 0x51a   : > { %2862 = vmatpush3.bf16.msra.mxu1 %v1387_v50 }
 0x51b   : > { %v1367_v52 = vmul.f32 1.442695, %v1364_v51  ;;  %2873 = vmatprep.subr.bf16.mxu1 %v3071_v3 }
 0x51c   : > { %v1430_v53 = vpop.permute.xlu0 %1429  ;;  %v1480_v59 = vpop.permute.xlu1 %1479 }
 0x51d   : > { %3029 = vpow2.f32 %v1367_v52  ;;  %v1435_v54 = vsel %vm1161_vm5, %v1430_v53, 0  ;;  %v1485_v2 = vsel %vm1022_vm3, %v1480_v59, 0 }
 0x51e   : > { %2868 = vmatpush3.bf16.msra.mxu0 %v1435_v54 }
 0x51f   : > { %2879 = vmatprep.subr.bf16.mxu0 %v3071_v3 }
 0x520   : > { %v1478_v10 = vpop.permute.xlu0 %1477 }
 0x523   : > { %v3028_v55 = vpop.eup %3027 }
 0x524   : > { %v1369_v56 = vsel %vm1022_vm3, %v3028_v55, 0.0 }
 0x525   : > { %1370 = vadd.xlane.f32.xlu1 %v1369_v56 }
 0x527   : > { %v3030_v57 = vpop.eup %3029 }
 0x528   : > { %v1372_v58 = vsel %vm1022_vm3, %v3030_v57, 0.0 }
 0x529   : > { %1373 = vadd.xlane.f32.xlu1 %v1372_v58 }
 0x53a   : > { %1529 = vrot.lane.b32.xlu1 %v3326_v16, %s3079_s13  ;;  %s3673_s13 = scalar_lea.vmem %s3620_s8, %s3210_s26 }
 0x53e   : > { %1527 = vrot.lane.b32.xlu1 %v3326_v16, %s3080_s1 }
 0x5b2   : > { %v1371_v60 = vpop.xlane.xlu1 %1370 }
 0x5b3   : > { %3031 = vrcp.f32 %v1371_v60 }
 0x5b6   : > { %v1374_v61 = vpop.xlane.xlu1 %1373 }
 0x5b7   : > { %3033 = vrcp.f32 %v1374_v61 }
 0x5ba   : > { %v1530_v7 = vpop.permute.xlu1 %1529 }
 0x5bb   : > { %v1535_v9 = vsel %vm1022_vm3, %v1530_v7, 0 }
 0x5bd   : > { %v3032_v62 = vpop.eup %3031 }
 0x5be   : > { %v1376_v63 = vmul.f32 %v3032_v62, %v3028_v55  ;;  %v1528_v11 = vpop.permute.xlu1 %1527 }
 0x5c0   : > { %v1379_v0 = vpack.c.bf16 %v1376_v63, %v1376_v63 }
 0x5c1   : > { %v3034_v1 = vpop.eup %3033 }
 0x5c2   : > { %v1378_v4 = vmul.f32 %v3034_v1, %v3030_v57  ;;  %2864 = vmatmul.mubr.msk.bf16.vlgmr.msra.gmra.mrb[12].mxu1 %vm1022_vm3, %v1379_v0 }
 0x5c3   : > { %2874 = vmatpush3.bf16.xpose.msra.mxu1 %v1485_v2  ;;  %2875 = vmatprep.mubr.msk.bf16.mxu1 %vm3072_vm1, %v3071_v3 }
 0x5c4   : > { %v1380_v8 = vpack.c.bf16 %v1378_v4, %v1378_v4  ;;  %2885 = vmatprep.subr.bf16.mxu1 %v3071_v3 }
 0x5c6   : > { %2870 = vmatmul.mubr.msk.bf16.vlgmr.msra.gmra.mrb[16].mxu0 %vm1022_vm3, %v1380_v8 }
 0x5c7   : > { %2880 = vmatpush3.bf16.xpose.msra.mxu0 %v1535_v9  ;;  %2881 = vmatprep.mubr.msk.bf16.mxu0 %vm3072_vm1, %v3071_v3 }
 0x5c8   : > { %2891 = vmatprep.subr.bf16.mxu0 %v3071_v3 }
 0x5ca   : > { %2876 = vmatmul.mubr.msk.bf16.vlgmr.msra.gmra.mrb[16].mxu1 %vm1022_vm3, %v1478_v10 }
 0x5cb   : > { %2887 = vmatprep.mubr.msk.bf16.mxu1 %vm3072_vm1, %v3071_v3 }
 0x5ce   : > { %2882 = vmatmul.mubr.msk.bf16.vlgmr.msra.gmra.mrb[20].mxu0 %vm1022_vm3, %v1528_v11 }
 0x5cf   : > { %2893 = vmatprep.mubr.msk.bf16.mxu0 %vm3072_vm1, %v3071_v3 }
 0x695   : > { %v3426_v12 = vpop.f32.mrb[12].mxu1 }
 0x696   : > { %v2865_v14 = vpop.f32.mrb[13].mxu1 }
 0x697   : > { %v1426_v15 = vpop.f32.mrb[14].mxu1 }
 0x698   : > { %v2866_v17 = vpop.f32.mrb[15].mxu1 }
 0x699   : > { %v3428_v18 = vpop.f32.mrb[16].mxu0 }
 0x69a   : > { %v2990_v20 = vpack.i.bf16 %v3428_v18, %v3426_v12  ;;  %v2871_v21 = vpop.f32.mrb[17].mxu0 }
 0x69b   : > { %v1474_v22 = vpop.f32.mrb[18].mxu0 }
 0x69c   : > { %v2872_v24 = vpop.f32.mrb[19].mxu0 }
 0x69d   : > { %v1521_v25 = vpop.f32.mrb[16].mxu1 }
 0x69e   : > { %v1577_v26 = vmul.f32 0.35355338, %v1521_v25  ;;  %v2877_v28 = vpop.f32.mrb[17].mxu1 }
 0x69f   : > { %v1524_v29 = vpop.f32.mrb[18].mxu1 }
 0x6a0   : > { %v2878_v30 = vpop.f32.mrb[19].mxu1  ;;  %v1579_v32 = vadd.f32 %v1577_v26, %v3352_v33 }
 0x6a1   : > { %v1571_v34 = vpop.f32.mrb[20].mxu0 }
 0x6a2   : > { %v1578_v35 = vmul.f32 0.35355338, %v1571_v34  ;;  %v2883_v36 = vpop.f32.mrb[21].mxu0  ;;  %v1581_v37 = vsel %vm1022_vm3, %v1579_v32, -inf }
 0x6a3   : > { %1582 = vmax.xlane.f32.xlu0 %v1581_v37  ;;  %v1574_v38 = vpop.f32.mrb[22].mxu0 }
 0x6a4   : > { %v2884_v39 = vpop.f32.mrb[23].mxu0  ;;  %v1580_v40 = vadd.f32 %v1578_v35, %v3357_v41 }
 0x6a6   : > { %v1584_v42 = vsel %vm1022_vm3, %v1580_v40, -inf }
 0x6a7   : > { %1585 = vmax.xlane.f32.xlu1 %v1584_v42 }
 0x6b8   : > { %1605 = vrot.lane.b32.xlu1 %v3323_v13, %s3081_s20 }
 0x6bc   : > { %1703 = vrot.lane.b32.xlu1 %v3323_v13, %s3082_s5 }
 0x6c0   : > { %1753 = vrot.lane.b32.xlu1 %v3326_v16, %s3082_s5  ;;  %s3674_s5 = sld [smem:[#allocation12_spill]] }
 0x6c4   : > { %1751 = vrot.lane.b32.xlu1 %v3326_v16, %s3083_s30 }
 0x730   : > { %v1583_v43 = vpop.xlane.xlu0 %1582 }
 0x731   : > { %v1587_v44 = vsub.f32 %v1579_v32, %v1583_v43 }
 0x733   : > { %v1589_v45 = vmul.f32 1.442695, %v1587_v44 }
 0x734   : > { %v1586_v46 = vpop.xlane.xlu1 %1585 }
 0x735   : > { %3035 = vpow2.f32 %v1589_v45  ;;  %v1588_v47 = vsub.f32 %v1580_v40, %v1586_v46 }
 0x737   : > { %v1591_v48 = vmul.f32 1.442695, %v1588_v47 }
 0x738   : > { %v1606_v49 = vpop.permute.xlu1 %1605 }
 0x739   : > { %3037 = vpow2.f32 %v1591_v48  ;;  %v1611_v50 = vsel %vm1161_vm5, %v1606_v49, 0 }
 0x73a   : > { %2886 = vmatpush3.bf16.msra.mxu1 %v1611_v50 }
 0x73b   : > { %2897 = vmatprep.subr.bf16.mxu1 %v3071_v3 }
 0x73c   : > { %v1704_v60 = vpop.permute.xlu1 %1703 }
 0x73d   : > { %v1709_v0 = vsel %vm1022_vm3, %v1704_v60, 0  ;;  %v3008_v60 = vld [vmem:[%s3225_s2 + $0x8] sm:$0xff]  }
 0x73f   : > { %v3036_v51 = vpop.eup %3035 }
 0x740   : > { %v1593_v52 = vsel %vm1022_vm3, %v3036_v51, 0.0  ;;  %v1754_v2 = vpop.permute.xlu1 %1753 }
 0x741   : > { %1594 = vadd.xlane.f32.xlu0 %v1593_v52  ;;  %v1759_v7 = vsel %vm1022_vm3, %v1754_v2, 0 }
 0x743   : > { %v3038_v53 = vpop.eup %3037 }
 0x744   : > { %v1596_v54 = vsel %vm1022_vm3, %v3038_v53, 0.0  ;;  %v1752_v9 = vpop.permute.xlu1 %1751 }
 0x745   : > { %1597 = vadd.xlane.f32.xlu0 %v1596_v54 }
 0x75b   : > { %1653 = vrot.lane.b32.xlu0 %v3326_v16, %s3081_s20 }
 0x75f   : > { %1701 = vrot.lane.b32.xlu0 %v3323_v13, %s3083_s30  ;;  %s3675_s30 = scalar_lea.vmem %s3674_s5, %s3210_s26  ;;  %s3679_s5 = sld [smem:[#allocation16_spill]] }
 0x7ce   : > { %v1595_v55 = vpop.xlane.xlu0 %1594 }
 0x7cf   : > { %3039 = vrcp.f32 %v1595_v55 }
 0x7d2   : > { %v1598_v56 = vpop.xlane.xlu0 %1597 }
 0x7d3   : > { %3041 = vrcp.f32 %v1598_v56 }
 0x7d6   : > { %v1654_v57 = vpop.permute.xlu0 %1653 }
 0x7d7   : > { %v1659_v58 = vsel %vm1161_vm5, %v1654_v57, 0 }
 0x7d8   : > { %2892 = vmatpush3.bf16.msra.mxu0 %v1659_v58 }
 0x7d9   : > { %v3040_v59 = vpop.eup %3039  ;;  %2903 = vmatprep.subr.bf16.mxu0 %v3071_v3 }
 0x7da   : > { %v1600_v61 = vmul.f32 %v3040_v59, %v3036_v51  ;;  %v1702_v8 = vpop.permute.xlu0 %1701  ;;  %v3007_v59 = vld [vmem:[%s3225_s2] sm:$0xff]   ;;  %s3087_s2 = smov 24  }
 0x7dc   : > { %v1603_v62 = vpack.c.bf16 %v1600_v61, %v1600_v61  ;;  %v3009_v61 = vld [vmem:[%s3234_s29] sm:$0xff]  }
 0x7dd   : > { %v3042_v63 = vpop.eup %3041 }
 0x7de   : > { %v1602_v1 = vmul.f32 %v3042_v63, %v3038_v53  ;;  %2888 = vmatmul.mubr.msk.bf16.vlgmr.msra.gmra.mrb[20].mxu1 %vm1022_vm3, %v1603_v62 }
 0x7df   : > { %2898 = vmatpush3.bf16.xpose.msra.mxu1 %v1709_v0  ;;  %2899 = vmatprep.mubr.msk.bf16.mxu1 %vm3072_vm1, %v3071_v3  ;;  %v3010_v0 = vld [vmem:[%s3234_s29 + $0x8] sm:$0xff]   ;;  %s3678_s29 = scalar_lea.vmem %s3628_s16, %s3210_s26 }
 0x7e0   : > { %v1604_v4 = vpack.c.bf16 %v1602_v1, %v1602_v1  ;;  %2909 = vmatprep.subr.bf16.mxu1 %v3071_v3  ;;  %v2072_v1 = vld [vmem:[%s3672_s28] sm:$0x3]  ;;  %s3683_s28 = sld [smem:[#allocation4_spill]] }
 0x7e2   : > { %2894 = vmatmul.mubr.msk.bf16.vlgmr.msra.gmra.mrb[24].mxu0 %vm1022_vm3, %v1604_v4 }
 0x7e3   : > { %2904 = vmatpush3.bf16.xpose.msra.mxu0 %v1759_v7  ;;  %2905 = vmatprep.mubr.msk.bf16.mxu0 %vm3072_vm1, %v3071_v3 }
 0x7e4   : > { %2915 = vmatprep.subr.bf16.mxu0 %v3071_v3 }
 0x7e6   : > { %2900 = vmatmul.mubr.msk.bf16.vlgmr.msra.gmra.mrb[24].mxu1 %vm1022_vm3, %v1702_v8  ;;  %v2073_v8 = vpack.c.bf16 %v2072_v1, %v2072_v1  ;;  %p2756_p5 = scmp.ne.s32.totalorder %s3683_s28, 1 }
 0x7e7   : > { %2911 = vmatprep.mubr.msk.bf16.mxu1 %vm3072_vm1, %v3071_v3 }
 0x7ea   : > { %2906 = vmatmul.mubr.msk.bf16.vlgmr.msra.gmra.mrb[28].mxu0 %vm1022_vm3, %v1752_v9 }
 0x7eb   : > { %2917 = vmatprep.mubr.msk.bf16.mxu0 %vm3072_vm1, %v3071_v3 }
 0x8b1   : > { %v1647_v10 = vpop.f32.mrb[20].mxu1 }
 0x8b2   : > { %v2889_v11 = vpop.f32.mrb[21].mxu1 }
 0x8b3   : > { %v1650_v14 = vpop.f32.mrb[22].mxu1 }
 0x8b4   : > { %v2890_v15 = vpop.f32.mrb[23].mxu1 }
 0x8b5   : > { %v1695_v17 = vpop.f32.mrb[24].mxu0 }
 0x8b6   : > { %v2995_v21 = vpack.i.bf16 %v1695_v17, %v1647_v10  ;;  %v2895_v22 = vpop.f32.mrb[25].mxu0 }
 0x8b7   : > { %v1698_v24 = vpop.f32.mrb[26].mxu0 }
 0x8b8   : > { %v2896_v25 = vpop.f32.mrb[27].mxu0 }
 0x8b9   : > { %v1745_v26 = vpop.f32.mrb[24].mxu1 }
 0x8ba   : > { %v1801_v28 = vmul.f32 0.35355338, %v1745_v26  ;;  %v2901_v29 = vpop.f32.mrb[25].mxu1 }
 0x8bb   : > { %v1748_v30 = vpop.f32.mrb[26].mxu1 }
 0x8bc   : > { %v2902_v32 = vpop.f32.mrb[27].mxu1  ;;  %v1803_v34 = vadd.f32 %v1801_v28, %v3352_v33 }
 0x8bd   : > { %v1795_v35 = vpop.f32.mrb[28].mxu0 }
 0x8be   : > { %v1802_v36 = vmul.f32 0.35355338, %v1795_v35  ;;  %v2907_v37 = vpop.f32.mrb[29].mxu0  ;;  %v1805_v38 = vsel %vm1022_vm3, %v1803_v34, -inf }
 0x8bf   : > { %1806 = vmax.xlane.f32.xlu0 %v1805_v38  ;;  %v1798_v39 = vpop.f32.mrb[30].mxu0 }
 0x8c0   : > { %v2908_v40 = vpop.f32.mrb[31].mxu0  ;;  %v1804_v42 = vadd.f32 %v1802_v36, %v3357_v41  ;;  %v3011_v39 = vld [vmem:[%s3243_s23] sm:$0xff]  }
 0x8c2   : > { %v1808_v43 = vsel %vm1022_vm3, %v1804_v42, -inf }
 0x8c3   : > { %1809 = vmax.xlane.f32.xlu1 %v1808_v43  ;;  %v3012_v43 = vld [vmem:[%s3243_s23 + $0x8] sm:$0xff]  }
 0x8d4   : > { %1829 = vrot.lane.b32.xlu1 %v3323_v13, %s3084_s22 }
 0x8d8   : > { %2991 = vrot.lane.b32.xlu1 %v2990_v20, %s3085_s21  ;;  %s3676_s21 = scalar_lea.vmem %s3622_s10, %s3210_s26 }
 0x8d9   : > { %v2738_v1 = vld [vmem:[%s3676_s21] ss:$0 sm:$0xff] }
 0x8dc   : > { %2996 = vrot.lane.b32.xlu1 %v2995_v21, %s3086_s27 }
 0x94c   : > { %v1807_v33 = vpop.xlane.xlu0 %1806 }
 0x94d   : > { %v1811_v44 = vsub.f32 %v1803_v34, %v1807_v33 }
 0x94f   : > { %v1813_v45 = vmul.f32 1.442695, %v1811_v44 }
 0x950   : > { %v1810_v46 = vpop.xlane.xlu1 %1809 }
 0x951   : > { %3043 = vpow2.f32 %v1813_v45  ;;  %v1812_v47 = vsub.f32 %v1804_v42, %v1810_v46  ;;  %v2728_v46 = vld [vmem:[%s3675_s30] ss:$0 sm:$0xff]  ;;  %s3680_s30 = scalar_lea.vmem %s3679_s5, %s3210_s26 }
 0x953   : > { %v1815_v41 = vmul.f32 1.442695, %v1812_v47 }
 0x954   : > { %v1830_v48 = vpop.permute.xlu1 %1829 }
 0x955   : > { %3045 = vpow2.f32 %v1815_v41  ;;  %v1835_v49 = vsel %vm1161_vm5, %v1830_v48, 0 }
 0x956   : > { %2910 = vmatpush3.bf16.msra.mxu1 %v1835_v49 }
 0x957   : > { %2921 = vmatprep.subr.bf16.mxu1 %v3071_v3 }
 0x958   : > { %v2992_v15 = vpop.permute.xlu1 %2991 }
 0x959   : > { %v2994_v21 = vunpack.i.h.bf16 %v2992_v15  ;;  %v2993_v22 = vunpack.i.l.bf16 %v2992_v15 }
 0x95b   : > { %v3044_v13 = vpop.eup %3043  ;;  %v1950_v28 = vsel %vm1022_vm3, %v3392_v23, %v2994_v21  ;;  %v1949_v29 = vsel %vm1022_vm3, %v3390_v19, %v2993_v22  ;;  %v2734_v19 = vld [vmem:[%s3673_s13] ss:$0 sm:$0xff] }
 0x95c   : > { %v1817_v12 = vsel %vm1022_vm3, %v3044_v13, 0.0  ;;  %v2997_v17 = vpop.permute.xlu1 %2996 }
 0x95d   : > { %1818 = vadd.xlane.f32.xlu0 %v1817_v12  ;;  %v2999_v24 = vunpack.i.h.bf16 %v2997_v17  ;;  %v2998_v25 = vunpack.i.l.bf16 %v2997_v17  ;;  %v2732_v17 = vld [vmem:[%s3677_s3] ss:$0 sm:$0xff] }
 0x95f   : > { %v3046_v18 = vpop.eup %3045  ;;  %v1952_v34 = vsel %vm1951_vm6, %v1949_v29, %v2998_v25  ;;  %v1953_v35 = vsel %vm1951_vm6, %v1950_v28, %v2999_v24  ;;  %v2733_v25 = vld [vmem:[%s3678_s29] ss:$0 sm:$0xff]  ;;  %s3684_s29 = sld [smem:[#allocation19_spill]] (!%p2756_p5) }
 0x960   : > { %v1820_v20 = vsel %vm1022_vm3, %v3046_v18, 0.0 }
 0x961   : > { %1821 = vadd.xlane.f32.xlu0 %v1820_v20 }
 0x977   : > { %1877 = vrot.lane.b32.xlu0 %v3326_v16, %s3084_s22 }
 0x9ea   : > { %v1819_v50 = vpop.xlane.xlu0 %1818 }
 0x9eb   : > { %3047 = vrcp.f32 %v1819_v50 }
 0x9ee   : > { %v1822_v51 = vpop.xlane.xlu0 %1821 }
 0x9ef   : > { %3049 = vrcp.f32 %v1822_v51 }
 0x9f2   : > { %v1878_v52 = vpop.permute.xlu0 %1877 }
 0x9f3   : > { %v1883_v53 = vsel %vm1161_vm5, %v1878_v52, 0 }
 0x9f4   : > { %2916 = vmatpush3.bf16.msra.mxu0 %v1883_v53 }
 0x9f5   : > { %v3048_v54 = vpop.eup %3047  ;;  %2929 = vmatprep.subr.bf16.mxu0 %v3071_v3 }
 0x9f6   : > { %v1824_v55 = vmul.f32 %v3048_v54, %v3044_v13 }
 0x9f8   : > { %v1827_v56 = vpack.c.bf16 %v1824_v55, %v1824_v55 }
 0x9f9   : > { %v3050_v57 = vpop.eup %3049 }
 0x9fa   : > { %v1826_v58 = vmul.f32 %v3050_v57, %v3046_v18  ;;  %2912 = vmatmul.mubr.msk.bf16.vlgmr.msra.gmra.mrb[28].mxu1 %vm1022_vm3, %v1827_v56 }
 0x9fb   : > { %2925 = vmatprep.mubr.msk.bf16.mxu1 %vm3072_vm1, %v3071_v3  ;;  %2922 = vmatpush3.bf16.msra.mxu1 %v3007_v59 }
 0x9fc   : > { %v1828_v16 = vpack.c.bf16 %v1826_v58, %v1826_v58  ;;  %2923 = vmatprep.subr.bf16.mxu1 %v3071_v3 }
 0x9fe   : > { %2918 = vmatmul.mubr.msk.bf16.vlgmr.msra.gmra.mrb[32].mxu0 %vm1022_vm3, %v1828_v16 }
 0x9ff   : > { %2933 = vmatprep.mubr.msk.bf16.mxu0 %vm3072_vm1, %v3071_v3  ;;  %2924 = vmatpush3.bf16.msra.mxu1 %v3008_v60 }
 0xa00   : > { %2937 = vmatprep.subr.bf16.mxu1 %v3071_v3  ;;  %2930 = vmatpush3.bf16.msra.mxu0 %v3009_v61 }
 0xa01   : > { %2931 = vmatprep.subr.bf16.mxu0 %v3071_v3 }
 0xa04   : > { %2932 = vmatpush3.bf16.msra.mxu0 %v3010_v0 }
 0xa05   : > { %2945 = vmatprep.subr.bf16.mxu0 %v3071_v3 }
 0xa07   : > { %2934 = vmatmul.mubr.msk.bf16.vlgmr.msra.gmra.mrb[36].mxu0 %vm972_vm2, %v2073_v8 }
 0xa08   : > { %2949 = vmatprep.mubr.msk.bf16.mxu0 %vm3072_vm1, %v3071_v3 }
 0xacd   : > { %v1871_v62 = vpop.f32.mrb[28].mxu1 }
 0xace   : > { %v2913_v63 = vpop.f32.mrb[29].mxu1 }
 0xacf   : > { %v1874_v2 = vpop.f32.mrb[30].mxu1 }
 0xad0   : > { %v2914_v4 = vpop.f32.mrb[31].mxu1 }
 0xad1   : > { %v1919_v7 = vpop.f32.mrb[32].mxu0 }
 0xad2   : > { %v3000_v9 = vpack.i.bf16 %v1919_v7, %v1871_v62  ;;  %v2919_v10 = vpop.f32.mrb[33].mxu0 }
 0xad3   : > { %v1922_v11 = vpop.f32.mrb[34].mxu0 }
 0xad4   : > { %3001 = vrot.lane.b32.xlu0 %v3000_v9, %s3087_s2  ;;  %v2920_v14 = vpop.f32.mrb[35].mxu0 }
 0xada   : > { %v2134_v23 = vpop.f32.mrb[36].mxu0 }
 0xadb   : > { %v2135_v40 = vadd.f32 %v2734_v19, %v2134_v23  ;;  %v2935_v42 = vpop.f32.mrb[37].mxu0 }
 0xadc   : > { %v2137_v33 = vpop.f32.mrb[38].mxu0 }
 0xadd   : > { %v2936_v44 = vpop.f32.mrb[39].mxu0  ;;  %v2140_v45 = vpack.c.bf16 %v2135_v40, %v2135_v40 }
 0xb46   : > { %v3002_v26 = vpop.permute.xlu0 %3001 }
 0xb47   : > { %v3004_v30 = vunpack.i.h.bf16 %v3002_v26  ;;  %v3003_v32 = vunpack.i.l.bf16 %v3002_v26 }
 0xb49   : > { %v1956_v36 = vsel %vm1954_vm7, %v1953_v35, %v3004_v30  ;;  %v1955_v37 = vsel %vm1954_vm7, %v1952_v34, %v3003_v32 }
 0xb4a   : > { %v1957_v38 = vpack.c.bf16 %v1956_v36, %v1955_v37 }
 0xb4c   : > { %2926 = vmatmul.mubr.msk.bf16.vlgmr.msra.gmra.mrb[32].mxu1 %vm972_vm2, %v1957_v38 }
 0xb4d   : > { %2941 = vmatprep.mubr.msk.bf16.mxu1 %vm3072_vm1, %v3071_v3  ;;  %2938 = vmatpush3.bf16.msra.mxu1 %v3011_v39 }
 0xb4e   : > { %2939 = vmatprep.subr.bf16.mxu1 %v3071_v3 }
 0xb51   : > { %2940 = vmatpush3.bf16.msra.mxu1 %v3012_v43 }
 0xb52   : > { %2953 = vmatprep.subr.bf16.mxu1 %v3071_v3 }
 0xb54   : > { %2942 = vmatmul.mubr.msk.bf16.vlgmr.msra.gmra.mrb[36].mxu1 %vm972_vm2, %v2140_v45 }
 0xb55   : > { %2961 = vmatprep.mubr.msk.bf16.mxu1 %vm3072_vm1, %v3071_v3 }
 0xc1f   : > { %v2018_v47 = vpop.f32.mrb[32].mxu1 }
 0xc20   : > { %v2019_v41 = vadd.f32 %v2728_v46, %v2018_v47  ;;  %v2927_v48 = vpop.f32.mrb[33].mxu1  ;;  %v3014_v47 = vld [vmem:[%s3252_s6 + $0x8] sm:$0xff]  }
 0xc21   : > { %v2021_v49 = vpop.f32.mrb[34].mxu1  ;;  %v3016_v48 = vld [vmem:[%s3262_s0 + $0x8] sm:$0xff]  }
 0xc22   : > { %v2022_v13 = vadd.f32 %v2728_v46, %v2021_v49  ;;  %v2928_v12 = vpop.f32.mrb[35].mxu1  ;;  %v2025_v18 = vadd.f32 %v2019_v41, %v3305_v5  ;;  %v3013_v46 = vld [vmem:[%s3252_s6] sm:$0xff]  }
 0xc23   : > { %2946 = vmatpush3.bf16.msra.mxu0 %v3013_v46  ;;  %v3015_v41 = vld [vmem:[%s3262_s0] sm:$0xff]  }
 0xc24   : > { %v2029_v20 = vsel %vm972_vm2, %v2025_v18, 0.0  ;;  %v2026_v50 = vadd.f32 %v2022_v13, %v3307_v6  ;;  %2947 = vmatprep.subr.bf16.mxu0 %v3071_v3  ;;  %2954 = vmatpush3.bf16.msra.mxu1 %v3015_v41  ;;  %v2755_v46 = vld [vmem:[%s909_s24] ss:$0 sm:$0xff] }
 0xc25   : > { %2030 = vadd.xlane.f32.xlu1 %v2029_v20  ;;  %2955 = vmatprep.subr.bf16.mxu1 %v3071_v3 }
 0xc26   : > { %v2032_v51 = vsel %vm972_vm2, %v2026_v50, 0.0 }
 0xc27   : > { %2033 = vadd.xlane.f32.xlu0 %v2032_v51  ;;  %v2201_v6 = vpop.f32.mrb[36].mxu1  ;;  %2948 = vmatpush3.bf16.msra.mxu0 %v3014_v47 }
 0xc28   : > { %v2943_v60 = vpop.f32.mrb[37].mxu1  ;;  %v2202_v8 = vadd.f32 %v2738_v1, %v2201_v6  ;;  %2956 = vmatpush3.bf16.msra.mxu1 %v3016_v48  ;;  %v3017_v6 = vld [vmem:[%s3262_s0 + $0x10] sm:$0xff]  }
 0xc29   : > { %v2204_v61 = vpop.f32.mrb[38].mxu1  ;;  %2957 = vmatprep.subr.bf16.mxu1 %v3071_v3  ;;  %v3018_v60 = vld [vmem:[%s3262_s0 + $0x18] sm:$0xff]   ;;  %s3681_s0 = scalar_lea.vmem %s3626_s14, %s3210_s26 }
 0xc2a   : > { %v2944_v62 = vpop.f32.mrb[39].mxu1  ;;  %v2214_v10 = vrot.slane %v2202_v8, %v3344_v27  ;;  %v2744_v61 = vld [vmem:[%s3680_s30] ss:$0 sm:$0xff] }
 0xc2c   : > { %v2215_v11 = vcombine.high %v2214_v10, %v2214_v10  ;;  %v2222_v14 = vrot.slane %v2214_v10, %v3344_v27  ;;  %2958 = vmatpush3.bf16.msra.mxu1 %v3017_v6 }
 0xc2d   : > { %2959 = vmatprep.subr.bf16.mxu1 %v3071_v3  ;;  %v2748_v3 = vld [vmem:[%s3681_s0] ss:$0 sm:$0xff] }
 0xc2e   : > { %v2229_v22 = vrot.slane %v2215_v11, %v3344_v27  ;;  %v2233_v28 = vrot.slane %v2222_v14, %v3349_v31 }
 0xc30   : > { %v2237_v34 = vrot.slane %v2229_v22, %v3349_v31  ;;  %2960 = vmatpush3.bf16.msra.mxu1 %v3018_v60 }
 0xcb2   : > { %v2031_v52 = vpop.xlane.xlu1 %2030 }
 0xcb3   : > { %v2036_v53 = vmul.f32 0.03125, %v2031_v52  ;;  %v2742_v52 = vld [vmem:[%s900_s7] ss:$0 sm:$0xff] }
 0xcb4   : > { %v2034_v54 = vpop.xlane.xlu0 %2033 }
 0xcb5   : > { %v2038_v55 = vsub.f32 %v2025_v18, %v2036_v53  ;;  %v2037_v56 = vmul.f32 0.03125, %v2034_v54 }
 0xcb7   : > { %v2039_v57 = vsub.f32 %v2026_v50, %v2037_v56  ;;  %v2040_v58 = vmul.f32 %v2038_v55, %v2038_v55 }
 0xcb9   : > { %v2042_v16 = vsel %vm972_vm2, %v2040_v58, 0.0  ;;  %v2041_v59 = vmul.f32 %v2039_v57, %v2039_v57 }
 0xcba   : > { %2043 = vadd.xlane.f32.xlu0 %v2042_v16 }
 0xcbb   : > { %v2045_v5 = vsel %vm972_vm2, %v2041_v59, 0.0 }
 0xcbc   : > { %2046 = vadd.xlane.f32.xlu1 %v2045_v5 }
 0xd47   : > { %v2044_v63 = vpop.xlane.xlu0 %2043 }
 0xd48   : > { %v2048_v0 = vmul.f32 0.03125, %v2044_v63 }
 0xd49   : > { %v2047_v2 = vpop.xlane.xlu1 %2046 }
 0xd4a   : > { %v2050_v4 = vadd.f32 1e-05, %v2048_v0  ;;  %v2049_v7 = vmul.f32 0.03125, %v2047_v2 }
 0xd4c   : > { %3051 = vrsqrt.f32 %v2050_v4  ;;  %v2051_v9 = vadd.f32 1e-05, %v2049_v7 }
 0xd4e   : > { %3053 = vrsqrt.f32 %v2051_v9 }
 0xd56   : > { %v3052_v15 = vpop.eup %3051 }
 0xd57   : > { %v2054_v21 = vmul.f32 %v3052_v15, %v2038_v55 }
 0xd58   : > { %v3054_v24 = vpop.eup %3053 }
 0xd59   : > { %v2062_v26 = vmul.f32 %v2732_v17, %v2054_v21  ;;  %v2055_v29 = vmul.f32 %v3054_v24, %v2039_v57  ;;  %v2743_v57 = vld [vmem:[%s903_s4] ss:$0 sm:$0xff] }
 0xd5b   : > { %v2070_v30 = vadd.f32 %v2733_v25, %v2062_v26  ;;  %v2063_v32 = vmul.f32 %v2732_v17, %v2055_v29 }
 0xd5d   : > { %v2240_v35 = vadd.f32 %v2233_v28, %v2070_v30  ;;  %v2071_v36 = vadd.f32 %v2733_v25, %v2063_v32 }
 0xd5f   : > { %v2244_v37 = vsel %vm972_vm2, %v2240_v35, 0.0  ;;  %v2241_v38 = vadd.f32 %v2237_v34, %v2071_v36 }
 0xd60   : > { %2245 = vadd.xlane.f32.xlu0 %v2244_v37 }
 0xd61   : > { %v2247_v27 = vsel %vm972_vm2, %v2241_v38, 0.0 }
 0xd62   : > { %2248 = vadd.xlane.f32.xlu1 %v2247_v27 }
 0xded   : > { %v2246_v39 = vpop.xlane.xlu0 %2245 }
 0xdee   : > { %v2250_v19 = vmul.f32 0.03125, %v2246_v39 }
 0xdef   : > { %v2249_v23 = vpop.xlane.xlu1 %2248 }
 0xdf0   : > { %v2252_v40 = vsub.f32 %v2240_v35, %v2250_v19  ;;  %v2251_v42 = vmul.f32 0.03125, %v2249_v23 }
 0xdf2   : > { %v2253_v43 = vsub.f32 %v2241_v38, %v2251_v42  ;;  %v2254_v31 = vmul.f32 %v2252_v40, %v2252_v40 }
 0xdf4   : > { %v2256_v33 = vsel %vm972_vm2, %v2254_v31, 0.0  ;;  %v2255_v44 = vmul.f32 %v2253_v43, %v2253_v43 }
 0xdf5   : > { %2257 = vadd.xlane.f32.xlu0 %v2256_v33  ;;  %v2754_v33 = vld [vmem:[%s906_s9] ss:$0 sm:$0xff] }
 0xdf6   : > { %v2259_v45 = vsel %vm972_vm2, %v2255_v44, 0.0 }
 0xdf7   : > { %2260 = vadd.xlane.f32.xlu1 %v2259_v45 }
 0xe82   : > { %v2258_v49 = vpop.xlane.xlu0 %2257 }
 0xe83   : > { %v2262_v13 = vmul.f32 0.03125, %v2258_v49 }
 0xe84   : > { %v2261_v12 = vpop.xlane.xlu1 %2260 }
 0xe85   : > { %v2264_v18 = vadd.f32 1e-05, %v2262_v13  ;;  %v2263_v20 = vmul.f32 0.03125, %v2261_v12 }
 0xe87   : > { %3055 = vrsqrt.f32 %v2264_v18  ;;  %v2265_v50 = vadd.f32 1e-05, %v2263_v20 }
 0xe89   : > { %3057 = vrsqrt.f32 %v2265_v50 }
 0xe91   : > { %v3056_v51 = vpop.eup %3055 }
 0xe92   : > { %v2268_v53 = vmul.f32 %v3056_v51, %v2252_v40 }
 0xe93   : > { %v3058_v54 = vpop.eup %3057 }
 0xe94   : > { %v2276_v55 = vmul.f32 %v2742_v52, %v2268_v53  ;;  %v2269_v56 = vmul.f32 %v3058_v54, %v2253_v43 }
 0xe96   : > { %v2277_v58 = vmul.f32 %v2742_v52, %v2269_v56  ;;  %v2284_v16 = vadd.f32 %v2743_v57, %v2276_v55 }
 0xe98   : > { %v2285_v59 = vadd.f32 %v2743_v57, %v2277_v58 }
 0xe9a   : > { %v2286_v5 = vpack.c.bf16 %v2285_v59, %v2284_v16 }
 0xe9c   : > { %2950 = vmatmul.mubr.msk.bf16.vlgmr.msra.gmra.mrb[40].mxu0 %vm972_vm2, %v2286_v5 }
 0xf6f   : > { %v2347_v62 = vpop.f32.mrb[40].mxu0 }
 0xf70   : > { %v2348_v63 = vadd.f32 %v2744_v61, %v2347_v62  ;;  %v2951_v0 = vpop.f32.mrb[41].mxu0 }
 0xf71   : > { %v2350_v1 = vpop.f32.mrb[42].mxu0 }
 0xf72   : > { %v2351_v2 = vadd.f32 %v2744_v61, %v2350_v1  ;;  %v2952_v4 = vpop.f32.mrb[43].mxu0  ;;  %v2354_v7 = vmax.f32 %v2348_v63, 0.0 }
 0xf74   : > { %v2355_v8 = vmax.f32 %v2351_v2, 0.0 }
 0xf76   : > { %v2356_v9 = vpack.c.bf16 %v2355_v8, %v2354_v7 }
 0xf78   : > { %2962 = vmatmul.mubr.msk.bf16.vlgmr.msra.gmra.mrb[40].mxu1 %vm2396_vm8, %v2356_v9 }
0x104b   : > { %v2434_v10 = vpop.f32.mrb[40].mxu1 }
0x104c   : > { %v2435_v11 = vadd.f32 %v2748_v3, %v2434_v10  ;;  %v2963_v14 = vpop.f32.mrb[41].mxu1 }
0x104d   : > { %v2437_v15 = vpop.f32.mrb[42].mxu1 }
0x104e   : > { %v2438_v17 = vadd.f32 %v2748_v3, %v2437_v15  ;;  %v2964_v21 = vpop.f32.mrb[43].mxu1  ;;  %v2441_v22 = vadd.f32 %v2435_v11, %v2284_v16 }
0x1050   : > { %v2445_v24 = vsel %vm972_vm2, %v2441_v22, 0.0  ;;  %v2442_v25 = vadd.f32 %v2438_v17, %v2285_v59 }
0x1051   : > { %2446 = vadd.xlane.f32.xlu0 %v2445_v24 }
0x1052   : > { %v2448_v26 = vsel %vm972_vm2, %v2442_v25, 0.0 }
0x1053   : > { %2449 = vadd.xlane.f32.xlu1 %v2448_v26 }
0x10de   : > { %v2447_v28 = vpop.xlane.xlu0 %2446 }
0x10df   : > { %v2451_v29 = vmul.f32 0.03125, %v2447_v28 }
0x10e0   : > { %v2450_v30 = vpop.xlane.xlu1 %2449 }
0x10e1   : > { %v2453_v32 = vsub.f32 %v2441_v22, %v2451_v29  ;;  %v2452_v34 = vmul.f32 0.03125, %v2450_v30 }
0x10e3   : > { %v2454_v35 = vsub.f32 %v2442_v25, %v2452_v34  ;;  %v2455_v36 = vmul.f32 %v2453_v32, %v2453_v32 }
0x10e5   : > { %v2457_v37 = vsel %vm972_vm2, %v2455_v36, 0.0  ;;  %v2456_v38 = vmul.f32 %v2454_v35, %v2454_v35 }
0x10e6   : > { %2458 = vadd.xlane.f32.xlu0 %v2457_v37 }
0x10e7   : > { %v2460_v27 = vsel %vm972_vm2, %v2456_v38, 0.0 }
0x10e8   : > { %2461 = vadd.xlane.f32.xlu1 %v2460_v27 }
0x1173   : > { %v2459_v39 = vpop.xlane.xlu0 %2458 }
0x1174   : > { %v2463_v19 = vmul.f32 0.03125, %v2459_v39 }
0x1175   : > { %v2462_v23 = vpop.xlane.xlu1 %2461 }
0x1176   : > { %v2465_v40 = vadd.f32 1e-05, %v2463_v19  ;;  %v2464_v42 = vmul.f32 0.03125, %v2462_v23 }
0x1178   : > { %3059 = vrsqrt.f32 %v2465_v40  ;;  %v2466_v43 = vadd.f32 1e-05, %v2464_v42 }
0x117a   : > { %3061 = vrsqrt.f32 %v2466_v43 }
0x1182   : > { %v3060_v31 = vpop.eup %3059 }
0x1183   : > { %v2469_v44 = vmul.f32 %v3060_v31, %v2453_v32 }
0x1184   : > { %v3062_v45 = vpop.eup %3061 }
0x1185   : > { %v2477_v47 = vmul.f32 %v2754_v33, %v2469_v44  ;;  %v2470_v41 = vmul.f32 %v3062_v45, %v2454_v35  ;;  %2492 = sbr.rel (%p2756_p5) target bundleno = 4492 (0x118c), region = 112 }
0x1187   : > { %v2485_v48 = vadd.f32 %v2755_v46, %v2477_v47  ;;  %v2478_v49 = vmul.f32 %v2754_v33, %v2470_v41 }
0x1189   : > { %2487 = vst.msk [vmem:[#allocation2] sm:$0xff] %vm972_vm2, %v2485_v48  ;;  %v2486_v13 = vadd.f32 %v2755_v46, %v2478_v49  ;;  %2493 = vst.msk [vmem:[%s3684_s29] sm:$0xff] (!%p2756_p5), %vm972_vm2, %v2485_v48 }
0x118b   : > { %2488 = vst.msk [vmem:[#allocation2 + $0x8] sm:$0xff] %vm972_vm2, %v2486_v13  ;;  %2494 = vst.msk [vmem:[%s3684_s29 + $0x8] sm:$0xff] (!%p2756_p5), %vm972_vm2, %v2486_v13 }
0x118c PF: > { %s3685_s6 = sld [smem:[#allocation3_spill]] }
0x1192   : > { %s31_s2 = sadd.s32 1, %s3685_s6  }
0x1193   : > { %p28_p6 = scmp.ge.s32.totalorder %s31_s2, 4  }
0x1195   :  { %30 = sbr.rel (!%p28_p6) target bundleno = 15 (0xf), region = 189 }

</bundles_post_ra>
